<compile_context>
chip_gen: v5e
topology: v5e:2x2
jax: 0.10.0
libtpu: 0.0.40
codegen_flags: <defaults>
</compile_context>

<pallas_src>
import functools

import jax
import jax.numpy as jnp
import numpy as np
from jax import lax
from jax.experimental import pallas as pl
from jax.experimental.pallas import tpu as pltpu

_EPS = 1e-5


# ---------------------------------------------------------------------------
# Kernel 1: fused ConvTranspose2d(4, s=2, p=1) + concat + Conv2d(3x3, p=1)
#           + per-image channel statistics.  One batch image per grid step.
#
# Packing convention: full-resolution position (2i+a, 2j+b), channel c lives
# at [row-phase plane a, row i, packed column j, lane b*F + c].
#
# z scratch lane layout (per row-phase plane, 3*CZ = 768 lanes):
#   [ block(j-1) | block(j) | block(j+1) ],  block = [ up (CU) | y (CY) ]
# so each 3x3-conv kernel row is one aligned (H*W, 768) x (768, CU) matmul.
# ---------------------------------------------------------------------------
def _fused_kernel(x_ref, y_ref, wdec_ref, wconv_ref, btp_ref,
                  out_ref, sum_ref, ssq_ref, z_ref,
                  *, H, W, Cin, F, Cy):
    f32, bf16 = jnp.float32, jnp.bfloat16
    CU, CY = 2 * F, 2 * Cy          # packed lane widths of "up" and "y"
    CZ = CU + CY                    # one column-shift block: [up | y]
    KX = 3 * Cin                    # deconv K per row-tap (pre-shifted x)

    # ---- stage 0: refresh the structural-zero borders of the scratch ------
    # Done every step (cheap: a few rows/columns), not only at step 0, so the
    # kernel is correct even when the "parallel" batch axis is sharded across
    # TensorCores (each core has its own, uninitialized scratch).
    z_ref[:, 0:1] = jnp.zeros((2, 1, W, 3 * CZ), bf16)
    z_ref[:, H + 1:H + 2] = jnp.zeros((2, 1, W, 3 * CZ), bf16)
    z_ref[:, :, 0:1, 0:CZ] = jnp.zeros((2, H + 2, 1, CZ), bf16)
    z_ref[:, :, W - 1:W, 2 * CZ:3 * CZ] = jnp.zeros((2, H + 2, 1, CZ), bf16)

    # ---- stage 0b: scatter y into the three column-shift lane blocks ------
    z_ref[:, 1:H + 1, :, CZ + CU:2 * CZ] = y_ref[0]                        # j
    z_ref[:, 1:H + 1, 1:W, CU:CZ] = y_ref[0, :, :, :W - 1, :]              # j-1
    z_ref[:, 1:H + 1, 0:W - 1, 2 * CZ + CU:3 * CZ] = y_ref[0, :, :, 1:, :]  # j+1

    # ---- stage 1: transposed conv, 2 aligned dots of K=3*Cin per phase ----
    for a in range(2):
        up = (jnp.dot(x_ref[0, a:a + H].reshape(H * W, KX), wdec_ref[a, 0],
                      preferred_element_type=f32)
              + jnp.dot(x_ref[0, a + 1:a + 1 + H].reshape(H * W, KX),
                        wdec_ref[a, 1], preferred_element_type=f32)
              + btp_ref[0])                       # deconv bias (packed [bt,bt])
        up = up.reshape(H, W, CU).astype(bf16)
        z_ref[a, 1:H + 1, :, CZ:CZ + CU] = up                              # j
        z_ref[a, 1:H + 1, 1:W, 0:CU] = up[:, :W - 1, :]                    # j-1
        z_ref[a, 1:H + 1, 0:W - 1, 2 * CZ:2 * CZ + CU] = up[:, 1:, :]      # j+1

    # ---- stage 2: 3x3 conv (3 aligned K=3*CZ dots per phase) + stats ------
    tot_s = jnp.zeros((CU,), f32)
    tot_q = jnp.zeros((CU,), f32)
    for a in range(2):                            # output row-phase
        parts = []
        for dy in range(3):                       # conv kernel row
            src = a + dy - 1                      # full-res row offset (static)
            p = src & 1                           # source row-phase plane
            r0 = (src - p) // 2 + 1               # row start in padded plane
            tap = z_ref[p, r0:r0 + H].reshape(H * W, 3 * CZ)
            parts.append(jnp.dot(tap, wconv_ref[dy],
                                 preferred_element_type=f32))
        acc = parts[0] + parts[1] + parts[2]      # chained sum (MRB-friendly)
        out_ref[0, a] = acc.reshape(H, W, CU).astype(out_ref.dtype)
        tot_s = tot_s + jnp.sum(acc, axis=0)
        tot_q = tot_q + jnp.sum(acc * acc, axis=0)
    sum_ref[...] = tot_s.reshape(1, 1, CU)
    ssq_ref[...] = tot_q.reshape(1, 1, CU)


# ---------------------------------------------------------------------------
# Kernel 2: folded BatchNorm (scale/shift) + ReLU.  Both row phases per grid
# step; output laid out as (N, H, 2, W, 2F) so a row-major reshape is NHWC.
# ---------------------------------------------------------------------------
def _bn_relu_kernel(x_ref, scale_ref, shift_ref, o_ref):
    scale = scale_ref[0]
    shift = shift_ref[0]
    for a in range(2):
        v = x_ref[0, a].astype(jnp.float32) * scale + shift
        o_ref[0, :, a, :, :] = jnp.maximum(v, 0.0)


# ---------------------------------------------------------------------------
# Weight re-packing (XLA side, tiny tensors).
# ---------------------------------------------------------------------------
def _build_deconv_weight(wt):
    # wt: (Cin, F, 4, 4) ConvTranspose2d weight -> (2, 2, 3*Cin, 2F) bf16.
    # Index order: [row-phase a, row-tap t, (column tap dj=-1,0,+1) x Cin, b*F+co].
    Cin, F = wt.shape[0], wt.shape[1]
    wtj = jnp.transpose(wt, (2, 3, 0, 1))          # (ky, kx, ci, co)
    zeros = jnp.zeros((Cin, F), wt.dtype)
    mats = []
    for a in range(2):
        blocks = []
        for roff in (a, a + 1):
            ky = a + 3 - 2 * roff
            for coff in (0, 1, 2):
                halves = []
                for b in range(2):
                    kx = b + 3 - 2 * coff
                    halves.append(wtj[ky, kx] if 0 <= kx < 4 else zeros)
                blocks.append(jnp.concatenate(halves, axis=1))   # (Cin, 2F)
        mats.append(jnp.concatenate(blocks, axis=0))             # (6*Cin, 2F)
    w = jnp.stack(mats, axis=0).astype(jnp.bfloat16)             # (2, 6*Cin, 2F)
    return w.reshape(2, 2, 3 * Cin, 2 * F)


def _build_conv_weight(wc):
    # wc: (F, F+Cy, 3, 3) Conv2d weight -> (3, 3*(2F+2Cy), 2F) bf16.
    # Per dy, K order = [dj=-1: up h0,h1, y h0,h1 | dj=0: ... | dj=+1: ...],
    # matching the z scratch lane layout.
    F, Ci = wc.shape[0], wc.shape[1]
    Cy = Ci - F
    wcj = jnp.transpose(wc, (2, 3, 1, 0))          # (dy, dx, ci, co)
    mats = []
    for dy in range(3):
        blocks = []
        for dj in (-1, 0, 1):                      # packed-column tap
            for base, nch in ((0, F), (F, Cy)):    # up block, then y block
                zeros = jnp.zeros((nch, F), wc.dtype)
                for h in range(2):                 # input column parity
                    halves = []
                    for b in range(2):             # output column parity
                        dx = 2 * dj + h - b + 1
                        if 0 <= dx <= 2:
                            halves.append(wcj[dy, dx, base:base + nch, :])
                        else:
                            halves.append(zeros)
                    blocks.append(jnp.concatenate(halves, axis=1))  # (nch, 2F)
        mats.append(jnp.concatenate(blocks, axis=0))                # (K, 2F)
    return jnp.stack(mats, axis=0).astype(jnp.bfloat16)


# ---------------------------------------------------------------------------
# Wrapper.
# ---------------------------------------------------------------------------
def upsample_n_concat_3(x_nchw, y_nchw, params):
    wt, bt, wc, bc, gamma, beta = (params[k] for k in
                                   ("wt", "bt", "wc", "bc", "gamma", "beta"))
    del bc  # per-channel constant; cancels exactly under training-mode BN.

    N, Cin, H, W = x_nchw.shape
    F = wt.shape[1]
    Cy = y_nchw.shape[1]
    OH, OW = 2 * H, 2 * W
    CU, CY = 2 * F, 2 * Cy
    CZ = CU + CY
    assert CU % 128 == 0 and CY % 128 == 0 and W % 8 == 0, (
        "lane packing assumes 128-aligned channel blocks and W % 8 == 0")

    # x: NHWC bf16 with the three column taps (j-1, j, j+1) pre-packed in the
    # lane dim and one row of zero padding (built by XLA; x is the small input).
    x_nhwc = jnp.transpose(x_nchw, (0, 2, 3, 1)).astype(jnp.bfloat16)
    xl = jnp.pad(x_nhwc[:, :, :-1, :], ((0, 0), (0, 0), (1, 0), (0, 0)))
    xr = jnp.pad(x_nhwc[:, :, 1:, :], ((0, 0), (0, 0), (0, 1), (0, 0)))
    x_sh = jnp.pad(jnp.concatenate([xl, x_nhwc, xr], axis=-1),
                   ((0, 0), (1, 1), (0, 0), (0, 0)))     # (N, H+2, W, 3*Cin)

    # y: position (2i+a, 2j+b), channel c -> [n, a, i, j, b*Cy + c], bf16.
    y_phased = jnp.transpose(y_nchw.reshape(N, Cy, H, 2, W, 2),
                             (0, 3, 2, 4, 5, 1)).reshape(N, 2, H, W, CY)
    y_phased = y_phased.astype(jnp.bfloat16)

    wdec = _build_deconv_weight(wt)                      # (2, 2, 3*Cin, CU)
    wconv = _build_conv_weight(wc)                       # (3, 3*CZ, CU)
    btp = jnp.tile(bt, 2).reshape(1, CU).astype(jnp.float32)

    # VMEM budget: packed scratch + double-buffered blocks + weights + slack.
    vmem_est = (2 * (H + 2) * W * 3 * CZ * 2
                + 2 * ((H + 2) * W * 3 * Cin * 2 + 2 * H * W * CY * 2
                       + 2 * H * W * CU * 2 + 4 * CU * 4
                       + wdec.size * 2 + wconv.size * 2 + CU * 4)
                + (8 << 20))
    vmem_limit = int(min(100 << 20, max(32 << 20, vmem_est)))

    kernel = functools.partial(_fused_kernel, H=H, W=W, Cin=Cin, F=F, Cy=Cy)
    conv_out, psum, pssq = pl.pallas_call(
        kernel,
        out_shape=(jax.ShapeDtypeStruct((N, 2, H, W, CU), jnp.bfloat16),
                   jax.ShapeDtypeStruct((N, 1, CU), jnp.float32),
                   jax.ShapeDtypeStruct((N, 1, CU), jnp.float32)),
        grid=(N,),
        in_specs=[
            pl.BlockSpec((1, H + 2, W, 3 * Cin), lambda n: (n, 0, 0, 0)),
            pl.BlockSpec((1, 2, H, W, CY), lambda n: (n, 0, 0, 0, 0)),
            pl.BlockSpec((2, 2, 3 * Cin, CU), lambda n: (0, 0, 0, 0)),
            pl.BlockSpec((3, 3 * CZ, CU), lambda n: (0, 0, 0)),
            pl.BlockSpec((1, CU), lambda n: (0, 0)),
        ],
        out_specs=(
            pl.BlockSpec((1, 2, H, W, CU), lambda n: (n, 0, 0, 0, 0)),
            pl.BlockSpec((1, 1, CU), lambda n: (n, 0, 0)),
            pl.BlockSpec((1, 1, CU), lambda n: (n, 0, 0)),
        ),
        scratch_shapes=[
            pltpu.VMEM((2, H + 2, W, 3 * CZ), jnp.bfloat16),  # packed [up|y] x 3 shifts
        ],
        compiler_params=pltpu.CompilerParams(
            dimension_semantics=("parallel",),
            vmem_limit_bytes=vmem_limit),
    )(x_sh, y_phased, wdec, wconv, btp)

    # ---- fold training-mode BatchNorm (biased batch stats) in XLA ---------
    s = jnp.sum(psum, axis=(0, 1))                 # (CU,)
    q = jnp.sum(pssq, axis=(0, 1))
    ch_sum = s[:F] + s[F:]
    ch_ssq = q[:F] + q[F:]
    count = N * OH * OW
    mean = ch_sum / count
    var = ch_ssq / count - mean * mean
    scale = gamma * lax.rsqrt(var + _EPS)
    shift = beta - mean * scale
    scale_p = jnp.tile(scale, 2).reshape(1, CU).astype(jnp.float32)
    shift_p = jnp.tile(shift, 2).reshape(1, CU).astype(jnp.float32)

    out_planes = pl.pallas_call(
        _bn_relu_kernel,
        out_shape=jax.ShapeDtypeStruct((N, H, 2, W, CU), jnp.float32),
        grid=(N,),
        in_specs=[
            pl.BlockSpec((1, 2, H, W, CU), lambda n: (n, 0, 0, 0, 0)),
            pl.BlockSpec((1, CU), lambda n: (0, 0)),
            pl.BlockSpec((1, CU), lambda n: (0, 0)),
        ],
        out_specs=pl.BlockSpec((1, H, 2, W, CU), lambda n: (n, 0, 0, 0, 0)),
        compiler_params=pltpu.CompilerParams(
            dimension_semantics=("parallel",)),
    )(conv_out, scale_p, shift_p)

    # (N, H, 2, W, 2F) is row-major identical to (N, 2H, 2W, F).
    return out_planes.reshape(N, OH, OW, F)        # NHWC


# ---------------------------------------------------------------------------
# Pure-JAX reference (matches PyTorch forward semantics) for verification.
# ---------------------------------------------------------------------------
def reference(x_nchw, y_nchw, params):
    wt, bt, wc, bc, gamma, beta = (params[k] for k in
                                   ("wt", "bt", "wc", "bc", "gamma", "beta"))
    x = jnp.transpose(x_nchw, (0, 2, 3, 1))
    y = jnp.transpose(y_nchw, (0, 2, 3, 1))
    # ConvTranspose2d == dilate lhs by stride, pad k-1-p, conv with flipped w
    w_flip = jnp.transpose(wt[:, :, ::-1, ::-1], (2, 3, 0, 1))   # HWIO
    up = lax.conv_general_dilated(
        x, w_flip, window_strides=(1, 1), padding=[(2, 2), (2, 2)],
        lhs_dilation=(2, 2), dimension_numbers=('NHWC', 'HWIO', 'NHWC'),
        precision=lax.Precision.HIGHEST) + bt
    z = jnp.concatenate([up, y], axis=-1)
    wc_hwio = jnp.transpose(wc, (2, 3, 1, 0))
    c = lax.conv_general_dilated(
        z, wc_hwio, window_strides=(1, 1), padding=[(1, 1), (1, 1)],
        dimension_numbers=('NHWC', 'HWIO', 'NHWC'),
        precision=lax.Precision.HIGHEST) + bc
    mean = jnp.mean(c, axis=(0, 1, 2))
    var = jnp.var(c, axis=(0, 1, 2))
    return jnp.maximum((c - mean) / jnp.sqrt(var + _EPS) * gamma + beta, 0.0)


if __name__ == "__main__":
    filters = 64                       # => y has 128 - filters = 64 channels
    N, H, W = 2, 8, 8

    key = jax.random.PRNGKey(0)
    ks = jax.random.split(key, 8)
    x = jax.random.normal(ks[0], (N, 64, H, W), jnp.float32)
    y = jax.random.normal(ks[1], (N, 128 - filters, 2 * H, 2 * W), jnp.float32)

    params = {
        "wt": 0.05 * jax.random.normal(ks[2], (64, filters, 4, 4), jnp.float32),
        "bt": 0.05 * jax.random.normal(ks[3], (filters,), jnp.float32),
        "wc": 0.05 * jax.random.normal(ks[4], (filters, 128, 3, 3), jnp.float32),
        "bc": 0.05 * jax.random.normal(ks[5], (filters,), jnp.float32),
        "gamma": 1.0 + 0.1 * jax.random.normal(ks[6], (filters,), jnp.float32),
        "beta": 0.1 * jax.random.normal(ks[7], (filters,), jnp.float32),
    }

    out = jax.jit(upsample_n_concat_3)(x, y, params)
    out = jax.block_until_ready(out)

    ref = reference(x, y, params)
    assert out.shape == (N, 2 * H, 2 * W, filters)
    max_err = float(jnp.max(jnp.abs(out - ref)))
    # bf16 MXU operands + bf16 conv_out intermediate vs Precision.HIGHEST f32
    # reference: expected gap ~1e-2; 4e-2 leaves margin without hiding bugs.
    assert np.isfinite(max_err) and max_err < 4e-2, f"max abs err {max_err}"

    print("KERNEL_OK")
</pallas_src>

<mosaic_0001>
module attributes {stable_mosaic.version = 11 : i64} {
  func.func @_fused_kernel(%arg0: i32, %arg1: memref<1x10x8x192xbf16, #tpu.memory_space<vmem>>, %arg2: memref<1x2x8x8x128xbf16, #tpu.memory_space<vmem>>, %arg3: memref<2x2x192x128xbf16, #tpu.memory_space<vmem>>, %arg4: memref<3x768x128xbf16, #tpu.memory_space<vmem>>, %arg5: memref<1x128xf32, #tpu.memory_space<vmem>>, %arg6: memref<1x2x8x8x128xbf16, #tpu.memory_space<vmem>>, %arg7: memref<1x1x128xf32, #tpu.memory_space<vmem>>, %arg8: memref<1x1x128xf32, #tpu.memory_space<vmem>>, %arg9: memref<2x10x8x768xbf16, #tpu.memory_space<vmem>>) attributes {dimension_semantics = [#tpu.dimension_semantics<parallel>], iteration_bounds = array<i64: 2>, scalar_prefetch = 0 : i64, scratch_operands = 1 : i64, tpu.core_type = #tpu.core_type<tc>, window_params = [{transform_indices = @transform_0, window_bounds = array<i64: 1, 10, 8, 192>}, {transform_indices = @transform_1, window_bounds = array<i64: 1, 2, 8, 8, 128>}, {pipeline_mode = #tpu.pipeline_mode<synchronous>, transform_indices = @transform_2, window_bounds = array<i64: 2, 2, 192, 128>}, {pipeline_mode = #tpu.pipeline_mode<synchronous>, transform_indices = @transform_3, window_bounds = array<i64: 3, 768, 128>}, {pipeline_mode = #tpu.pipeline_mode<synchronous>, transform_indices = @transform_4, window_bounds = array<i64: 1, 128>}, {transform_indices = @transform_5, window_bounds = array<i64: 1, 2, 8, 8, 128>}, {transform_indices = @transform_6, window_bounds = array<i64: 1, 1, 128>}, {transform_indices = @transform_7, window_bounds = array<i64: 1, 1, 128>}]} {
    %cst = arith.constant 0.000000e+00 : bf16
    %0 = vector.broadcast %cst : bf16 to vector<2x1x8x768xbf16>
    %c0 = arith.constant 0 : index
    %c0_0 = arith.constant 0 : index
    %c0_1 = arith.constant 0 : index
    %c0_2 = arith.constant 0 : index
    %1 = vector.load %arg9[%c0, %c0_0, %c0_1, %c0_2] : memref<2x10x8x768xbf16, #tpu.memory_space<vmem>>, vector<2x1x8x768xbf16>
    tpu.vector_store %arg9[%c0, %c0_0, %c0_1, %c0_2], %0 {strides = array<i32>} : memref<2x10x8x768xbf16, #tpu.memory_space<vmem>>, vector<2x1x8x768xbf16>,
    %cst_3 = arith.constant 0.000000e+00 : bf16
    %2 = vector.broadcast %cst_3 : bf16 to vector<2x1x8x768xbf16>
    %c0_4 = arith.constant 0 : index
    %c9 = arith.constant 9 : index
    %c0_5 = arith.constant 0 : index
    %c0_6 = arith.constant 0 : index
    %3 = vector.load %arg9[%c0_4, %c9, %c0_5, %c0_6] : memref<2x10x8x768xbf16, #tpu.memory_space<vmem>>, vector<2x1x8x768xbf16>
    tpu.vector_store %arg9[%c0_4, %c9, %c0_5, %c0_6], %2 {strides = array<i32>} : memref<2x10x8x768xbf16, #tpu.memory_space<vmem>>, vector<2x1x8x768xbf16>,
    %cst_7 = arith.constant 0.000000e+00 : bf16
    %4 = vector.broadcast %cst_7 : bf16 to vector<2x10x1x256xbf16>
    %c0_8 = arith.constant 0 : index
    %c0_9 = arith.constant 0 : index
    %c0_10 = arith.constant 0 : index
    %c0_11 = arith.constant 0 : index
    %5 = vector.load %arg9[%c0_8, %c0_9, %c0_10, %c0_11] : memref<2x10x8x768xbf16, #tpu.memory_space<vmem>>, vector<2x10x1x256xbf16>
    tpu.vector_store %arg9[%c0_8, %c0_9, %c0_10, %c0_11], %4 {strides = array<i32>} : memref<2x10x8x768xbf16, #tpu.memory_space<vmem>>, vector<2x10x1x256xbf16>,
    %cst_12 = arith.constant 0.000000e+00 : bf16
    %6 = vector.broadcast %cst_12 : bf16 to vector<2x10x1x256xbf16>
    %c0_13 = arith.constant 0 : index
    %c0_14 = arith.constant 0 : index
    %c7 = arith.constant 7 : index
    %c512 = arith.constant 512 : index
    %7 = vector.load %arg9[%c0_13, %c0_14, %c7, %c512] : memref<2x10x8x768xbf16, #tpu.memory_space<vmem>>, vector<2x10x1x256xbf16>
    tpu.vector_store %arg9[%c0_13, %c0_14, %c7, %c512], %6 {strides = array<i32>} : memref<2x10x8x768xbf16, #tpu.memory_space<vmem>>, vector<2x10x1x256xbf16>,
    %c0_15 = arith.constant 0 : index
    %c0_16 = arith.constant 0 : index
    %c0_17 = arith.constant 0 : index
    %c0_18 = arith.constant 0 : index
    %c0_19 = arith.constant 0 : index
    %8 = vector.load %arg2[%c0_15, %c0_16, %c0_17, %c0_18, %c0_19] : memref<1x2x8x8x128xbf16, #tpu.memory_space<vmem>>, vector<1x2x8x8x128xbf16>
    %9 = vector.shape_cast %8 : vector<1x2x8x8x128xbf16> to vector<2x8x8x128xbf16>
    %c0_20 = arith.constant 0 : index
    %c1 = arith.constant 1 : index
    %c0_21 = arith.constant 0 : index
    %c384 = arith.constant 384 : index
    %10 = vector.load %arg9[%c0_20, %c1, %c0_21, %c384] : memref<2x10x8x768xbf16, #tpu.memory_space<vmem>>, vector<2x8x8x128xbf16>
    tpu.vector_store %arg9[%c0_20, %c1, %c0_21, %c384], %9 {strides = array<i32>} : memref<2x10x8x768xbf16, #tpu.memory_space<vmem>>, vector<2x8x8x128xbf16>,
    %c0_22 = arith.constant 0 : index
    %c0_23 = arith.constant 0 : index
    %c0_24 = arith.constant 0 : index
    %c0_25 = arith.constant 0 : index
    %c0_26 = arith.constant 0 : index
    %11 = vector.load %arg2[%c0_22, %c0_23, %c0_24, %c0_25, %c0_26] : memref<1x2x8x8x128xbf16, #tpu.memory_space<vmem>>, vector<1x2x8x7x128xbf16>
    %12 = vector.shape_cast %11 : vector<1x2x8x7x128xbf16> to vector<2x8x7x128xbf16>
    %c0_27 = arith.constant 0 : index
    %c1_28 = arith.constant 1 : index
    %c1_29 = arith.constant 1 : index
    %c128 = arith.constant 128 : index
    %13 = vector.load %arg9[%c0_27, %c1_28, %c1_29, %c128] : memref<2x10x8x768xbf16, #tpu.memory_space<vmem>>, vector<2x8x7x128xbf16>
    tpu.vector_store %arg9[%c0_27, %c1_28, %c1_29, %c128], %12 {strides = array<i32>} : memref<2x10x8x768xbf16, #tpu.memory_space<vmem>>, vector<2x8x7x128xbf16>,
    %c0_30 = arith.constant 0 : index
    %c0_31 = arith.constant 0 : index
    %c0_32 = arith.constant 0 : index
    %c1_33 = arith.constant 1 : index
    %c0_34 = arith.constant 0 : index
    %14 = vector.load %arg2[%c0_30, %c0_31, %c0_32, %c1_33, %c0_34] : memref<1x2x8x8x128xbf16, #tpu.memory_space<vmem>>, vector<1x2x8x7x128xbf16>
    %15 = vector.shape_cast %14 : vector<1x2x8x7x128xbf16> to vector<2x8x7x128xbf16>
    %c0_35 = arith.constant 0 : index
    %c1_36 = arith.constant 1 : index
    %c0_37 = arith.constant 0 : index
    %c640 = arith.constant 640 : index
    %16 = vector.load %arg9[%c0_35, %c1_36, %c0_37, %c640] : memref<2x10x8x768xbf16, #tpu.memory_space<vmem>>, vector<2x8x7x128xbf16>
    tpu.vector_store %arg9[%c0_35, %c1_36, %c0_37, %c640], %15 {strides = array<i32>} : memref<2x10x8x768xbf16, #tpu.memory_space<vmem>>, vector<2x8x7x128xbf16>,
    %c0_38 = arith.constant 0 : index
    %c0_39 = arith.constant 0 : index
    %c0_40 = arith.constant 0 : index
    %c0_41 = arith.constant 0 : index
    %17 = vector.load %arg1[%c0_38, %c0_39, %c0_40, %c0_41] : memref<1x10x8x192xbf16, #tpu.memory_space<vmem>>, vector<1x8x8x192xbf16>
    %18 = vector.shape_cast %17 : vector<1x8x8x192xbf16> to vector<8x8x192xbf16>
    %19 = vector.shape_cast %18 : vector<8x8x192xbf16> to vector<64x192xbf16>
    %c0_42 = arith.constant 0 : index
    %c0_43 = arith.constant 0 : index
    %c0_44 = arith.constant 0 : index
    %c0_45 = arith.constant 0 : index
    %20 = vector.load %arg3[%c0_42, %c0_43, %c0_44, %c0_45] : memref<2x2x192x128xbf16, #tpu.memory_space<vmem>>, vector<1x1x192x128xbf16>
    %21 = vector.shape_cast %20 : vector<1x1x192x128xbf16> to vector<192x128xbf16>
    %cst_46 = arith.constant dense<0.000000e+00> : vector<64x128xf32>
    %22 = tpu.matmul %19, %21, %cst_46 {dimension_numbers = #tpu.dot_dimension_numbers<[1], [0], [0], [1], [0, 0, 1, 1], [], []>} : vector<64x192xbf16>, vector<192x128xbf16>, vector<64x128xf32> -> vector<64x128xf32>
    %c0_47 = arith.constant 0 : index
    %c1_48 = arith.constant 1 : index
    %c0_49 = arith.constant 0 : index
    %c0_50 = arith.constant 0 : index
    %23 = vector.load %arg1[%c0_47, %c1_48, %c0_49, %c0_50] : memref<1x10x8x192xbf16, #tpu.memory_space<vmem>>, vector<1x8x8x192xbf16>
    %24 = vector.shape_cast %23 : vector<1x8x8x192xbf16> to vector<8x8x192xbf16>
    %25 = vector.shape_cast %24 : vector<8x8x192xbf16> to vector<64x192xbf16>
    %c0_51 = arith.constant 0 : index
    %c1_52 = arith.constant 1 : index
    %c0_53 = arith.constant 0 : index
    %c0_54 = arith.constant 0 : index
    %26 = vector.load %arg3[%c0_51, %c1_52, %c0_53, %c0_54] : memref<2x2x192x128xbf16, #tpu.memory_space<vmem>>, vector<1x1x192x128xbf16>
    %27 = vector.shape_cast %26 : vector<1x1x192x128xbf16> to vector<192x128xbf16>
    %cst_55 = arith.constant dense<0.000000e+00> : vector<64x128xf32>
    %28 = tpu.matmul %25, %27, %cst_55 {dimension_numbers = #tpu.dot_dimension_numbers<[1], [0], [0], [1], [0, 0, 1, 1], [], []>} : vector<64x192xbf16>, vector<192x128xbf16>, vector<64x128xf32> -> vector<64x128xf32>
    %29 = arith.addf %22, %28 : vector<64x128xf32>
    %c0_56 = arith.constant 0 : index
    %c0_57 = arith.constant 0 : index
    %30 = vector.load %arg5[%c0_56, %c0_57] : memref<1x128xf32, #tpu.memory_space<vmem>>, vector<1x128xf32>
    %31 = vector.shape_cast %30 : vector<1x128xf32> to vector<128xf32>
    %32 = vector.shape_cast %31 : vector<128xf32> to vector<1x128xf32>
    %33 = vector.broadcast %32 : vector<1x128xf32> to vector<64x128xf32>
    %34 = arith.addf %29, %33 : vector<64x128xf32>
    %35 = vector.shape_cast %34 : vector<64x128xf32> to vector<8x8x128xf32>
    %36 = arith.truncf %35 : vector<8x8x128xf32> to vector<8x8x128xbf16>
    %c0_58 = arith.constant 0 : index
    %c1_59 = arith.constant 1 : index
    %c0_60 = arith.constant 0 : index
    %c256 = arith.constant 256 : index
    %37 = vector.load %arg9[%c0_58, %c1_59, %c0_60, %c256] : memref<2x10x8x768xbf16, #tpu.memory_space<vmem>>, vector<1x8x8x128xbf16>
    %38 = vector.shape_cast %37 : vector<1x8x8x128xbf16> to vector<8x8x128xbf16>
    %39 = vector.shape_cast %36 : vector<8x8x128xbf16> to vector<1x8x8x128xbf16>
    tpu.vector_store %arg9[%c0_58, %c1_59, %c0_60, %c256], %39 {strides = array<i32>} : memref<2x10x8x768xbf16, #tpu.memory_space<vmem>>, vector<1x8x8x128xbf16>,
    %40 = vector.extract_strided_slice %36 {offsets = [0, 0, 0], sizes = [8, 7, 128], strides = [1, 1, 1]} : vector<8x8x128xbf16> to vector<8x7x128xbf16>
    %c0_61 = arith.constant 0 : index
    %c1_62 = arith.constant 1 : index
    %c1_63 = arith.constant 1 : index
    %c0_64 = arith.constant 0 : index
    %41 = vector.load %arg9[%c0_61, %c1_62, %c1_63, %c0_64] : memref<2x10x8x768xbf16, #tpu.memory_space<vmem>>, vector<1x8x7x128xbf16>
    %42 = vector.shape_cast %41 : vector<1x8x7x128xbf16> to vector<8x7x128xbf16>
    %43 = vector.shape_cast %40 : vector<8x7x128xbf16> to vector<1x8x7x128xbf16>
    tpu.vector_store %arg9[%c0_61, %c1_62, %c1_63, %c0_64], %43 {strides = array<i32>} : memref<2x10x8x768xbf16, #tpu.memory_space<vmem>>, vector<1x8x7x128xbf16>,
    %44 = vector.extract_strided_slice %36 {offsets = [0, 1, 0], sizes = [8, 7, 128], strides = [1, 1, 1]} : vector<8x8x128xbf16> to vector<8x7x128xbf16>
    %c0_65 = arith.constant 0 : index
    %c1_66 = arith.constant 1 : index
    %c0_67 = arith.constant 0 : index
    %c512_68 = arith.constant 512 : index
    %45 = vector.load %arg9[%c0_65, %c1_66, %c0_67, %c512_68] : memref<2x10x8x768xbf16, #tpu.memory_space<vmem>>, vector<1x8x7x128xbf16>
    %46 = vector.shape_cast %45 : vector<1x8x7x128xbf16> to vector<8x7x128xbf16>
    %47 = vector.shape_cast %44 : vector<8x7x128xbf16> to vector<1x8x7x128xbf16>
    tpu.vector_store %arg9[%c0_65, %c1_66, %c0_67, %c512_68], %47 {strides = array<i32>} : memref<2x10x8x768xbf16, #tpu.memory_space<vmem>>, vector<1x8x7x128xbf16>,
    %c0_69 = arith.constant 0 : index
    %c1_70 = arith.constant 1 : index
    %c0_71 = arith.constant 0 : index
    %c0_72 = arith.constant 0 : index
    %48 = vector.load %arg1[%c0_69, %c1_70, %c0_71, %c0_72] : memref<1x10x8x192xbf16, #tpu.memory_space<vmem>>, vector<1x8x8x192xbf16>
    %49 = vector.shape_cast %48 : vector<1x8x8x192xbf16> to vector<8x8x192xbf16>
    %50 = vector.shape_cast %49 : vector<8x8x192xbf16> to vector<64x192xbf16>
    %c1_73 = arith.constant 1 : index
    %c0_74 = arith.constant 0 : index
    %c0_75 = arith.constant 0 : index
    %c0_76 = arith.constant 0 : index
    %51 = vector.load %arg3[%c1_73, %c0_74, %c0_75, %c0_76] : memref<2x2x192x128xbf16, #tpu.memory_space<vmem>>, vector<1x1x192x128xbf16>
    %52 = vector.shape_cast %51 : vector<1x1x192x128xbf16> to vector<192x128xbf16>
    %cst_77 = arith.constant dense<0.000000e+00> : vector<64x128xf32>
    %53 = tpu.matmul %50, %52, %cst_77 {dimension_numbers = #tpu.dot_dimension_numbers<[1], [0], [0], [1], [0, 0, 1, 1], [], []>} : vector<64x192xbf16>, vector<192x128xbf16>, vector<64x128xf32> -> vector<64x128xf32>
    %c0_78 = arith.constant 0 : index
    %c2 = arith.constant 2 : index
    %c0_79 = arith.constant 0 : index
    %c0_80 = arith.constant 0 : index
    %54 = vector.load %arg1[%c0_78, %c2, %c0_79, %c0_80] : memref<1x10x8x192xbf16, #tpu.memory_space<vmem>>, vector<1x8x8x192xbf16>
    %55 = vector.shape_cast %54 : vector<1x8x8x192xbf16> to vector<8x8x192xbf16>
    %56 = vector.shape_cast %55 : vector<8x8x192xbf16> to vector<64x192xbf16>
    %c1_81 = arith.constant 1 : index
    %c1_82 = arith.constant 1 : index
    %c0_83 = arith.constant 0 : index
    %c0_84 = arith.constant 0 : index
    %57 = vector.load %arg3[%c1_81, %c1_82, %c0_83, %c0_84] : memref<2x2x192x128xbf16, #tpu.memory_space<vmem>>, vector<1x1x192x128xbf16>
    %58 = vector.shape_cast %57 : vector<1x1x192x128xbf16> to vector<192x128xbf16>
    %cst_85 = arith.constant dense<0.000000e+00> : vector<64x128xf32>
    %59 = tpu.matmul %56, %58, %cst_85 {dimension_numbers = #tpu.dot_dimension_numbers<[1], [0], [0], [1], [0, 0, 1, 1], [], []>} : vector<64x192xbf16>, vector<192x128xbf16>, vector<64x128xf32> -> vector<64x128xf32>
    %60 = arith.addf %53, %59 : vector<64x128xf32>
    %c0_86 = arith.constant 0 : index
    %c0_87 = arith.constant 0 : index
    %61 = vector.load %arg5[%c0_86, %c0_87] : memref<1x128xf32, #tpu.memory_space<vmem>>, vector<1x128xf32>
    %62 = vector.shape_cast %61 : vector<1x128xf32> to vector<128xf32>
    %63 = vector.shape_cast %62 : vector<128xf32> to vector<1x128xf32>
    %64 = vector.broadcast %63 : vector<1x128xf32> to vector<64x128xf32>
    %65 = arith.addf %60, %64 : vector<64x128xf32>
    %66 = vector.shape_cast %65 : vector<64x128xf32> to vector<8x8x128xf32>
    %67 = arith.truncf %66 : vector<8x8x128xf32> to vector<8x8x128xbf16>
    %c1_88 = arith.constant 1 : index
    %c1_89 = arith.constant 1 : index
    %c0_90 = arith.constant 0 : index
    %c256_91 = arith.constant 256 : index
    %68 = vector.load %arg9[%c1_88, %c1_89, %c0_90, %c256_91] : memref<2x10x8x768xbf16, #tpu.memory_space<vmem>>, vector<1x8x8x128xbf16>
    %69 = vector.shape_cast %68 : vector<1x8x8x128xbf16> to vector<8x8x128xbf16>
    %70 = vector.shape_cast %67 : vector<8x8x128xbf16> to vector<1x8x8x128xbf16>
    tpu.vector_store %arg9[%c1_88, %c1_89, %c0_90, %c256_91], %70 {strides = array<i32>} : memref<2x10x8x768xbf16, #tpu.memory_space<vmem>>, vector<1x8x8x128xbf16>,
    %71 = vector.extract_strided_slice %67 {offsets = [0, 0, 0], sizes = [8, 7, 128], strides = [1, 1, 1]} : vector<8x8x128xbf16> to vector<8x7x128xbf16>
    %c1_92 = arith.constant 1 : index
    %c1_93 = arith.constant 1 : index
    %c1_94 = arith.constant 1 : index
    %c0_95 = arith.constant 0 : index
    %72 = vector.load %arg9[%c1_92, %c1_93, %c1_94, %c0_95] : memref<2x10x8x768xbf16, #tpu.memory_space<vmem>>, vector<1x8x7x128xbf16>
    %73 = vector.shape_cast %72 : vector<1x8x7x128xbf16> to vector<8x7x128xbf16>
    %74 = vector.shape_cast %71 : vector<8x7x128xbf16> to vector<1x8x7x128xbf16>
    tpu.vector_store %arg9[%c1_92, %c1_93, %c1_94, %c0_95], %74 {strides = array<i32>} : memref<2x10x8x768xbf16, #tpu.memory_space<vmem>>, vector<1x8x7x128xbf16>,
    %75 = vector.extract_strided_slice %67 {offsets = [0, 1, 0], sizes = [8, 7, 128], strides = [1, 1, 1]} : vector<8x8x128xbf16> to vector<8x7x128xbf16>
    %c1_96 = arith.constant 1 : index
    %c1_97 = arith.constant 1 : index
    %c0_98 = arith.constant 0 : index
    %c512_99 = arith.constant 512 : index
    %76 = vector.load %arg9[%c1_96, %c1_97, %c0_98, %c512_99] : memref<2x10x8x768xbf16, #tpu.memory_space<vmem>>, vector<1x8x7x128xbf16>
    %77 = vector.shape_cast %76 : vector<1x8x7x128xbf16> to vector<8x7x128xbf16>
    %78 = vector.shape_cast %75 : vector<8x7x128xbf16> to vector<1x8x7x128xbf16>
    tpu.vector_store %arg9[%c1_96, %c1_97, %c0_98, %c512_99], %78 {strides = array<i32>} : memref<2x10x8x768xbf16, #tpu.memory_space<vmem>>, vector<1x8x7x128xbf16>,
    %cst_100 = arith.constant 0.000000e+00 : f32
    %79 = vector.broadcast %cst_100 : f32 to vector<128xf32>
    %cst_101 = arith.constant 0.000000e+00 : f32
    %80 = vector.broadcast %cst_101 : f32 to vector<128xf32>
    %c1_102 = arith.constant 1 : index
    %c0_103 = arith.constant 0 : index
    %c0_104 = arith.constant 0 : index
    %c0_105 = arith.constant 0 : index
    %81 = vector.load %arg9[%c1_102, %c0_103, %c0_104, %c0_105] : memref<2x10x8x768xbf16, #tpu.memory_space<vmem>>, vector<1x8x8x768xbf16>
    %82 = vector.shape_cast %81 : vector<1x8x8x768xbf16> to vector<8x8x768xbf16>
    %83 = vector.shape_cast %82 : vector<8x8x768xbf16> to vector<64x768xbf16>
    %c0_106 = arith.constant 0 : index
    %c0_107 = arith.constant 0 : index
    %c0_108 = arith.constant 0 : index
    %84 = vector.load %arg4[%c0_106, %c0_107, %c0_108] : memref<3x768x128xbf16, #tpu.memory_space<vmem>>, vector<1x768x128xbf16>
    %85 = vector.shape_cast %84 : vector<1x768x128xbf16> to vector<768x128xbf16>
    %cst_109 = arith.constant dense<0.000000e+00> : vector<64x128xf32>
    %86 = tpu.matmul %83, %85, %cst_109 {dimension_numbers = #tpu.dot_dimension_numbers<[1], [0], [0], [1], [0, 0, 1, 1], [], []>} : vector<64x768xbf16>, vector<768x128xbf16>, vector<64x128xf32> -> vector<64x128xf32>
    %c0_110 = arith.constant 0 : index
    %c1_111 = arith.constant 1 : index
    %c0_112 = arith.constant 0 : index
    %c0_113 = arith.constant 0 : index
    %87 = vector.load %arg9[%c0_110, %c1_111, %c0_112, %c0_113] : memref<2x10x8x768xbf16, #tpu.memory_space<vmem>>, vector<1x8x8x768xbf16>
    %88 = vector.shape_cast %87 : vector<1x8x8x768xbf16> to vector<8x8x768xbf16>
    %89 = vector.shape_cast %88 : vector<8x8x768xbf16> to vector<64x768xbf16>
    %c1_114 = arith.constant 1 : index
    %c0_115 = arith.constant 0 : index
    %c0_116 = arith.constant 0 : index
    %90 = vector.load %arg4[%c1_114, %c0_115, %c0_116] : memref<3x768x128xbf16, #tpu.memory_space<vmem>>, vector<1x768x128xbf16>
    %91 = vector.shape_cast %90 : vector<1x768x128xbf16> to vector<768x128xbf16>
    %cst_117 = arith.constant dense<0.000000e+00> : vector<64x128xf32>
    %92 = tpu.matmul %89, %91, %cst_117 {dimension_numbers = #tpu.dot_dimension_numbers<[1], [0], [0], [1], [0, 0, 1, 1], [], []>} : vector<64x768xbf16>, vector<768x128xbf16>, vector<64x128xf32> -> vector<64x128xf32>
    %c1_118 = arith.constant 1 : index
    %c1_119 = arith.constant 1 : index
    %c0_120 = arith.constant 0 : index
    %c0_121 = arith.constant 0 : index
    %93 = vector.load %arg9[%c1_118, %c1_119, %c0_120, %c0_121] : memref<2x10x8x768xbf16, #tpu.memory_space<vmem>>, vector<1x8x8x768xbf16>
    %94 = vector.shape_cast %93 : vector<1x8x8x768xbf16> to vector<8x8x768xbf16>
    %95 = vector.shape_cast %94 : vector<8x8x768xbf16> to vector<64x768xbf16>
    %c2_122 = arith.constant 2 : index
    %c0_123 = arith.constant 0 : index
    %c0_124 = arith.constant 0 : index
    %96 = vector.load %arg4[%c2_122, %c0_123, %c0_124] : memref<3x768x128xbf16, #tpu.memory_space<vmem>>, vector<1x768x128xbf16>
    %97 = vector.shape_cast %96 : vector<1x768x128xbf16> to vector<768x128xbf16>
    %cst_125 = arith.constant dense<0.000000e+00> : vector<64x128xf32>
    %98 = tpu.matmul %95, %97, %cst_125 {dimension_numbers = #tpu.dot_dimension_numbers<[1], [0], [0], [1], [0, 0, 1, 1], [], []>} : vector<64x768xbf16>, vector<768x128xbf16>, vector<64x128xf32> -> vector<64x128xf32>
    %99 = arith.addf %86, %92 : vector<64x128xf32>
    %100 = arith.addf %99, %98 : vector<64x128xf32>
    %101 = vector.shape_cast %100 : vector<64x128xf32> to vector<8x8x128xf32>
    %102 = arith.truncf %101 : vector<8x8x128xf32> to vector<8x8x128xbf16>
    %c0_126 = arith.constant 0 : index
    %c0_127 = arith.constant 0 : index
    %c0_128 = arith.constant 0 : index
    %c0_129 = arith.constant 0 : index
    %c0_130 = arith.constant 0 : index
    %103 = vector.load %arg6[%c0_126, %c0_127, %c0_128, %c0_129, %c0_130] : memref<1x2x8x8x128xbf16, #tpu.memory_space<vmem>>, vector<1x1x8x8x128xbf16>
    %104 = vector.shape_cast %103 : vector<1x1x8x8x128xbf16> to vector<8x8x128xbf16>
    %105 = vector.shape_cast %102 : vector<8x8x128xbf16> to vector<1x1x8x8x128xbf16>
    tpu.vector_store %arg6[%c0_126, %c0_127, %c0_128, %c0_129, %c0_130], %105 {strides = array<i32>} : memref<1x2x8x8x128xbf16, #tpu.memory_space<vmem>>, vector<1x1x8x8x128xbf16>,
    %cst_131 = arith.constant dense<0.000000e+00> : vector<128xf32>
    %106 = vector.multi_reduction <add>, %100, %cst_131 [0] : vector<64x128xf32> to vector<128xf32>
    %107 = arith.addf %79, %106 : vector<128xf32>
    %108 = arith.mulf %100, %100 : vector<64x128xf32>
    %cst_132 = arith.constant dense<0.000000e+00> : vector<128xf32>
    %109 = vector.multi_reduction <add>, %108, %cst_132 [0] : vector<64x128xf32> to vector<128xf32>
    %110 = arith.addf %80, %109 : vector<128xf32>
    %c0_133 = arith.constant 0 : index
    %c1_134 = arith.constant 1 : index
    %c0_135 = arith.constant 0 : index
    %c0_136 = arith.constant 0 : index
    %111 = vector.load %arg9[%c0_133, %c1_134, %c0_135, %c0_136] : memref<2x10x8x768xbf16, #tpu.memory_space<vmem>>, vector<1x8x8x768xbf16>
    %112 = vector.shape_cast %111 : vector<1x8x8x768xbf16> to vector<8x8x768xbf16>
    %113 = vector.shape_cast %112 : vector<8x8x768xbf16> to vector<64x768xbf16>
    %c0_137 = arith.constant 0 : index
    %c0_138 = arith.constant 0 : index
    %c0_139 = arith.constant 0 : index
    %114 = vector.load %arg4[%c0_137, %c0_138, %c0_139] : memref<3x768x128xbf16, #tpu.memory_space<vmem>>, vector<1x768x128xbf16>
    %115 = vector.shape_cast %114 : vector<1x768x128xbf16> to vector<768x128xbf16>
    %cst_140 = arith.constant dense<0.000000e+00> : vector<64x128xf32>
    %116 = tpu.matmul %113, %115, %cst_140 {dimension_numbers = #tpu.dot_dimension_numbers<[1], [0], [0], [1], [0, 0, 1, 1], [], []>} : vector<64x768xbf16>, vector<768x128xbf16>, vector<64x128xf32> -> vector<64x128xf32>
    %c1_141 = arith.constant 1 : index
    %c1_142 = arith.constant 1 : index
    %c0_143 = arith.constant 0 : index
    %c0_144 = arith.constant 0 : index
    %117 = vector.load %arg9[%c1_141, %c1_142, %c0_143, %c0_144] : memref<2x10x8x768xbf16, #tpu.memory_space<vmem>>, vector<1x8x8x768xbf16>
    %118 = vector.shape_cast %117 : vector<1x8x8x768xbf16> to vector<8x8x768xbf16>
    %119 = vector.shape_cast %118 : vector<8x8x768xbf16> to vector<64x768xbf16>
    %c1_145 = arith.constant 1 : index
    %c0_146 = arith.constant 0 : index
    %c0_147 = arith.constant 0 : index
    %120 = vector.load %arg4[%c1_145, %c0_146, %c0_147] : memref<3x768x128xbf16, #tpu.memory_space<vmem>>, vector<1x768x128xbf16>
    %121 = vector.shape_cast %120 : vector<1x768x128xbf16> to vector<768x128xbf16>
    %cst_148 = arith.constant dense<0.000000e+00> : vector<64x128xf32>
    %122 = tpu.matmul %119, %121, %cst_148 {dimension_numbers = #tpu.dot_dimension_numbers<[1], [0], [0], [1], [0, 0, 1, 1], [], []>} : vector<64x768xbf16>, vector<768x128xbf16>, vector<64x128xf32> -> vector<64x128xf32>
    %c0_149 = arith.constant 0 : index
    %c2_150 = arith.constant 2 : index
    %c0_151 = arith.constant 0 : index
    %c0_152 = arith.constant 0 : index
    %123 = vector.load %arg9[%c0_149, %c2_150, %c0_151, %c0_152] : memref<2x10x8x768xbf16, #tpu.memory_space<vmem>>, vector<1x8x8x768xbf16>
    %124 = vector.shape_cast %123 : vector<1x8x8x768xbf16> to vector<8x8x768xbf16>
    %125 = vector.shape_cast %124 : vector<8x8x768xbf16> to vector<64x768xbf16>
    %c2_153 = arith.constant 2 : index
    %c0_154 = arith.constant 0 : index
    %c0_155 = arith.constant 0 : index
    %126 = vector.load %arg4[%c2_153, %c0_154, %c0_155] : memref<3x768x128xbf16, #tpu.memory_space<vmem>>, vector<1x768x128xbf16>
    %127 = vector.shape_cast %126 : vector<1x768x128xbf16> to vector<768x128xbf16>
    %cst_156 = arith.constant dense<0.000000e+00> : vector<64x128xf32>
    %128 = tpu.matmul %125, %127, %cst_156 {dimension_numbers = #tpu.dot_dimension_numbers<[1], [0], [0], [1], [0, 0, 1, 1], [], []>} : vector<64x768xbf16>, vector<768x128xbf16>, vector<64x128xf32> -> vector<64x128xf32>
    %129 = arith.addf %116, %122 : vector<64x128xf32>
    %130 = arith.addf %129, %128 : vector<64x128xf32>
    %131 = vector.shape_cast %130 : vector<64x128xf32> to vector<8x8x128xf32>
    %132 = arith.truncf %131 : vector<8x8x128xf32> to vector<8x8x128xbf16>
    %c0_157 = arith.constant 0 : index
    %c1_158 = arith.constant 1 : index
    %c0_159 = arith.constant 0 : index
    %c0_160 = arith.constant 0 : index
    %c0_161 = arith.constant 0 : index
    %133 = vector.load %arg6[%c0_157, %c1_158, %c0_159, %c0_160, %c0_161] : memref<1x2x8x8x128xbf16, #tpu.memory_space<vmem>>, vector<1x1x8x8x128xbf16>
    %134 = vector.shape_cast %133 : vector<1x1x8x8x128xbf16> to vector<8x8x128xbf16>
    %135 = vector.shape_cast %132 : vector<8x8x128xbf16> to vector<1x1x8x8x128xbf16>
    tpu.vector_store %arg6[%c0_157, %c1_158, %c0_159, %c0_160, %c0_161], %135 {strides = array<i32>} : memref<1x2x8x8x128xbf16, #tpu.memory_space<vmem>>, vector<1x1x8x8x128xbf16>,
    %cst_162 = arith.constant dense<0.000000e+00> : vector<128xf32>
    %136 = vector.multi_reduction <add>, %130, %cst_162 [0] : vector<64x128xf32> to vector<128xf32>
    %137 = arith.addf %107, %136 : vector<128xf32>
    %138 = arith.mulf %130, %130 : vector<64x128xf32>
    %cst_163 = arith.constant dense<0.000000e+00> : vector<128xf32>
    %139 = vector.multi_reduction <add>, %138, %cst_163 [0] : vector<64x128xf32> to vector<128xf32>
    %140 = arith.addf %110, %139 : vector<128xf32>
    %141 = vector.shape_cast %137 : vector<128xf32> to vector<1x1x128xf32>
    %c0_164 = arith.constant 0 : index
    %c0_165 = arith.constant 0 : index
    %c0_166 = arith.constant 0 : index
    %142 = vector.load %arg7[%c0_164, %c0_165, %c0_166] : memref<1x1x128xf32, #tpu.memory_space<vmem>>, vector<1x1x128xf32>
    tpu.vector_store %arg7[%c0_164, %c0_165, %c0_166], %141 {strides = array<i32>} : memref<1x1x128xf32, #tpu.memory_space<vmem>>, vector<1x1x128xf32>,
    %143 = vector.shape_cast %140 : vector<128xf32> to vector<1x1x128xf32>
    %c0_167 = arith.constant 0 : index
    %c0_168 = arith.constant 0 : index
    %c0_169 = arith.constant 0 : index
    %144 = vector.load %arg8[%c0_167, %c0_168, %c0_169] : memref<1x1x128xf32, #tpu.memory_space<vmem>>, vector<1x1x128xf32>
    tpu.vector_store %arg8[%c0_167, %c0_168, %c0_169], %143 {strides = array<i32>} : memref<1x1x128xf32, #tpu.memory_space<vmem>>, vector<1x1x128xf32>,
    return
  }
  func.func @transform_0(%arg0: i32) -> (i32, i32, i32, i32) {
    %c0_i32 = arith.constant 0 : i32
    %c0_i32_0 = arith.constant 0 : i32
    %c0_i32_1 = arith.constant 0 : i32
    %c0_i32_2 = arith.constant 0 : i32
    return %arg0, %c0_i32, %c0_i32_0, %c0_i32_1 : i32, i32, i32, i32
  }
  func.func @transform_1(%arg0: i32) -> (i32, i32, i32, i32, i32) {
    %c0_i32 = arith.constant 0 : i32
    %c0_i32_0 = arith.constant 0 : i32
    %c0_i32_1 = arith.constant 0 : i32
    %c0_i32_2 = arith.constant 0 : i32
    %c0_i32_3 = arith.constant 0 : i32
    return %arg0, %c0_i32, %c0_i32_0, %c0_i32_1, %c0_i32_2 : i32, i32, i32, i32, i32
  }
  func.func @transform_2(%arg0: i32) -> (i32, i32, i32, i32) {
    %c0_i32 = arith.constant 0 : i32
    %c0_i32_0 = arith.constant 0 : i32
    %c0_i32_1 = arith.constant 0 : i32
    %c0_i32_2 = arith.constant 0 : i32
    %c0_i32_3 = arith.constant 0 : i32
    return %c0_i32, %c0_i32_0, %c0_i32_1, %c0_i32_2 : i32, i32, i32, i32
  }
  func.func @transform_3(%arg0: i32) -> (i32, i32, i32) {
    %c0_i32 = arith.constant 0 : i32
    %c0_i32_0 = arith.constant 0 : i32
    %c0_i32_1 = arith.constant 0 : i32
    %c0_i32_2 = arith.constant 0 : i32
    return %c0_i32, %c0_i32_0, %c0_i32_1 : i32, i32, i32
  }
  func.func @transform_4(%arg0: i32) -> (i32, i32) {
    %c0_i32 = arith.constant 0 : i32
    %c0_i32_0 = arith.constant 0 : i32
    %c0_i32_1 = arith.constant 0 : i32
    return %c0_i32, %c0_i32_0 : i32, i32
  }
  func.func @transform_5(%arg0: i32) -> (i32, i32, i32, i32, i32) {
    %c0_i32 = arith.constant 0 : i32
    %c0_i32_0 = arith.constant 0 : i32
    %c0_i32_1 = arith.constant 0 : i32
    %c0_i32_2 = arith.constant 0 : i32
    %c0_i32_3 = arith.constant 0 : i32
    return %arg0, %c0_i32, %c0_i32_0, %c0_i32_1, %c0_i32_2 : i32, i32, i32, i32, i32
  }
  func.func @transform_6(%arg0: i32) -> (i32, i32, i32) {
    %c0_i32 = arith.constant 0 : i32
    %c0_i32_0 = arith.constant 0 : i32
    %c0_i32_1 = arith.constant 0 : i32
    return %arg0, %c0_i32, %c0_i32_0 : i32, i32, i32
  }
  func.func @transform_7(%arg0: i32) -> (i32, i32, i32) {
    %c0_i32 = arith.constant 0 : i32
    %c0_i32_0 = arith.constant 0 : i32
    %c0_i32_1 = arith.constant 0 : i32
    return %arg0, %c0_i32, %c0_i32_0 : i32, i32, i32
  }
}

module attributes {stable_mosaic.version = 11 : i64} {
  func.func @_bn_relu_kernel(%arg0: i32, %arg1: memref<1x2x8x8x128xbf16, #tpu.memory_space<vmem>>, %arg2: memref<1x128xf32, #tpu.memory_space<vmem>>, %arg3: memref<1x128xf32, #tpu.memory_space<vmem>>, %arg4: memref<1x8x2x8x128xf32, #tpu.memory_space<vmem>>) attributes {dimension_semantics = [#tpu.dimension_semantics<parallel>], iteration_bounds = array<i64: 2>, scalar_prefetch = 0 : i64, scratch_operands = 0 : i64, tpu.core_type = #tpu.core_type<tc>, window_params = [{transform_indices = @transform_0, window_bounds = array<i64: 1, 2, 8, 8, 128>}, {pipeline_mode = #tpu.pipeline_mode<synchronous>, transform_indices = @transform_1, window_bounds = array<i64: 1, 128>}, {pipeline_mode = #tpu.pipeline_mode<synchronous>, transform_indices = @transform_2, window_bounds = array<i64: 1, 128>}, {transform_indices = @transform_3, window_bounds = array<i64: 1, 8, 2, 8, 128>}]} {
    %c0 = arith.constant 0 : index
    %c0_0 = arith.constant 0 : index
    %0 = vector.load %arg2[%c0, %c0_0] : memref<1x128xf32, #tpu.memory_space<vmem>>, vector<1x128xf32>
    %1 = vector.shape_cast %0 : vector<1x128xf32> to vector<128xf32>
    %c0_1 = arith.constant 0 : index
    %c0_2 = arith.constant 0 : index
    %2 = vector.load %arg3[%c0_1, %c0_2] : memref<1x128xf32, #tpu.memory_space<vmem>>, vector<1x128xf32>
    %3 = vector.shape_cast %2 : vector<1x128xf32> to vector<128xf32>
    %c0_3 = arith.constant 0 : index
    %c0_4 = arith.constant 0 : index
    %c0_5 = arith.constant 0 : index
    %c0_6 = arith.constant 0 : index
    %c0_7 = arith.constant 0 : index
    %4 = vector.load %arg1[%c0_3, %c0_4, %c0_5, %c0_6, %c0_7] : memref<1x2x8x8x128xbf16, #tpu.memory_space<vmem>>, vector<1x1x8x8x128xbf16>
    %5 = vector.shape_cast %4 : vector<1x1x8x8x128xbf16> to vector<8x8x128xbf16>
    %6 = arith.extf %5 : vector<8x8x128xbf16> to vector<8x8x128xf32>
    %7 = vector.shape_cast %1 : vector<128xf32> to vector<1x1x128xf32>
    %8 = vector.broadcast %7 : vector<1x1x128xf32> to vector<8x8x128xf32>
    %9 = arith.mulf %6, %8 : vector<8x8x128xf32>
    %10 = vector.shape_cast %3 : vector<128xf32> to vector<1x1x128xf32>
    %11 = vector.broadcast %10 : vector<1x1x128xf32> to vector<8x8x128xf32>
    %12 = arith.addf %9, %11 : vector<8x8x128xf32>
    %cst = arith.constant 0.000000e+00 : f32
    %13 = vector.broadcast %cst : f32 to vector<8x8x128xf32>
    %14 = arith.maximumf %12, %13 : vector<8x8x128xf32>
    %c0_8 = arith.constant 0 : index
    %c0_9 = arith.constant 0 : index
    %c0_10 = arith.constant 0 : index
    %c0_11 = arith.constant 0 : index
    %c0_12 = arith.constant 0 : index
    %15 = vector.load %arg4[%c0_8, %c0_9, %c0_10, %c0_11, %c0_12] : memref<1x8x2x8x128xf32, #tpu.memory_space<vmem>>, vector<1x8x1x8x128xf32>
    %16 = vector.shape_cast %15 : vector<1x8x1x8x128xf32> to vector<8x8x128xf32>
    %17 = vector.shape_cast %14 : vector<8x8x128xf32> to vector<1x8x1x8x128xf32>
    tpu.vector_store %arg4[%c0_8, %c0_9, %c0_10, %c0_11, %c0_12], %17 {strides = array<i32>} : memref<1x8x2x8x128xf32, #tpu.memory_space<vmem>>, vector<1x8x1x8x128xf32>,
    %c0_13 = arith.constant 0 : index
    %c1 = arith.constant 1 : index
    %c0_14 = arith.constant 0 : index
    %c0_15 = arith.constant 0 : index
    %c0_16 = arith.constant 0 : index
    %18 = vector.load %arg1[%c0_13, %c1, %c0_14, %c0_15, %c0_16] : memref<1x2x8x8x128xbf16, #tpu.memory_space<vmem>>, vector<1x1x8x8x128xbf16>
    %19 = vector.shape_cast %18 : vector<1x1x8x8x128xbf16> to vector<8x8x128xbf16>
    %20 = arith.extf %19 : vector<8x8x128xbf16> to vector<8x8x128xf32>
    %21 = vector.shape_cast %1 : vector<128xf32> to vector<1x1x128xf32>
    %22 = vector.broadcast %21 : vector<1x1x128xf32> to vector<8x8x128xf32>
    %23 = arith.mulf %20, %22 : vector<8x8x128xf32>
    %24 = vector.shape_cast %3 : vector<128xf32> to vector<1x1x128xf32>
    %25 = vector.broadcast %24 : vector<1x1x128xf32> to vector<8x8x128xf32>
    %26 = arith.addf %23, %25 : vector<8x8x128xf32>
    %cst_17 = arith.constant 0.000000e+00 : f32
    %27 = vector.broadcast %cst_17 : f32 to vector<8x8x128xf32>
    %28 = arith.maximumf %26, %27 : vector<8x8x128xf32>
    %c0_18 = arith.constant 0 : index
    %c0_19 = arith.constant 0 : index
    %c1_20 = arith.constant 1 : index
    %c0_21 = arith.constant 0 : index
    %c0_22 = arith.constant 0 : index
    %29 = vector.load %arg4[%c0_18, %c0_19, %c1_20, %c0_21, %c0_22] : memref<1x8x2x8x128xf32, #tpu.memory_space<vmem>>, vector<1x8x1x8x128xf32>
    %30 = vector.shape_cast %29 : vector<1x8x1x8x128xf32> to vector<8x8x128xf32>
    %31 = vector.shape_cast %28 : vector<8x8x128xf32> to vector<1x8x1x8x128xf32>
    tpu.vector_store %arg4[%c0_18, %c0_19, %c1_20, %c0_21, %c0_22], %31 {strides = array<i32>} : memref<1x8x2x8x128xf32, #tpu.memory_space<vmem>>, vector<1x8x1x8x128xf32>,
    return
  }
  func.func @transform_0(%arg0: i32) -> (i32, i32, i32, i32, i32) {
    %c0_i32 = arith.constant 0 : i32
    %c0_i32_0 = arith.constant 0 : i32
    %c0_i32_1 = arith.constant 0 : i32
    %c0_i32_2 = arith.constant 0 : i32
    %c0_i32_3 = arith.constant 0 : i32
    return %arg0, %c0_i32, %c0_i32_0, %c0_i32_1, %c0_i32_2 : i32, i32, i32, i32, i32
  }
  func.func @transform_1(%arg0: i32) -> (i32, i32) {
    %c0_i32 = arith.constant 0 : i32
    %c0_i32_0 = arith.constant 0 : i32
    %c0_i32_1 = arith.constant 0 : i32
    return %c0_i32, %c0_i32_0 : i32, i32
  }
  func.func @transform_2(%arg0: i32) -> (i32, i32) {
    %c0_i32 = arith.constant 0 : i32
    %c0_i32_0 = arith.constant 0 : i32
    %c0_i32_1 = arith.constant 0 : i32
    return %c0_i32, %c0_i32_0 : i32, i32
  }
  func.func @transform_3(%arg0: i32) -> (i32, i32, i32, i32, i32) {
    %c0_i32 = arith.constant 0 : i32
    %c0_i32_0 = arith.constant 0 : i32
    %c0_i32_1 = arith.constant 0 : i32
    %c0_i32_2 = arith.constant 0 : i32
    %c0_i32_3 = arith.constant 0 : i32
    return %arg0, %c0_i32, %c0_i32_0, %c0_i32_1, %c0_i32_2 : i32, i32, i32, i32, i32
  }
}

</mosaic_0001>

<bundles_post_ra>
// kernel: tile.18
= control target key start
LH: loop header
LB: loop body
LE: loop exit
PB: predicated region body
PF: predicated region fallthrough
CT: control target
= control target key end

     0   :  { %s22_s0 = inlined_call_operand.vmem [shape: f32[64], index: 0, kind: input, shape index: {}]   ;;  %s23_s1 = inlined_call_operand.vmem [shape: f32[2,64], index: 1, kind: output, shape index: {}]  }
   0x1   :  { %v4_v0 = vld [vmem:[%s22_s0] ss:$0 sm:$0xff] }
   0x2   :  { %5 = vst [vmem:[%s23_s1] sm:$0x3] %v4_v0 }

// kernel: tile.19
= control target key start
LH: loop header
LB: loop body
LE: loop exit
PB: predicated region body
PF: predicated region fallthrough
CT: control target
= control target key end

     0   :  { %vm7_vm0 = vcmask 523264   ;;  %vm13_vm1 = vcmask 1048064   ;;  %s39_s0 = inlined_call_operand.vmem [shape: f32[2,64], index: 0, kind: input, shape index: {}]   ;;  %s40_s1 = inlined_call_operand.vmem [shape: f32[1,128], index: 1, kind: output, shape index: {}]  }
   0x1   :  { %v4_v0 = vld [vmem:[%s39_s0] sm:$0x3]  ;;  %s22_s0 = smov 64  }
   0x2   :  { %5 = vst [vmem:[#allocation1] sm:$0x3] %v4_v0 }
   0x9   :  { %v10_v1 = vld [vmem:[#allocation1 + $0x1] sm:$0x1]   ;;  %v6_v2 = vld [vmem:[#allocation1] sm:$0x1]  }
   0xa   :  { %11 = vrot.lane.b32.xlu0 %v10_v1, %s22_s0  ;;  %8 = vst.msk [vmem:[#allocation0] sm:$0x1] %vm7_vm0, %v6_v2  }
  0x7c   :  { %v12_v3 = vpop.permute.xlu0 %11  }
  0x7d   :  { %14 = vst.msk [vmem:[#allocation0] sm:$0x1] %vm13_vm1, %v12_v3  }
  0x84   :  { %v17_v4 = vld [vmem:[#allocation0] sm:$0x1] }
  0x85   :  { %20 = vst [vmem:[%s40_s1] sm:$0x1] %v17_v4 }

// kernel: upsample_n_concat_3.3
= control target key start
LH: loop header
LB: loop body
LE: loop exit
PB: predicated region body
PF: predicated region fallthrough
CT: control target
= control target key end

     0   :  { %s438_s12 = smov 0   ;;  %s529_s0 = inlined_call_operand.vmem [shape: bf16[2,2,8,8,128], index: 0, kind: input, shape index: {}]   ;;  %s530_s1 = inlined_call_operand.vmem [shape: f32[1,128], index: 1, kind: input, shape index: {}]   ;;  %s531_s2 = inlined_call_operand.vmem [shape: f32[1,128], index: 2, kind: input, shape index: {}]   ;;  %s532_s3 = inlined_call_operand.vmem [shape: f32[2,8,2,8,128], index: 3, kind: output, shape index: {}]  }
   0x1 LB: > { %s332_s13 = sadd.s32 4294967295, %s416_s12   ;;  %p336_p0 = scmp.ge.s32.totalorder %s416_s12, 1  ;;  %s416_s12 = sphi %s438_s12, %s13_s12  }
   0x2   : > { %p137_p1 = scmp.lt.s32.totalorder %s416_s12, 3 }
   0x4   : > { %p138_p2 = pnand %p336_p0, %p137_p1 }
   0x5   : > { %p161_p3 = scmp.lt.s32.totalorder (!%p138_p2), %s332_s13, 1 }
   0x6   : > { %141 = sbr.rel (%p138_p2) target bundleno = 39 (0x27), region = 32 }
   0xb   : > { %s534_s13 = smov (!%p161_p3, %s332_s13), 1  ;;  %v457_v0 = vld [vmem:[%s530_s1] ss:$0 sm:$0xff] }
   0xc   : > { %s359_s14 = sshll.u32 %s534_s13, 6  ;;  %v465_v5 = vld [vmem:[%s531_s2] ss:$0 sm:$0xff]  ;;  %s360_s22 = sshll.u32 %s534_s13, 7 }
   0xd   : > { %s452_s17 = scalar_lea.vmem %s529_s0, %s359_s14  ;;  %s484_s25 = scalar_lea.vmem %s532_s3, %s360_s22 }
   0xe   : > { %v362_v1 = vld [vmem:[%s452_s17] sm:$0xff]   ;;  %v393_v2 = vld [vmem:[%s452_s17 + $0x8] sm:$0xff]   ;;  %v394_v3 = vld [vmem:[%s452_s17 + $0x10] sm:$0xff]  }
   0xf   : > { %v363_v4 = vunpack.c.l.bf16 %v362_v1  ;;  %v364_v6 = vunpack.c.h.bf16 %v362_v1  ;;  %v367_v7 = vunpack.c.l.bf16 %v393_v2  ;;  %v368_v8 = vunpack.c.h.bf16 %v393_v2  ;;  %v395_v9 = vld [vmem:[%s452_s17 + $0x18] sm:$0xff]   ;;  %v396_v30 = vld [vmem:[%s452_s17 + $0x20] sm:$0xff]   ;;  %v397_v31 = vld [vmem:[%s452_s17 + $0x28] sm:$0xff]  }
  0x10   : > { %v371_v10 = vunpack.c.l.bf16 %v394_v3  ;;  %v372_v11 = vunpack.c.h.bf16 %v394_v3  ;;  %v375_v12 = vunpack.c.l.bf16 %v395_v9  ;;  %v376_v13 = vunpack.c.h.bf16 %v395_v9  ;;  %v398_v36 = vld [vmem:[%s452_s17 + $0x30] sm:$0xff]   ;;  %v399_v37 = vld [vmem:[%s452_s17 + $0x38] sm:$0xff]  }
  0x11   : > { %v192_v14 = vmul.f32 %v457_v0, %v363_v4  ;;  %v193_v15 = vmul.f32 %v457_v0, %v364_v6  ;;  %v194_v16 = vmul.f32 %v457_v0, %v367_v7  ;;  %v195_v17 = vmul.f32 %v457_v0, %v368_v8 }
  0x12   : > { %v196_v18 = vmul.f32 %v457_v0, %v371_v10  ;;  %v197_v19 = vmul.f32 %v457_v0, %v372_v11  ;;  %v198_v20 = vmul.f32 %v457_v0, %v375_v12  ;;  %v199_v21 = vmul.f32 %v457_v0, %v376_v13 }
  0x13   : > { %v203_v22 = vadd.f32 %v465_v5, %v192_v14  ;;  %v204_v23 = vadd.f32 %v465_v5, %v193_v15  ;;  %v205_v24 = vadd.f32 %v465_v5, %v194_v16  ;;  %v206_v25 = vadd.f32 %v465_v5, %v195_v17 }
  0x14   : > { %v207_v26 = vadd.f32 %v465_v5, %v196_v18  ;;  %v208_v27 = vadd.f32 %v465_v5, %v197_v19  ;;  %v209_v28 = vadd.f32 %v465_v5, %v198_v20  ;;  %v210_v29 = vadd.f32 %v465_v5, %v199_v21 }
  0x15   : > { %v211_v32 = vmax.f32 %v203_v22, 0.0  ;;  %v212_v33 = vmax.f32 %v204_v23, 0.0  ;;  %v213_v34 = vmax.f32 %v205_v24, 0.0  ;;  %v214_v35 = vmax.f32 %v206_v25, 0.0 }
  0x16   : > { %v215_v38 = vmax.f32 %v207_v26, 0.0  ;;  %v216_v39 = vmax.f32 %v208_v27, 0.0  ;;  %v217_v40 = vmax.f32 %v209_v28, 0.0  ;;  %v218_v41 = vmax.f32 %v210_v29, 0.0 }
  0x17   : > { %219 = vst [vmem:[%s484_s25] sm:$0xff] %v211_v32  ;;  %v379_v42 = vunpack.c.l.bf16 %v396_v30  ;;  %v380_v43 = vunpack.c.h.bf16 %v396_v30  ;;  %v383_v44 = vunpack.c.l.bf16 %v397_v31  ;;  %v384_v45 = vunpack.c.h.bf16 %v397_v31 }
  0x18   : > { %220 = vst [vmem:[%s484_s25 + $0x10] sm:$0xff] %v212_v33  ;;  %v387_v46 = vunpack.c.l.bf16 %v398_v36  ;;  %v388_v47 = vunpack.c.h.bf16 %v398_v36  ;;  %v391_v48 = vunpack.c.l.bf16 %v399_v37  ;;  %v392_v49 = vunpack.c.h.bf16 %v399_v37 }
  0x19   : > { %221 = vst [vmem:[%s484_s25 + $0x20] sm:$0xff] %v213_v34  ;;  %v244_v50 = vmul.f32 %v457_v0, %v379_v42  ;;  %v245_v51 = vmul.f32 %v457_v0, %v380_v43  ;;  %v246_v52 = vmul.f32 %v457_v0, %v383_v44  ;;  %v247_v53 = vmul.f32 %v457_v0, %v384_v45 }
  0x1a   : > { %222 = vst [vmem:[%s484_s25 + $0x30] sm:$0xff] %v214_v35  ;;  %v248_v54 = vmul.f32 %v457_v0, %v387_v46  ;;  %v249_v55 = vmul.f32 %v457_v0, %v388_v47  ;;  %v250_v56 = vmul.f32 %v457_v0, %v391_v48  ;;  %v251_v57 = vmul.f32 %v457_v0, %v392_v49 }
  0x1b   : > { %223 = vst [vmem:[%s484_s25 + $0x40] sm:$0xff] %v215_v38  ;;  %v252_v58 = vadd.f32 %v465_v5, %v244_v50  ;;  %v253_v59 = vadd.f32 %v465_v5, %v245_v51  ;;  %v254_v60 = vadd.f32 %v465_v5, %v246_v52  ;;  %v255_v61 = vadd.f32 %v465_v5, %v247_v53 }
  0x1c   : > { %224 = vst [vmem:[%s484_s25 + $0x50] sm:$0xff] %v216_v39  ;;  %v256_v62 = vadd.f32 %v465_v5, %v248_v54  ;;  %v257_v63 = vadd.f32 %v465_v5, %v249_v55  ;;  %v258_v3 = vadd.f32 %v465_v5, %v250_v56  ;;  %v259_v6 = vadd.f32 %v465_v5, %v251_v57 }
  0x1d   : > { %225 = vst [vmem:[%s484_s25 + $0x60] sm:$0xff] %v217_v40  ;;  %v260_v0 = vmax.f32 %v252_v58, 0.0  ;;  %v261_v1 = vmax.f32 %v253_v59, 0.0  ;;  %v262_v2 = vmax.f32 %v254_v60, 0.0  ;;  %v263_v4 = vmax.f32 %v255_v61, 0.0 }
  0x1e   : > { %226 = vst [vmem:[%s484_s25 + $0x70] sm:$0xff] %v218_v41  ;;  %v264_v7 = vmax.f32 %v256_v62, 0.0  ;;  %v265_v8 = vmax.f32 %v257_v63, 0.0  ;;  %v266_v9 = vmax.f32 %v258_v3, 0.0  ;;  %v267_v10 = vmax.f32 %v259_v6, 0.0 }
  0x1f   : > { %349 = vst [vmem:[%s484_s25 + $0x8] sm:$0xff] %v260_v0 }
  0x20   : > { %350 = vst [vmem:[%s484_s25 + $0x18] sm:$0xff] %v261_v1 }
  0x21   : > { %351 = vst [vmem:[%s484_s25 + $0x28] sm:$0xff] %v262_v2 }
  0x22   : > { %352 = vst [vmem:[%s484_s25 + $0x38] sm:$0xff] %v263_v4 }
  0x23   : > { %353 = vst [vmem:[%s484_s25 + $0x48] sm:$0xff] %v264_v7 }
  0x24   : > { %354 = vst [vmem:[%s484_s25 + $0x58] sm:$0xff] %v265_v8 }
  0x25   : > { %355 = vst [vmem:[%s484_s25 + $0x68] sm:$0xff] %v266_v9 }
  0x26   : > { %356 = vst [vmem:[%s484_s25 + $0x78] sm:$0xff] %v267_v10 }
  0x27 PF: > { %s13_s12 = sadd.s32 1, %s416_s12  }
  0x28   : > { %p10_p4 = scmp.ge.s32.totalorder %s13_s12, 4  }
  0x2a   :  { %12 = sbr.rel (!%p10_p4) target bundleno = 1 (0x1), region = 64 }

// kernel: upsample_n_concat_3.2
= control target key start
LH: loop header
LB: loop body
LE: loop exit
PB: predicated region body
PF: predicated region fallthrough
CT: control target
= control target key end

     0   :  { %s9767_s24 = smov 0   ;;  %s11761_s0 = inlined_call_operand.vmem [shape: bf16[2,10,8,192], index: 0, kind: input, shape index: {}]   ;;  %s11762_s1 = inlined_call_operand.vmem [shape: bf16[2,2,8,8,128], index: 1, kind: input, shape index: {}]   ;;  %s11763_s2 = inlined_call_operand.vmem [shape: bf16[2,2,192,128], index: 2, kind: input, shape index: {}]   ;;  %s11764_s3 = inlined_call_operand.vmem [shape: bf16[3,768,128], index: 3, kind: input, shape index: {}]   ;;  %s11765_s4 = inlined_call_operand.vmem [shape: f32[1,128], index: 4, kind: input, shape index: {}]   ;;  %s11766_s5 = inlined_call_operand.vmem [shape: bf16[2,2,8,8,128], index: 5, kind: output, shape index: {0}]   ;;  %s11767_s6 = inlined_call_operand.vmem [shape: f32[2,1,128], index: 6, kind: output, shape index: {1}]   ;;  %s11768_s7 = inlined_call_operand.vmem [shape: f32[2,1,128], index: 7, kind: output, shape index: {2}]  }
   0x1 LB: > { %s6581_s25 = sadd.s32 4294967295, %s9724_s24   ;;  %p6585_p0 = scmp.ge.s32.totalorder %s9724_s24, 1  ;;  %s9724_s24 = sphi %s9767_s24, %s18_s24  }
   0x2   : > { %p252_p1 = scmp.lt.s32.totalorder %s9724_s24, 3 }
   0x4   : > { %p253_p2 = pnand %p6585_p0, %p252_p1 }
   0x5   : > { %p295_p3 = scmp.lt.s32.totalorder (!%p253_p2), %s6581_s25, 1 }
   0x6   : > { %256 = sbr.rel (%p253_p2) target bundleno = 944 (0x3b0), region = 40 }
   0xb   : > { %v9182_v0 = vld [vmem:[%s11763_s2 + $0x98] sm:$0xff]  ;;  %v9181_v2 = vld [vmem:[%s11763_s2 + $0x90] sm:$0xff]  ;;  %s11778_s25 = smov (!%p295_p3, %s6581_s25), 1  ;;  %v9180_v8 = vld [vmem:[%s11763_s2 + $0x88] sm:$0xff]  ;;  %vm1092_vm0 = vcmask 523264   ;;  %vm330_vm1 = vcmask 1040384  }
   0xc   : > { %v9162_v1 = vld [vmem:[%s11763_s2 + $0x38] sm:$0xff]  ;;  %1105 = vmatpush.bf16.msra.mxu0 %v9182_v0  ;;  %v9161_v3 = vld [vmem:[%s11763_s2 + $0x30] sm:$0xff]  ;;  %s9706_s19 = smul.u32 80, %s11778_s25  ;;  %v9160_v9 = vld [vmem:[%s11763_s2 + $0x28] sm:$0xff]  ;;  %s9145_s30 = sshll.u32 %s11778_s25, 6  ;;  %vm333_vm4 = vcmask 1044484  }
   0xd   : > { %1283 = vmatpush.bf16.msra.mxu2 %v9162_v1  ;;  %v9166_v4 = vld [vmem:[%s11763_s2 + $0x58] sm:$0xff]  ;;  %v9165_v6 = vld [vmem:[%s11763_s2 + $0x50] sm:$0xff]  ;;  %v9164_v10 = vld [vmem:[%s11763_s2 + $0x48] sm:$0xff]  ;;  %s10054_s17 = scalar_lea.vmem %s11762_s1, %s9145_s30  ;;  %vm331_vm2 = vsmask.f32 256  ;;  %vm397_vm7 = vcmask 1043459   ;;  %s11419_s12 = scalar_lea.vmem %s11766_s5, %s9145_s30 }
   0xe   : > { %v9186_v5 = vld [vmem:[%s11763_s2 + $0xb8] sm:$0xff]  ;;  %1316 = vmatpush.bf16.msra.mxu3 %v9166_v4  ;;  %v9185_v7 = vld [vmem:[%s11763_s2 + $0xb0] sm:$0xff]  ;;  %v9184_v11 = vld [vmem:[%s11763_s2 + $0xa8] sm:$0xff]  ;;  %s9817_s9 = scalar_lea.vmem %s11761_s0, %s9706_s19  ;;  %vm334_vm5 = vsmask.f32 4352  ;;  %vm400_vm9 = vcmask 1047559   ;;  %s312_s19 = scalar_lea.vmem %s11767_s6, %s11778_s25 }
   0xf   : > { %1138 = vmatpush.bf16.msra.mxu1 %v9186_v5  ;;  %v9179_v12 = vld [vmem:[%s11763_s2 + $0x80] sm:$0xff]  ;;  %v6711_v17 = vld [vmem:[%s9817_s9 + $0x8] sm:$0xf0]  ;;  %v6627_v19 = vld [vmem:[%s9817_s9 + $0x10] sm:$0xf0]  ;;  %vm641_vm15 = vcmask 1043456   ;;  %s315_s22 = scalar_lea.vmem %s11768_s7, %s11778_s25 }
  0x10   : > { %1106 = vmatpush.bf16.msra.mxu0 %v9181_v2  ;;  %v9159_v13 = vld [vmem:[%s11763_s2 + $0x20] sm:$0xff]  ;;  %v9167_v18 = vld [vmem:[%s9817_s9 + $0xc] sm:$0xf]  ;;  %v9226_v20 = vld [vmem:[%s11763_s2 + $0x178] sm:$0xff]  ;;  %vm398_vm8 = vsmask.f32 7950 }
  0x11   : > { %1284 = vmatpush.bf16.msra.mxu2 %v9161_v3  ;;  %v9163_v14 = vld [vmem:[%s11763_s2 + $0x40] sm:$0xff]  ;;  %v9222_v21 = vld [vmem:[%s11763_s2 + $0x158] sm:$0xff]  ;;  %v6630_v25 = vor.u32 %v9167_v18, %v6627_v19  ;;  %v9221_v26 = vld [vmem:[%s11763_s2 + $0x150] sm:$0xff]  ;;  %vm401_vm10 = vsmask.f32 7966 }
  0x12   : > { %1317 = vmatpush.bf16.msra.mxu3 %v9165_v6  ;;  %v9183_v15 = vld [vmem:[%s11763_s2 + $0xa0] sm:$0xff]  ;;  %v9178_v22 = vld [vmem:[%s11763_s2 + $0x78] sm:$0xff]  ;;  %v9225_v27 = vld [vmem:[%s11763_s2 + $0x170] sm:$0xff] }
  0x13   : > { %1139 = vmatpush.bf16.msra.mxu1 %v9185_v7  ;;  %v9147_v16 = vld [vmem:[%s9817_s9 + $0x4] sm:$0xf]  ;;  %v9158_v23 = vld [vmem:[%s11763_s2 + $0x18] sm:$0xff]  ;;  %v9177_v28 = vld [vmem:[%s11763_s2 + $0x70] sm:$0xff] }
  0x14   : > { %1107 = vmatpush.bf16.msra.mxu0 %v9180_v8  ;;  %v6714_v24 = vor.u32 %v9147_v16, %v6711_v17  ;;  %v9157_v29 = vld [vmem:[%s11763_s2 + $0x10] sm:$0xff]  ;;  %v9220_v30 = vld [vmem:[%s11763_s2 + $0x148] sm:$0xff]  ;;  %v9175_v33 = vld [vmem:[%s11763_s2 + $0x60] sm:$0xff] }
  0x15   : > { %1285 = vmatpush.bf16.msra.mxu2 %v9160_v9  ;;  %v9176_v31 = vld [vmem:[%s11763_s2 + $0x68] sm:$0xff]  ;;  %v9155_v34 = vld [vmem:[%s11763_s2] sm:$0xff]  ;;  %v9168_v36 = vld [vmem:[%s9817_s9 + $0xc] sm:$0xf0] }
  0x16   : > { %1318 = vmatpush.bf16.msra.mxu3 %v9164_v10  ;;  %v9156_v32 = vld [vmem:[%s11763_s2 + $0x8] sm:$0xff]  ;;  %v6709_v37 = vld [vmem:[%s9817_s9] sm:$0xf]  ;;  %v9206_v39 = vld [vmem:[%s11763_s2 + $0x118] sm:$0xff] }
  0x17   : > { %1140 = vmatpush.bf16.msra.mxu1 %v9184_v11  ;;  %v6625_v35 = vld [vmem:[%s9817_s9 + $0x8] sm:$0xf]  ;;  %v9149_v40 = vld [vmem:[%s9817_s9 + $0x14] sm:$0xf]  ;;  %v9202_v41 = vld [vmem:[%s11763_s2 + $0xf8] sm:$0xff] }
  0x18   : > { %1108 = vmatpush.bf16.msra.mxu0 %v9179_v12  ;;  %v9148_v38 = vld [vmem:[%s9817_s9 + $0x4] sm:$0xf0]  ;;  %v6719_v42 = vld [vmem:[%s9817_s9 + $0x18] sm:$0xf0]  ;;  %v6635_v44 = vld [vmem:[%s9817_s9 + $0x20] sm:$0xf0]  ;;  %v6626_v45 = vor.u32 %v9168_v36, %v6625_v35 }
  0x19   : > { %1286 = vmatpush.bf16.msra.mxu2 %v9159_v13  ;;  %v9169_v43 = vld [vmem:[%s9817_s9 + $0x1c] sm:$0xf]  ;;  %v6710_v46 = vor.u32 %v9148_v38, %v6709_v37  ;;  %v6722_v47 = vor.u32 %v9149_v40, %v6719_v42  ;;  %v9201_v49 = vld [vmem:[%s11763_s2 + $0xf0] sm:$0xff]  ;;  %v9219_v51 = vld [vmem:[%s11763_s2 + $0x140] sm:$0xff] }
  0x1a   : > { %1319 = vmatpush.bf16.msra.mxu3 %v9163_v14  ;;  %v6638_v48 = vor.u32 %v9169_v43, %v6635_v44  ;;  %v9205_v50 = vld [vmem:[%s11763_s2 + $0x110] sm:$0xff]  ;;  %v9224_v52 = vld [vmem:[%s11763_s2 + $0x168] sm:$0xff]  ;;  %v9218_v55 = vld [vmem:[%s11763_s2 + $0x138] sm:$0xff] }
  0x1b   : > { %1141 = vmatpush.bf16.msra.mxu1 %v9183_v15  ;;  %v9200_v53 = vld [vmem:[%s11763_s2 + $0xe8] sm:$0xff]  ;;  %v9199_v56 = vld [vmem:[%s11763_s2 + $0xe0] sm:$0xff]  ;;  %v6633_v57 = vld [vmem:[%s9817_s9 + $0x18] sm:$0xf] }
  0x1c   : > { %1109 = vmatpush.bf16.msra.mxu0 %v9178_v22  ;;  %v9204_v54 = vld [vmem:[%s11763_s2 + $0x108] sm:$0xff]  ;;  %v9170_v58 = vld [vmem:[%s9817_s9 + $0x1c] sm:$0xf0]  ;;  %v6717_v59 = vld [vmem:[%s9817_s9 + $0x10] sm:$0xf] }
  0x1d   : > { %1287 = vmatpush.bf16.msra.mxu2 %v9158_v23  ;;  %6787 = vmatmul.msk.bf16.vlgmr.msra.gmra.mxu3 %vm1092_vm0, %v6714_v24  ;;  %v9150_v60 = vld [vmem:[%s9817_s9 + $0x14] sm:$0xf0]  ;;  %v9151_v61 = vld [vmem:[%s9817_s9 + $0x24] sm:$0xf]  ;;  %v6727_v62 = vld [vmem:[%s9817_s9 + $0x28] sm:$0xf0]  ;;  %v6634_v2 = vor.u32 %v9170_v58, %v6633_v57 }
  0x1e   : > { %1741 = vmatpush.bf16.msrb.mxu3 %v9226_v20  ;;  %6703 = vmatmul.msk.bf16.vlgmr.msra.gmra.mxu1 %vm1092_vm0, %v6630_v25  ;;  %v9171_v63 = vld [vmem:[%s9817_s9 + $0x2c] sm:$0xf]  ;;  %v6643_v0 = vld [vmem:[%s9817_s9 + $0x30] sm:$0xf0]  ;;  %v9198_v1 = vld [vmem:[%s11763_s2 + $0xd8] sm:$0xff]  ;;  %v6718_v3 = vor.u32 %v9150_v60, %v6717_v59  ;;  %v6730_v4 = vor.u32 %v9151_v61, %v6727_v62 }
  0x1f   : > { %1708 = vmatpush.bf16.msrb.mxu1 %v9222_v21  ;;  %v6646_v5 = vor.u32 %v9171_v63, %v6643_v0  ;;  %v9217_v6 = vld [vmem:[%s11763_s2 + $0x130] sm:$0xff]  ;;  %v9223_v7 = vld [vmem:[%s11763_s2 + $0x160] sm:$0xff]  ;;  %v9216_v10 = vld [vmem:[%s11763_s2 + $0x128] sm:$0xff] }
  0x20   : > { %1110 = vmatpush.bf16.msra.mxu0 %v9177_v28  ;;  %v9197_v8 = vld [vmem:[%s11763_s2 + $0xd0] sm:$0xff]  ;;  %v9203_v9 = vld [vmem:[%s11763_s2 + $0x100] sm:$0xff]  ;;  %v9196_v11 = vld [vmem:[%s11763_s2 + $0xc8] sm:$0xff] }
  0x21   : > { %1288 = vmatpush.bf16.msra.mxu2 %v9157_v29  ;;  %v9215_v12 = vld [vmem:[%s11763_s2 + $0x120] sm:$0xff]  ;;  %v6641_v13 = vld [vmem:[%s9817_s9 + $0x28] sm:$0xf]  ;;  %v9172_v15 = vld [vmem:[%s9817_s9 + $0x2c] sm:$0xf0] }
  0x22   : > { %1742 = vmatpush.bf16.msrb.mxu3 %v9225_v27  ;;  %v9195_v14 = vld [vmem:[%s11763_s2 + $0xc0] sm:$0xff]  ;;  %v9152_v17 = vld [vmem:[%s9817_s9 + $0x24] sm:$0xf0]  ;;  %v9153_v18 = vld [vmem:[%s9817_s9 + $0x34] sm:$0xf]  ;;  %v6642_v22 = vor.u32 %v9172_v15, %v6641_v13 }
  0x23   : > { %1709 = vmatpush.bf16.msrb.mxu1 %v9221_v26  ;;  %v6725_v16 = vld [vmem:[%s9817_s9 + $0x20] sm:$0xf]  ;;  %v6735_v19 = vld [vmem:[%s9817_s9 + $0x38] sm:$0xf0]  ;;  %v6651_v21 = vld [vmem:[%s9817_s9 + $0x40] sm:$0xf0] }
  0x24   : > { %1111 = vmatpush.bf16.msra.mxu0 %v9176_v31  ;;  %v9173_v20 = vld [vmem:[%s9817_s9 + $0x3c] sm:$0xf]  ;;  %v6726_v23 = vor.u32 %v9152_v17, %v6725_v16  ;;  %v6738_v24 = vor.u32 %v9153_v18, %v6735_v19  ;;  %v6649_v26 = vld [vmem:[%s9817_s9 + $0x38] sm:$0xf]  ;;  %v9174_v27 = vld [vmem:[%s9817_s9 + $0x3c] sm:$0xf0] }
  0x25   : > { %1289 = vmatpush.bf16.msra.mxu2 %v9156_v32  ;;  %v6654_v25 = vor.u32 %v9173_v20, %v6651_v21  ;;  %v6733_v28 = vld [vmem:[%s9817_s9 + $0x30] sm:$0xf]  ;;  %v9154_v29 = vld [vmem:[%s9817_s9 + $0x34] sm:$0xf0]  ;;  %v6859_v31 = vld [vmem:[%s9817_s9 + $0x18] sm:$0xf0] }
  0x26   : > { %1743 = vmatpush.bf16.msrb.mxu3 %v9224_v52  ;;  %v6857_v32 = vld [vmem:[%s9817_s9 + $0x10] sm:$0xf]  ;;  %v6734_v35 = vor.u32 %v9154_v29, %v6733_v28  ;;  %v9187_v38 = vld [vmem:[%s9817_s9 + $0xc] sm:$0xf]  ;;  %v6941_v40 = vld [vmem:[%s9817_s9 + $0x8] sm:$0xf] }
  0x27   : > { %1710 = vmatpush.bf16.msrb.mxu1 %v9220_v30  ;;  %v9207_v30 = vld [vmem:[%s9817_s9 + $0x14] sm:$0xf]  ;;  %v9209_v42 = vld [vmem:[%s9817_s9 + $0x24] sm:$0xf]  ;;  %v6867_v43 = vld [vmem:[%s9817_s9 + $0x28] sm:$0xf0] }
  0x28   : > { %1112 = vmatpush.bf16.msra.mxu0 %v9175_v33  ;;  %v9208_v33 = vld [vmem:[%s9817_s9 + $0x14] sm:$0xf0]  ;;  %v6862_v36 = vor.u32 %v9207_v30, %v6859_v31  ;;  %v6865_v44 = vld [vmem:[%s9817_s9 + $0x20] sm:$0xf]  ;;  %v9189_v57 = vld [vmem:[%s9817_s9 + $0x1c] sm:$0xf] }
  0x29   : > { %1290 = vmatpush.bf16.msra.mxu2 %v9155_v34  ;;  %v6650_v34 = vor.u32 %v9174_v27, %v6649_v26  ;;  %v6858_v37 = vor.u32 %v9208_v33, %v6857_v32  ;;  %v9354_v52 = vld [vmem:[%s11764_s3 + $0x278] sm:$0xff]  ;;  %v6951_v58 = vld [vmem:[%s9817_s9 + $0x20] sm:$0xf0]  ;;  %v9190_v60 = vld [vmem:[%s9817_s9 + $0x1c] sm:$0xf0] }
  0x2a   : > { %1744 = vmatpush.bf16.msrb.mxu3 %v9223_v7  ;;  %v6949_v59 = vld [vmem:[%s9817_s9 + $0x18] sm:$0xf]  ;;  %v9211_v61 = vld [vmem:[%s9817_s9 + $0x34] sm:$0xf]  ;;  %v6875_v62 = vld [vmem:[%s9817_s9 + $0x38] sm:$0xf0] }
  0x2b   : > { %1113 = vmatmul.bf16.vlgmr.msra.gmra.mxu0 %v6626_v45  ;;  %1711 = vmatpush.bf16.msrb.mxu1 %v9219_v51  ;;  %v9210_v45 = vld [vmem:[%s9817_s9 + $0x24] sm:$0xf0]  ;;  %v9330_v51 = vld [vmem:[%s11764_s3 + $0x1b8] sm:$0xff]  ;;  %v6873_v63 = vld [vmem:[%s9817_s9 + $0x30] sm:$0xf] }
  0x2c   : > { %1886 = vmatpush.bf16.msrb.mxu0 %v9202_v41  ;;  %1291 = vmatmul.bf16.vlgmr.msra.gmra.mxu2 %v6710_v46  ;;  %v9188_v41 = vld [vmem:[%s9817_s9 + $0xc] sm:$0xf0]  ;;  %v9212_v0 = vld [vmem:[%s9817_s9 + $0x34] sm:$0xf0]  ;;  %v9328_v7 = vld [vmem:[%s11764_s3 + $0x1a8] sm:$0xff] }
  0x2d   : > { %1919 = vmatpush.bf16.msrb.mxu2 %v9206_v39  ;;  %6788 = vmatmul.msk.bf16.gmra.mxu3 %vm1092_vm0, %v6722_v47  ;;  %v6943_v39 = vld [vmem:[%s9817_s9 + $0x10] sm:$0xf0]  ;;  %v6942_v47 = vor.u32 %v9188_v41, %v6941_v40  ;;  %v6957_v13 = vld [vmem:[%s9817_s9 + $0x28] sm:$0xf]  ;;  %v9213_v15 = vld [vmem:[%s9817_s9 + $0x44] sm:$0xf] }
  0x2e   : > { %6704 = vmatmul.msk.bf16.gmra.mxu1 %vm1092_vm0, %v6638_v48  ;;  %v6946_v46 = vor.u32 %v9187_v38, %v6943_v39  ;;  %v6870_v48 = vor.u32 %v9209_v42, %v6867_v43  ;;  %v6883_v16 = vld [vmem:[%s9817_s9 + $0x48] sm:$0xf0]  ;;  %v6881_v17 = vld [vmem:[%s9817_s9 + $0x40] sm:$0xf]  ;;  %v9214_v18 = vld [vmem:[%s9817_s9 + $0x44] sm:$0xf0] }
  0x2f   : > { %1712 = vmatpush.bf16.msrb.mxu1 %v9218_v55  ;;  %v9329_v55 = vld [vmem:[%s11764_s3 + $0x1b0] sm:$0xff]  ;;  %v6886_v21 = vor.u32 %v9213_v15, %v6883_v16  ;;  %v9343_v26 = vld [vmem:[%s11764_s3 + $0x220] sm:$0xff]  ;;  %vm332_vm3 = vmand %vm330_vm1, %vm331_vm2  ;;  %vm642_vm1 = vsmask.f32 7938 }
  0x30   : > { %1887 = vmatpush.bf16.msrb.mxu0 %v9201_v49  ;;  %v6866_v49 = vor.u32 %v9210_v45, %v6865_v44  ;;  %v340_v27 = vld [vmem:[#allocation2 + $0x18] sm:$0x11]  ;;  %vm335_vm6 = vmand %vm333_vm4, %vm334_vm5  ;;  %v497_v29 = vld [vmem:[%s10054_s17] sm:$0xf] }
  0x31   : > { %1920 = vmatpush.bf16.msrb.mxu2 %v9205_v50  ;;  %v9338_v50 = vld [vmem:[%s11764_s3 + $0x1f8] sm:$0xff]  ;;  %vm10060_vm11 = vmor %vm335_vm6, %vm332_vm3  ;;  %v407_v31 = vld [vmem:[#allocation2 + $0x28] sm:$0x88]  ;;  %v514_v32 = vshrl.u32 %v497_v29, 16  ;;  %v517_v33 = vshll.u32 %v497_v29, 16 }
  0x32   : > { %2804 = vmatpush.bf16.msra.mxu3 %v9338_v50  ;;  %v341_v30 = vsel %vm10060_vm11, 0, %v340_v27  ;;  %vm399_vm12 = vmand %vm397_vm7, %vm398_vm8  ;;  %v343_v39 = vld [vmem:[#allocation2 + $0x30] sm:$0x11]  ;;  %v498_v45 = vld [vmem:[%s10054_s17 + $0x4] sm:$0xf] }
  0x33   : > { %1713 = vmatpush.bf16.msrb.mxu1 %v9217_v6  ;;  %v9345_v6 = vld [vmem:[%s11764_s3 + $0x230] sm:$0xff]  ;;  %342 = vst [vmem:[#allocation2 + $0x18] sm:$0x11] %v341_v30  ;;  %vm402_vm13 = vmand %vm400_vm9, %vm401_vm10  ;;  %v344_v41 = vsel %vm10060_vm11, 0, %v343_v39  ;;  %v521_v50 = vshrl.u32 %v498_v45, 16  ;;  %v9348_v16 = vld [vmem:[%s11764_s3 + $0x248] sm:$0xff] }
  0x34   : > { %1888 = vmatpush.bf16.msrb.mxu0 %v9200_v53  ;;  %v9346_v53 = vld [vmem:[%s11764_s3 + $0x238] sm:$0xff]  ;;  %vm10070_vm14 = vmor %vm402_vm13, %vm399_vm12  ;;  %345 = vst [vmem:[#allocation2 + $0x30] sm:$0x11] %v344_v41  ;;  %vm868_vm3 = vsmask.f32 3328  ;;  %v9325_v27 = vld [vmem:[%s11764_s3 + $0x190] sm:$0xff] }
  0x35   : > { %1921 = vmatpush.bf16.msrb.mxu2 %v9204_v54  ;;  %v9337_v54 = vld [vmem:[%s11764_s3 + $0x1f0] sm:$0xff]  ;;  %v408_v40 = vsel %vm10070_vm14, 0, %v407_v31  ;;  %vm10082_vm2 = vmand %vm641_vm15, %vm642_vm1  ;;  %v9347_v31 = vld [vmem:[%s11764_s3 + $0x240] sm:$0xff] }
  0x36   : > { %2805 = vmatpush.bf16.msra.mxu3 %v9337_v54  ;;  %409 = vst [vmem:[#allocation2 + $0x28] sm:$0x88] %v408_v40  ;;  %vm10097_vm4 = vmand %vm641_vm15, %vm868_vm3  ;;  %v9339_v39 = vld [vmem:[%s11764_s3 + $0x200] sm:$0xff] }
  0x37   : > { %1714 = vmatpush.bf16.msrb.mxu1 %v9216_v10  ;;  %v9344_v10 = vld [vmem:[%s11764_s3 + $0x228] sm:$0xff]  ;;  %v9275_v28 = vld [vmem:[%s11764_s3 + $0xc0] sm:$0xff] }
  0x38   : > { %1889 = vmatpush.bf16.msrb.mxu0 %v9199_v56  ;;  %v9353_v56 = vld [vmem:[%s11764_s3 + $0x270] sm:$0xff] }
  0x39   : > { %1922 = vmatpush.bf16.msrb.mxu2 %v9203_v9  ;;  %v9335_v9 = vld [vmem:[%s11764_s3 + $0x1e0] sm:$0xff] }
  0x3b   : > { %1118 = vmatmul.bf16.gmra.mxu0 %v6634_v2  ;;  %1715 = vmatpush.bf16.msrb.mxu1 %v9215_v12  ;;  %v6950_v2 = vor.u32 %v9190_v60, %v6949_v59  ;;  %v6959_v12 = vld [vmem:[%s9817_s9 + $0x30] sm:$0xf0]  ;;  %v9350_v60 = vld [vmem:[%s11764_s3 + $0x258] sm:$0xff] }
  0x3c   : > { %1890 = vmatpush.bf16.msrb.mxu0 %v9198_v1  ;;  %1296 = vmatmul.bf16.gmra.mxu2 %v6718_v3  ;;  %v6954_v1 = vor.u32 %v9189_v57, %v6951_v58  ;;  %v6878_v3 = vor.u32 %v9211_v61, %v6875_v62  ;;  %v9333_v61 = vld [vmem:[%s11764_s3 + $0x1d0] sm:$0xff] }
  0x3d   : > { %6789 = vmatmul.msk.bf16.gmra.mxu3 %vm1092_vm0, %v6730_v4  ;;  %2862 = vmatpush.bf16.msra.mxu2 %v9354_v52  ;;  %v6874_v4 = vor.u32 %v9212_v0, %v6873_v63  ;;  %v9194_v52 = vld [vmem:[%s9817_s9 + $0x3c] sm:$0xf0]  ;;  %v870_v0 = vld [vmem:[#allocation2 + $0x2c] sm:$0xf] }
  0x3e   : > { %6705 = vmatmul.msk.bf16.gmra.mxu1 %vm1092_vm0, %v6646_v5  ;;  %v9336_v5 = vld [vmem:[%s11764_s3 + $0x1e8] sm:$0xff]  ;;  %v9419_v63 = vld [vmem:[%s11764_s3 + $0x3c0] sm:$0xff] }
  0x3f   : > { %2775 = vmatpush.bf16.msra.mxu1 %v9330_v51  ;;  %2806 = vmatpush.bf16.msra.mxu3 %v9336_v5  ;;  %v6965_v51 = vld [vmem:[%s9817_s9 + $0x38] sm:$0xf] }
  0x40   : > { %1891 = vmatpush.bf16.msrb.mxu0 %v9197_v8  ;;  %v9352_v8 = vld [vmem:[%s11764_s3 + $0x268] sm:$0xff]  ;;  %v6966_v59 = vor.u32 %v9194_v52, %v6965_v51 }
  0x41   : > { %2863 = vmatpush.bf16.msra.mxu2 %v9353_v56  ;;  %v524_v56 = vshll.u32 %v498_v45, 16  ;;  %v9324_v51 = vld [vmem:[%s11764_s3 + $0x188] sm:$0xff] }
  0x43   : > { %2776 = vmatpush.bf16.msra.mxu1 %v9329_v55  ;;  %2807 = vmatpush.bf16.msra.mxu3 %v9335_v9  ;;  %v523_v55 = vrot.slane %v521_v50, 7  ;;  %v410_v9 = vld [vmem:[#allocation2 + $0x40] sm:$0x88]  ;;  %v694_v50 = vld [vmem:[%s10054_s17 + $0x8] sm:$0xf] }
  0x44   : > { %1892 = vmatpush.bf16.msrb.mxu0 %v9196_v11  ;;  %v9191_v11 = vld [vmem:[%s9817_s9 + $0x2c] sm:$0xf] }
  0x45   : > { %2864 = vmatpush.bf16.msra.mxu2 %v9352_v8  ;;  %v6962_v19 = vor.u32 %v9191_v11, %v6959_v12  ;;  %v526_v62 = vor.u32 %v524_v56, %v523_v55  ;;  %v9341_v8 = vld [vmem:[%s11764_s3 + $0x210] sm:$0xff]  ;;  %v9326_v11 = vld [vmem:[%s11764_s3 + $0x198] sm:$0xff]  ;;  %v346_v12 = vld [vmem:[#allocation2 + $0x48] sm:$0x11]  ;;  %v727_v55 = vshrl.u32 %v694_v50, 16 }
  0x46   : > { %v347_v15 = vsel %vm10060_vm11, 0, %v346_v12 }
  0x47   : > { %2777 = vmatpush.bf16.msra.mxu1 %v9328_v7  ;;  %v9332_v7 = vld [vmem:[%s11764_s3 + $0x1c8] sm:$0xff]  ;;  %348 = vst [vmem:[#allocation2 + $0x48] sm:$0x11] %v347_v15 }
  0x48   : > { %1893 = vmatpush.bf16.msrb.mxu0 %v9195_v14  ;;  %v9192_v14 = vld [vmem:[%s9817_s9 + $0x2c] sm:$0xf0] }
  0x49   : > { %v6958_v20 = vor.u32 %v9192_v14, %v6957_v13  ;;  %v693_v14 = vld [vmem:[%s10054_s17 + $0x4] sm:$0xf] }
  0x4b   : > { %1123 = vmatmul.bf16.gmra.mxu0 %v6642_v22  ;;  %v6882_v22 = vor.u32 %v9214_v18, %v6881_v17  ;;  %v9331_v17 = vld [vmem:[%s11764_s3 + $0x1c0] sm:$0xff]  ;;  %v718_v18 = vshrl.u32 %v693_v14, 16 }
  0x4c   : > { %1301 = vmatmul.bf16.gmra.mxu2 %v6726_v23  ;;  %2833 = vmatpush.bf16.msra.mxu0 %v9346_v53  ;;  %v9327_v23 = vld [vmem:[%s11764_s3 + $0x1a0] sm:$0xff]  ;;  %v644_v53 = vld [vmem:[#allocation2 + $0x1c] sm:$0xf] }
  0x4d   : > { %6790 = vmatmul.msk.bf16.gmra.mxu3 %vm1092_vm0, %v6738_v24  ;;  %v9351_v24 = vld [vmem:[%s11764_s3 + $0x260] sm:$0xff]  ;;  %2778 = vmatpush.bf16.msra.mxu1 %v9327_v23 }
  0x4e   : > { %6706 = vmatmul.msk.bf16.gmra.mxu1 %vm1092_vm0, %v6654_v25  ;;  %v9334_v25 = vld [vmem:[%s11764_s3 + $0x1d8] sm:$0xff]  ;;  %2865 = vmatpush.bf16.msra.mxu2 %v9351_v24 }
  0x4f   : > { %2808 = vmatpush.bf16.msra.mxu3 %v9334_v25  ;;  %v720_v25 = vrot.slane %v718_v18, 4  ;;  %v352_v18 = vld [vmem:[#allocation2 + $0x78] sm:$0x11] }
  0x50   : > { %2834 = vmatpush.bf16.msra.mxu0 %v9345_v6  ;;  %v9349_v6 = vld [vmem:[%s11764_s3 + $0x250] sm:$0xff] }
  0x51   : > { %2779 = vmatpush.bf16.msra.mxu1 %v9326_v11 }
  0x52   : > { %2866 = vmatpush.bf16.msra.mxu2 %v9350_v60  ;;  %v465_v60 = vld [vmem:[%s10054_s17 + $0x4] sm:$0xf] }
  0x53   : > { %2809 = vmatpush.bf16.msra.mxu3 %v9333_v61  ;;  %482 = vst [vmem:[#allocation2 + $0x3c] sm:$0xf] %v465_v60 }
  0x54   : > { %2835 = vmatpush.bf16.msra.mxu0 %v9344_v10  ;;  %v411_v10 = vsel %vm10070_vm14, 0, %v410_v9 }
  0x55   : > { %412 = vst [vmem:[#allocation2 + $0x40] sm:$0x88] %v411_v10  ;;  %2780 = vmatpush.bf16.msra.mxu1 %v9325_v27 }
  0x56   : > { %2867 = vmatpush.bf16.msra.mxu2 %v9349_v6  ;;  %v416_v6 = vld [vmem:[#allocation2 + $0x70] sm:$0x88] }
  0x57   : > { %2810 = vmatpush.bf16.msra.mxu3 %v9332_v7  ;;  %v417_v9 = vsel %vm10070_vm14, 0, %v416_v6 }
  0x58   : > { %2836 = vmatpush.bf16.msra.mxu0 %v9343_v26  ;;  %418 = vst [vmem:[#allocation2 + $0x70] sm:$0x88] %v417_v9 }
  0x59   : > { %2781 = vmatpush.bf16.msra.mxu1 %v9324_v51 }
  0x5a   : > { %2868 = vmatpush.bf16.msra.mxu2 %v9348_v16 }
  0x5b   : > { %1128 = vmatmul.bf16.gmra.mxu0 %v6650_v34  ;;  %v692_v34 = vld [vmem:[%s10054_s17] sm:$0xf]  ;;  %2811 = vmatpush.bf16.msra.mxu3 %v9331_v17  ;;  %v695_v17 = vld [vmem:[%s10054_s17 + $0xc] sm:$0xf] }
  0x5c   : > { %1306 = vmatmul.bf16.gmra.mxu2 %v6734_v35  ;;  %v712_v38 = vshll.u32 %v692_v34, 16  ;;  %v873_v40 = vld [vmem:[#allocation2 + $0x44] sm:$0xf]  ;;  %v9297_v35 = vld [vmem:[%s11764_s3 + $0x170] sm:$0xff] }
  0x5d   : > { %6935 = vmatmul.msk.bf16.vlgmr.msrb.gmra.mxu3 %vm1092_vm0, %v6862_v36  ;;  %v516_v36 = vrot.slane %v514_v32, 7  ;;  %v349_v32 = vld [vmem:[#allocation2 + $0x60] sm:$0x11] }
  0x5e   : > { %1716 = vmatmul.bf16.vlgmr.msrb.gmra.mxu1 %v6858_v37  ;;  %v709_v37 = vshrl.u32 %v692_v34, 16  ;;  %v714_v43 = vrot.slane %v712_v38, 5  ;;  %2869 = vmatpush.bf16.msra.mxu2 %v9347_v31 }
  0x5f   : > { %v519_v44 = vor.u32 %v517_v33, %v516_v36  ;;  %v500_v33 = vld [vmem:[%s10054_s17 + $0xc] sm:$0xf]  ;;  %v413_v36 = vld [vmem:[#allocation2 + $0x58] sm:$0x88] }
  0x60   : > { %v711_v42 = vrot.slane %v709_v37, 4  ;;  %v414_v41 = vsel %vm10070_vm14, 0, %v413_v36  ;;  %v538_v52 = vshll.u32 %v500_v33, 16 }
  0x61   : > { %v645_v57 = vsel %vm10082_vm2, %v519_v44, %v644_v53  ;;  %415 = vst [vmem:[#allocation2 + $0x58] sm:$0x88] %v414_v41 }
  0x62   : > { %646 = vst [vmem:[#allocation2 + $0x1c] sm:$0xf] %v645_v57  ;;  %v464_v57 = vld [vmem:[%s10054_s17] sm:$0xf] }
  0x63   : > { %481 = vst [vmem:[#allocation2 + $0x24] sm:$0xf] %v464_v57 }
  0x69   : > { %v9299_v23 = vld [vmem:[#allocation2 + $0x1c] sm:$0xf] }
  0x6b   : > { %1894 = vmatmul.bf16.vlgmr.msrb.gmra.mxu0 %v6942_v47  ;;  %v6967_v47 = vld [vmem:[%s9817_s9 + $0x40] sm:$0xf0] }
  0x6c   : > { %7019 = vmatmul.msk.bf16.vlgmr.msrb.gmra.mxu2 %vm1092_vm0, %v6946_v46  ;;  %v9193_v46 = vld [vmem:[%s9817_s9 + $0x3c] sm:$0xf] }
  0x6d   : > { %6936 = vmatmul.msk.bf16.gmra.mxu3 %vm1092_vm0, %v6870_v48  ;;  %v6970_v58 = vor.u32 %v9193_v46, %v6967_v47 }
  0x6e   : > { %1721 = vmatmul.bf16.gmra.mxu1 %v6866_v49  ;;  %v715_v49 = vor.u32 %v714_v43, %v711_v42  ;;  %v350_v42 = vsel %vm10060_vm11, 0, %v349_v32  ;;  %v535_v43 = vshrl.u32 %v500_v33, 16 }
  0x6f   : > { %351 = vst [vmem:[#allocation2 + $0x60] sm:$0x11] %v350_v42 }
  0x70   : > { %v716_v54 = vrot.slane %v715_v49, 4  ;;  %v650_v49 = vld [vmem:[#allocation2 + $0x4c] sm:$0xf]  ;;  %v537_v56 = vrot.slane %v535_v43, 7 }
  0x7b   : > { %1899 = vmatmul.bf16.gmra.mxu0 %v6950_v2  ;;  %v871_v2 = vsel %vm10097_vm4, %v716_v54, %v870_v0 }
  0x7c   : > { %7020 = vmatmul.msk.bf16.gmra.mxu2 %vm1092_vm0, %v6954_v1  ;;  %v9342_v1 = vld [vmem:[%s11764_s3 + $0x218] sm:$0xff]  ;;  %872 = vst [vmem:[#allocation2 + $0x2c] sm:$0xf] %v871_v2  ;;  %v540_v2 = vor.u32 %v538_v52, %v537_v56 }
  0x7d   : > { %6937 = vmatmul.msk.bf16.gmra.mxu3 %vm1092_vm0, %v6878_v3  ;;  %v647_v3 = vld [vmem:[#allocation2 + $0x34] sm:$0xf]  ;;  %2837 = vmatpush.bf16.msra.mxu0 %v9342_v1  ;;  %v9323_v1 = vld [vmem:[%s11764_s3 + $0x180] sm:$0xff]  ;;  %v9370_v52 = vld [vmem:[%s11764_s3 + $0x2f8] sm:$0xff] }
  0x7e   : > { %1726 = vmatmul.bf16.gmra.mxu1 %v6874_v4  ;;  %v648_v5 = vsel %vm10082_vm2, %v526_v62, %v647_v3  ;;  %v729_v62 = vrot.slane %v727_v55, 4  ;;  %2920 = vmatpush.bf16.msrb.mxu3 %v9370_v52 }
  0x7f   : > { %649 = vst [vmem:[#allocation2 + $0x34] sm:$0xf] %v648_v5  ;;  %2782 = vmatpush.bf16.msra.mxu1 %v9323_v1 }
  0x81   : > { %2838 = vmatpush.bf16.msra.mxu0 %v9341_v8  ;;  %v876_v8 = vld [vmem:[#allocation2 + $0x5c] sm:$0xf] }
  0x86   : > { %v7123_v24 = vld [vmem:[#allocation2 + $0x30] sm:$0xf0] }
  0x87   : > { %v7126_v30 = vor.u32 %v9299_v23, %v7123_v24  ;;  %v736_v23 = vshrl.u32 %v695_v17, 16  ;;  %v739_v24 = vshll.u32 %v695_v17, 16 }
  0x89   : > { %v738_v27 = vrot.slane %v736_v23, 4 }
  0x8b   : > { %1904 = vmatmul.bf16.gmra.mxu0 %v6958_v20  ;;  %v9340_v20 = vld [vmem:[%s11764_s3 + $0x208] sm:$0xff] }
  0x8c   : > { %7021 = vmatmul.msk.bf16.gmra.mxu2 %vm1092_vm0, %v6962_v19  ;;  %v721_v19 = vshll.u32 %v693_v14, 16  ;;  %2839 = vmatpush.bf16.msra.mxu0 %v9340_v20  ;;  %v653_v14 = vld [vmem:[#allocation2 + $0x64] sm:$0xf] }
  0x8d   : > { %6938 = vmatmul.msk.bf16.gmra.mxu3 %vm1092_vm0, %v6886_v21  ;;  %v654_v16 = vsel %vm10082_vm2, %v540_v2, %v653_v14  ;;  %v696_v2 = vld [vmem:[%s10054_s17 + $0x10] sm:$0xf] }
  0x8e   : > { %1731 = vmatmul.bf16.gmra.mxu1 %v6882_v22  ;;  %v499_v22 = vld [vmem:[%s10054_s17 + $0x8] sm:$0xf]  ;;  %v723_v26 = vrot.slane %v721_v19, 5  ;;  %v355_v19 = vld [vmem:[#allocation2 + $0x90] sm:$0x11] }
  0x8f   : > { %v528_v29 = vshrl.u32 %v499_v22, 16  ;;  %v531_v38 = vshll.u32 %v499_v22, 16  ;;  %655 = vst [vmem:[#allocation2 + $0x64] sm:$0xf] %v654_v16  ;;  %v356_v36 = vsel %vm10060_vm11, 0, %v355_v19 }
  0x90   : > { %v724_v34 = vor.u32 %v723_v26, %v720_v25  ;;  %2840 = vmatpush.bf16.msra.mxu0 %v9339_v39  ;;  %v353_v25 = vsel %vm10060_vm11, 0, %v352_v18  ;;  %v9300_v26 = vld [vmem:[#allocation2 + $0x24] sm:$0xf]  ;;  %v419_v39 = vld [vmem:[#allocation2 + $0x88] sm:$0x88] }
  0x91   : > { %v530_v37 = vrot.slane %v528_v29, 7  ;;  %v741_v29 = vrot.slane %v739_v24, 5  ;;  %354 = vst [vmem:[#allocation2 + $0x78] sm:$0x11] %v353_v25 }
  0x92   : > { %v725_v44 = vrot.slane %v724_v34, 4  ;;  %v501_v34 = vld [vmem:[%s10054_s17 + $0x10] sm:$0xf]  ;;  %357 = vst [vmem:[#allocation2 + $0x90] sm:$0x11] %v356_v36 }
  0x93   : > { %v533_v45 = vor.u32 %v531_v38, %v530_v37  ;;  %v742_v38 = vor.u32 %v741_v29, %v738_v27  ;;  %v545_v41 = vshll.u32 %v501_v34, 16  ;;  %v422_v27 = vld [vmem:[#allocation2 + $0xa0] sm:$0x88]  ;;  %v467_v29 = vld [vmem:[%s10054_s17 + $0xc] sm:$0xf] }
  0x94   : > { %v874_v53 = vsel %vm10097_vm4, %v725_v44, %v873_v40  ;;  %v542_v40 = vshrl.u32 %v501_v34, 16  ;;  %484 = vst [vmem:[#allocation2 + $0x6c] sm:$0xf] %v467_v29 }
  0x95   : > { %v651_v54 = vsel %vm10082_vm2, %v533_v45, %v650_v49  ;;  %875 = vst [vmem:[#allocation2 + $0x44] sm:$0xf] %v874_v53  ;;  %v879_v45 = vld [vmem:[#allocation2 + $0x74] sm:$0xf]  ;;  %v743_v51 = vrot.slane %v742_v38, 4  ;;  %v420_v53 = vsel %vm10070_vm14, 0, %v419_v39 }
  0x96   : > { %652 = vst [vmem:[#allocation2 + $0x4c] sm:$0xf] %v651_v54  ;;  %v544_v54 = vrot.slane %v542_v40, 7 }
  0x97   : > { %421 = vst [vmem:[#allocation2 + $0x88] sm:$0x88] %v420_v53 }
  0x98   : > { %v547_v1 = vor.u32 %v545_v41, %v544_v54  ;;  %v656_v9 = vld [vmem:[#allocation2 + $0x7c] sm:$0xf]  ;;  %v1500_v54 = vld [vmem:[#allocation2 + $0x40] sm:$0xf] }
  0x99   : > { %v9362_v41 = vld [vmem:[%s11764_s3 + $0x2b8] sm:$0xff] }
  0x9a   : > { %2891 = vmatpush.bf16.msrb.mxu1 %v9362_v41 }
  0x9b   : > { %v10106_v4 = vpop.f32.mrf.mxu1  ;;  %1909 = vmatmul.bf16.gmra.mxu0 %v6966_v59  ;;  %v730_v59 = vshll.u32 %v694_v50, 16 }
  0x9c   : > { %7022 = vmatmul.msk.bf16.gmra.mxu2 %vm1092_vm0, %v6970_v58 }
  0x9d   : > { %2812 = vmatmul.bf16.vlgmr.msra.gmra.mxu3 %v7126_v30  ;;  %v732_v0 = vrot.slane %v730_v59, 5  ;;  %v7131_v30 = vld [vmem:[#allocation2 + $0x38] sm:$0xf0]  ;;  %v9305_v55 = vld [vmem:[#allocation2 + $0x4c] sm:$0xf] }
  0x9e   : > { %v7134_v33 = vor.u32 %v9300_v26, %v7131_v30  ;;  %v1436_v30 = vld [vmem:[#allocation2 + $0x30] sm:$0xf]  ;;  %v882_v34 = vld [vmem:[#allocation2 + $0x8c] sm:$0xf] }
  0x9f   : > { %v733_v5 = vor.u32 %v732_v0, %v729_v62  ;;  %v880_v0 = vsel %vm10097_vm4, %v743_v51, %v879_v45  ;;  %v697_v51 = vld [vmem:[%s10054_s17 + $0x14] sm:$0xf] }
  0xa0   : > { %v10125_v13 = vpop.f32.mrf.mxu3  ;;  %881 = vst [vmem:[#allocation2 + $0x74] sm:$0xf] %v880_v0 }
  0xa1   : > { %v734_v12 = vrot.slane %v733_v5, 4  ;;  %v502_v5 = vld [vmem:[%s10054_s17 + $0x14] sm:$0xf] }
  0xa3   : > { %v10139_v21 = vpop.f32.mrf.mxu1  ;;  %v877_v22 = vsel %vm10097_vm4, %v734_v12, %v876_v8  ;;  %v748_v12 = vshll.u32 %v696_v2, 16 }
  0xa4   : > { %878 = vst [vmem:[#allocation2 + $0x5c] sm:$0xf] %v877_v22 }
  0xa5   : > { %v750_v23 = vrot.slane %v748_v12, 5 }
  0xa8   : > { %v1114_v46 = vpop.f32.mrf.mxu0  ;;  %v10156_v47 = vpop.f32.mrf.mxu3 }
  0xa9   : > { %v1144_v61 = vadd.f32 %v10106_v4, %v1114_v46  ;;  %v10177_v4 = vld [vmem:[%s11765_s4] ss:$0 sm:$0xff]  ;;  %v466_v46 = vld [vmem:[%s10054_s17 + $0x8] sm:$0xf] }
  0xaa   : > { %483 = vst [vmem:[#allocation2 + $0x54] sm:$0xf] %v466_v46 }
  0xab   : > { %v10167_v58 = vpop.f32.mrf.mxu1 }
  0xac   : > { %2870 = vmatmul.bf16.vlgmr.msra.gmra.mxu2 %v7134_v33 }
  0xaf   : > { %v1292_v3 = vpop.f32.mrf.mxu2 }
  0xb0   : > { %v1293_v7 = vadd.f32 %v1292_v3, %v1144_v61  ;;  %v1116_v10 = vpop.f32.mrf.mxu0  ;;  %v10181_v11 = vpop.f32.mrf.mxu3  ;;  %v7147_v3 = vld [vmem:[#allocation2 + $0x60] sm:$0xf0] }
  0xb1   : > { %v1146_v32 = vadd.f32 %v10139_v21, %v1116_v10  ;;  %v1433_v21 = vld [vmem:[#allocation2 + $0x18] sm:$0xf]  ;;  %v1497_v10 = vld [vmem:[#allocation2 + $0x28] sm:$0xf]  ;;  %v7150_v14 = vor.u32 %v9305_v55, %v7147_v3 }
  0xb2   : > { %v1322_v15 = vadd.f32 %v10125_v13, %v1293_v7 }
  0xb3   : > { %v10187_v20 = vpop.f32.mrf.mxu1  ;;  %2817 = vmatmul.bf16.gmra.mxu3 %v7150_v14 }
  0xb4   : > { %v1345_v13 = vadd.f32 %v10177_v4, %v1322_v15  ;;  %v549_v15 = vshrl.u32 %v502_v5, 16 }
  0xb6   : > { %v1353_v31 = vpack.c.bf16 %v1345_v13, %v1345_v13  ;;  %v551_v36 = vrot.slane %v549_v15, 7  ;;  %v9306_v15 = vld [vmem:[#allocation2 + $0x54] sm:$0xf] }
  0xb7   : > { %v1294_v37 = vpop.f32.mrf.mxu2 }
  0xb8   : > { %1361 = vst [vmem:[#allocation2 + $0x20] sm:$0xf] %v1353_v31  ;;  %v1370_v42 = vshrl.u32 %v1353_v31, 16  ;;  %v1373_v43 = vshll.u32 %v1353_v31, 16  ;;  %v1295_v44 = vadd.f32 %v1294_v37, %v1146_v32  ;;  %v1119_v49 = vpop.f32.mrf.mxu0  ;;  %v10199_v50 = vpop.f32.mrf.mxu3 }
  0xb9   : > { %v1149_v61 = vadd.f32 %v10167_v58, %v1119_v49  ;;  %v657_v58 = vsel %vm10082_vm2, %v547_v1, %v656_v9  ;;  %v552_v49 = vshll.u32 %v502_v5, 16 }
  0xba   : > { %v1372_v56 = vrot.slane %v1370_v42, 7  ;;  %v1457_v57 = vrot.slane %v1370_v42, 4  ;;  %v1458_v59 = vrot.slane %v1373_v43, 5  ;;  %v1324_v60 = vadd.f32 %v10156_v47, %v1295_v44  ;;  %658 = vst [vmem:[#allocation2 + $0x7c] sm:$0xf] %v657_v58  ;;  %v9410_v42 = vld [vmem:[%s11764_s3 + $0x378] sm:$0xff] }
  0xbb   : > { %v10208_v62 = vpop.f32.mrf.mxu1  ;;  %v745_v47 = vshrl.u32 %v696_v2, 16  ;;  %3507 = vmatpush.bf16.msrb.mxu2 %v9410_v42 }
  0xbc   : > { %v1375_v6 = vor.u32 %v1373_v43, %v1372_v56  ;;  %v1459_v7 = vor.u32 %v1458_v59, %v1457_v57  ;;  %v1346_v8 = vadd.f32 %v10177_v4, %v1324_v60  ;;  %v9369_v43 = vld [vmem:[%s11764_s3 + $0x2f0] sm:$0xff]  ;;  %v554_v57 = vor.u32 %v552_v49, %v551_v36  ;;  %v698_v49 = vld [vmem:[%s10054_s17 + $0x18] sm:$0xf] }
  0xbd   : > { %v747_v19 = vrot.slane %v745_v47, 4  ;;  %2921 = vmatpush.bf16.msrb.mxu3 %v9369_v43  ;;  %v754_v59 = vshrl.u32 %v697_v51, 16  ;;  %v757_v60 = vshll.u32 %v697_v51, 16  ;;  %v7155_v43 = vld [vmem:[#allocation2 + $0x68] sm:$0xf0] }
  0xbe   : > { %v1434_v16 = vsel %vm10082_vm2, %v1375_v6, %v1433_v21  ;;  %v1460_v17 = vrot.slane %v1459_v7, 4  ;;  %v1354_v18 = vpack.c.bf16 %v1346_v8, %v1346_v8  ;;  %v423_v21 = vsel %vm10070_vm14, 0, %v422_v27 }
  0xbf   : > { %1435 = vst [vmem:[#allocation2 + $0x18] sm:$0xf] %v1434_v16  ;;  %v1297_v22 = vpop.f32.mrf.mxu2  ;;  %v751_v33 = vor.u32 %v750_v23, %v747_v19  ;;  %v7129_v3 = vld [vmem:[#allocation2 + $0x20] sm:$0xf]  ;;  %v756_v9 = vrot.slane %v754_v59, 4  ;;  %v759_v47 = vrot.slane %v757_v60, 5 }
  0xc0   : > { %v1498_v24 = vsel %vm10097_vm4, %v1460_v17, %v1497_v10  ;;  %1362 = vst [vmem:[#allocation2 + $0x38] sm:$0xf] %v1354_v18  ;;  %v1377_v25 = vshrl.u32 %v1354_v18, 16  ;;  %v1380_v13 = vshll.u32 %v1354_v18, 16  ;;  %v1298_v26 = vadd.f32 %v1297_v22, %v1149_v61  ;;  %v1121_v31 = vpop.f32.mrf.mxu0  ;;  %v10222_v32 = vpop.f32.mrf.mxu3  ;;  %v358_v61 = vld [vmem:[#allocation2 + $0xa8] sm:$0x11] }
  0xc1   : > { %1499 = vst [vmem:[#allocation2 + $0x28] sm:$0xf] %v1498_v24  ;;  %v1151_v44 = vadd.f32 %v10187_v20, %v1121_v31  ;;  %v752_v46 = vrot.slane %v751_v33, 4  ;;  %v659_v20 = vld [vmem:[#allocation2 + $0x94] sm:$0xf]  ;;  %v359_v5 = vsel %vm10060_vm11, 0, %v358_v61  ;;  %v760_v23 = vor.u32 %v759_v47, %v756_v9 }
  0xc2   : > { %v1379_v37 = vrot.slane %v1377_v25, 7  ;;  %v1461_v38 = vrot.slane %v1377_v25, 4  ;;  %v1462_v39 = vrot.slane %v1380_v13, 5  ;;  %v1327_v40 = vadd.f32 %v10181_v11, %v1298_v26  ;;  %v9402_v11 = vld [vmem:[%s11764_s3 + $0x338] sm:$0xff]  ;;  %424 = vst [vmem:[#allocation2 + $0xa0] sm:$0x88] %v423_v21 }
  0xc3   : > { %v10235_v45 = vpop.f32.mrf.mxu1  ;;  %v883_v56 = vsel %vm10097_vm4, %v752_v46, %v882_v34  ;;  %3478 = vmatpush.bf16.msrb.mxu0 %v9402_v11  ;;  %v660_v8 = vsel %vm10082_vm2, %v554_v57, %v659_v20  ;;  %v425_v16 = vld [vmem:[#allocation2 + $0xb8] sm:$0x88]  ;;  %v1439_v17 = vld [vmem:[#allocation2 + $0x48] sm:$0xf]  ;;  %v9361_v24 = vld [vmem:[%s11764_s3 + $0x2b0] sm:$0xff]  ;;  %v7158_v46 = vor.u32 %v9306_v15, %v7155_v43  ;;  %v766_v59 = vshll.u32 %v698_v49, 16 }
  0xc4   : > { %v1382_v52 = vor.u32 %v1380_v13, %v1379_v37  ;;  %v1463_v53 = vor.u32 %v1462_v39, %v1461_v38  ;;  %v1347_v55 = vadd.f32 %v10177_v4, %v1327_v40  ;;  %884 = vst [vmem:[#allocation2 + $0x8c] sm:$0xf] %v883_v56  ;;  %v9409_v25 = vld [vmem:[%s11764_s3 + $0x370] sm:$0xff]  ;;  %v9368_v13 = vld [vmem:[%s11764_s3 + $0x2e8] sm:$0xff]  ;;  %v426_v26 = vsel %vm10070_vm14, 0, %v425_v16  ;;  %2892 = vmatpush.bf16.msrb.mxu1 %v9361_v24  ;;  %v9367_v16 = vld [vmem:[%s11764_s3 + $0x2e0] sm:$0xff] }
  0xc5   : > { %661 = vst [vmem:[#allocation2 + $0x94] sm:$0xf] %v660_v8  ;;  %v9401_v33 = vld [vmem:[%s11764_s3 + $0x330] sm:$0xff]  ;;  %v1503_v34 = vld [vmem:[#allocation2 + $0x58] sm:$0xf]  ;;  %v761_v38 = vrot.slane %v760_v23, 4  ;;  %3508 = vmatpush.bf16.msrb.mxu2 %v9409_v25  ;;  %2922 = vmatpush.bf16.msrb.mxu3 %v9368_v13 }
  0xc6   : > { %v1437_v0 = vsel %vm10082_vm2, %v1382_v52, %v1436_v30  ;;  %v1464_v1 = vrot.slane %v1463_v53, 4  ;;  %v1355_v2 = vpack.c.bf16 %v1347_v55, %v1347_v55  ;;  %v7121_v42 = vld [vmem:[#allocation2 + $0x18] sm:$0xf]  ;;  %360 = vst [vmem:[#allocation2 + $0xa8] sm:$0x11] %v359_v5  ;;  %v763_v55 = vshrl.u32 %v698_v49, 16  ;;  %2875 = vmatmul.bf16.gmra.mxu2 %v7158_v46 }
  0xc7   : > { %1438 = vst [vmem:[#allocation2 + $0x30] sm:$0xf] %v1437_v0  ;;  %v1299_v6 = vpop.f32.mrf.mxu2  ;;  %v9303_v7 = vld [vmem:[#allocation2 + $0x34] sm:$0xf0]  ;;  %3479 = vmatpush.bf16.msrb.mxu0 %v9401_v33  ;;  %v768_v8 = vrot.slane %v766_v59, 5  ;;  %v9360_v9 = vld [vmem:[%s11764_s3 + $0x2a8] sm:$0xff] }
  0xc8   : > { %v1501_v10 = vsel %vm10097_vm4, %v1464_v1, %v1500_v54  ;;  %1363 = vst [vmem:[#allocation2 + $0x50] sm:$0xf] %v1355_v2  ;;  %v1384_v58 = vshrl.u32 %v1355_v2, 16  ;;  %v1387_v12 = vshll.u32 %v1355_v2, 16  ;;  %v1300_v14 = vadd.f32 %v1299_v6, %v1151_v44  ;;  %v1124_v18 = vpop.f32.mrf.mxu0  ;;  %v10254_v22 = vpop.f32.mrf.mxu3  ;;  %v503_v44 = vld [vmem:[%s10054_s17 + $0x18] sm:$0xf]  ;;  %2893 = vmatpush.bf16.msrb.mxu1 %v9360_v9 }
  0xc9   : > { %1502 = vst [vmem:[#allocation2 + $0x40] sm:$0xf] %v1501_v10  ;;  %v7130_v19 = vor.u32 %v9303_v7, %v7129_v3  ;;  %v1154_v36 = vadd.f32 %v10208_v62, %v1124_v18  ;;  %v885_v39 = vld [vmem:[#allocation2 + $0xa4] sm:$0xf]  ;;  %v556_v11 = vshrl.u32 %v503_v44, 16  ;;  %v559_v21 = vshll.u32 %v503_v44, 16  ;;  %2923 = vmatpush.bf16.msrb.mxu3 %v9367_v16 }
  0xca   : > { %v1386_v27 = vrot.slane %v1384_v58, 7  ;;  %v1465_v29 = vrot.slane %v1384_v58, 4  ;;  %v1466_v30 = vrot.slane %v1387_v12, 5  ;;  %v1329_v31 = vadd.f32 %v10199_v50, %v1300_v14  ;;  %427 = vst [vmem:[#allocation2 + $0xb8] sm:$0x88] %v426_v26  ;;  %v9408_v47 = vld [vmem:[%s11764_s3 + $0x368] sm:$0xff] }
  0xcb   : > { %2841 = vmatmul.bf16.vlgmr.msra.gmra.mxu0 %v7130_v19  ;;  %v10272_v37 = vpop.f32.mrf.mxu1  ;;  %v886_v62 = vsel %vm10097_vm4, %v761_v38, %v885_v39  ;;  %v558_v57 = vrot.slane %v556_v11, 7  ;;  %v9311_v2 = vld [vmem:[#allocation2 + $0x7c] sm:$0xf]  ;;  %v765_v7 = vrot.slane %v763_v55, 4  ;;  %3509 = vmatpush.bf16.msrb.mxu2 %v9408_v47  ;;  %v9400_v25 = vld [vmem:[%s11764_s3 + $0x328] sm:$0xff]  ;;  %v9359_v59 = vld [vmem:[%s11764_s3 + $0x2a0] sm:$0xff] }
  0xcc   : > { %v1389_v40 = vor.u32 %v1387_v12, %v1386_v27  ;;  %v1467_v41 = vor.u32 %v1466_v30, %v1465_v29  ;;  %v1348_v50 = vadd.f32 %v10177_v4, %v1329_v31  ;;  %887 = vst [vmem:[#allocation2 + $0xa4] sm:$0xf] %v886_v62  ;;  %v7171_v15 = vld [vmem:[#allocation2 + $0x90] sm:$0xf0]  ;;  %v361_v31 = vld [vmem:[#allocation2 + $0xc0] sm:$0x11]  ;;  %3480 = vmatpush.bf16.msrb.mxu0 %v9400_v25 }
  0xcd   : > { %v561_v6 = vor.u32 %v559_v21, %v558_v57  ;;  %v662_v19 = vld [vmem:[#allocation2 + $0xac] sm:$0xf]  ;;  %v769_v23 = vor.u32 %v768_v8, %v765_v7  ;;  %v7174_v24 = vor.u32 %v9311_v2, %v7171_v15  ;;  %v428_v38 = vld [vmem:[#allocation2 + $0xd0] sm:$0x88]  ;;  %v504_v62 = vld [vmem:[%s10054_s17 + $0x1c] sm:$0xf]  ;;  %2894 = vmatpush.bf16.msrb.mxu1 %v9359_v59 }
  0xce   : > { %v1440_v51 = vsel %vm10082_vm2, %v1389_v40, %v1439_v17  ;;  %v1468_v52 = vrot.slane %v1467_v41, 4  ;;  %v1356_v53 = vpack.c.bf16 %v1348_v50, %v1348_v50  ;;  %v9302_v54 = vld [vmem:[#allocation2 + $0x2c] sm:$0xf0]  ;;  %v1442_v17 = vld [vmem:[#allocation2 + $0x60] sm:$0xf]  ;;  %v9366_v9 = vld [vmem:[%s11764_s3 + $0x2d8] sm:$0xff] }
  0xcf   : > { %1441 = vst [vmem:[#allocation2 + $0x48] sm:$0xf] %v1440_v51  ;;  %v1302_v20 = vpop.f32.mrf.mxu2  ;;  %v7122_v56 = vor.u32 %v9302_v54, %v7121_v42  ;;  %v663_v29 = vsel %vm10082_vm2, %v561_v6, %v662_v19  ;;  %2822 = vmatmul.bf16.gmra.mxu3 %v7174_v24  ;;  %v7153_v50 = vld [vmem:[#allocation2 + $0x50] sm:$0xf]  ;;  %v699_v51 = vld [vmem:[%s10054_s17 + $0x1c] sm:$0xf] }
  0xd0   : > { %v1504_v60 = vsel %vm10097_vm4, %v1468_v52, %v1503_v34  ;;  %1364 = vst [vmem:[#allocation2 + $0x68] sm:$0xf] %v1356_v53  ;;  %v1391_v61 = vshrl.u32 %v1356_v53, 16  ;;  %v1394_v0 = vshll.u32 %v1356_v53, 16  ;;  %v1303_v1 = vadd.f32 %v1302_v20, %v1154_v36  ;;  %v1126_v3 = vpop.f32.mrf.mxu0  ;;  %v10283_v5 = vpop.f32.mrf.mxu3  ;;  %v1445_v52 = vld [vmem:[#allocation2 + $0x78] sm:$0xf]  ;;  %2924 = vmatpush.bf16.msrb.mxu3 %v9366_v9 }
  0xd1   : > { %1505 = vst [vmem:[#allocation2 + $0x58] sm:$0xf] %v1504_v60  ;;  %2783 = vmatmul.bf16.vlgmr.msra.gmra.mxu1 %v7122_v56  ;;  %v888_v30 = vld [vmem:[#allocation2 + $0xbc] sm:$0xf]  ;;  %v1156_v33 = vadd.f32 %v10235_v45, %v1126_v3  ;;  %v770_v34 = vrot.slane %v769_v23, 4  ;;  %v362_v36 = vsel %vm10060_vm11, 0, %v361_v31 }
  0xd2   : > { %v1393_v10 = vrot.slane %v1391_v61, 7  ;;  %v1469_v58 = vrot.slane %v1391_v61, 4  ;;  %v1470_v12 = vrot.slane %v1394_v0, 5  ;;  %v1332_v14 = vadd.f32 %v10222_v32, %v1303_v1  ;;  %v1506_v32 = vld [vmem:[#allocation2 + $0x70] sm:$0xf]  ;;  %v9407_v2 = vld [vmem:[%s11764_s3 + $0x360] sm:$0xff] }
  0xd3   : > { %v10295_v18 = vpop.f32.mrf.mxu1  ;;  %664 = vst [vmem:[#allocation2 + $0xac] sm:$0xf] %v663_v29  ;;  %v429_v45 = vsel %vm10070_vm14, 0, %v428_v38  ;;  %v889_v44 = vsel %vm10097_vm4, %v770_v34, %v888_v30  ;;  %v563_v20 = vshrl.u32 %v504_v62, 16  ;;  %v566_v56 = vshll.u32 %v504_v62, 16  ;;  %3510 = vmatpush.bf16.msrb.mxu2 %v9407_v2  ;;  %v9399_v15 = vld [vmem:[%s11764_s3 + $0x320] sm:$0xff] }
  0xd4   : > { %v1396_v13 = vor.u32 %v1394_v0, %v1393_v10  ;;  %v1471_v26 = vor.u32 %v1470_v12, %v1469_v58  ;;  %v1349_v27 = vadd.f32 %v10177_v4, %v1332_v14  ;;  %363 = vst [vmem:[#allocation2 + $0xc0] sm:$0x11] %v362_v36  ;;  %v772_v57 = vshrl.u32 %v699_v51, 16  ;;  %v1509_v10 = vld [vmem:[#allocation2 + $0x88] sm:$0xf]  ;;  %v9406_v24 = vld [vmem:[%s11764_s3 + $0x358] sm:$0xff]  ;;  %3481 = vmatpush.bf16.msrb.mxu0 %v9399_v15 }
  0xd5   : > { %890 = vst [vmem:[#allocation2 + $0xbc] sm:$0xf] %v889_v44  ;;  %v565_v3 = vrot.slane %v563_v20, 7  ;;  %v775_v7 = vshll.u32 %v699_v51, 16  ;;  %v468_v14 = vld [vmem:[%s10054_s17 + $0x10] sm:$0xf] }
  0xd6   : > { %v1443_v39 = vsel %vm10082_vm2, %v1396_v13, %v1442_v17  ;;  %v1472_v40 = vrot.slane %v1471_v26, 4  ;;  %v1357_v41 = vpack.c.bf16 %v1349_v27, %v1349_v27  ;;  %430 = vst [vmem:[#allocation2 + $0xd0] sm:$0x88] %v429_v45  ;;  %v774_v6 = vrot.slane %v772_v57, 4  ;;  %v7145_v16 = vld [vmem:[#allocation2 + $0x48] sm:$0xf] }
  0xd7   : > { %1444 = vst [vmem:[#allocation2 + $0x60] sm:$0xf] %v1443_v39  ;;  %v1304_v42 = vpop.f32.mrf.mxu2  ;;  %v9309_v43 = vld [vmem:[#allocation2 + $0x64] sm:$0xf0]  ;;  %v568_v17 = vor.u32 %v566_v56, %v565_v3  ;;  %v777_v23 = vrot.slane %v775_v7, 5  ;;  %3511 = vmatpush.bf16.msrb.mxu2 %v9406_v24  ;;  %v9358_v62 = vld [vmem:[%s11764_s3 + $0x298] sm:$0xff] }
  0xd8   : > { %v1507_v46 = vsel %vm10097_vm4, %v1472_v40, %v1506_v32  ;;  %1365 = vst [vmem:[#allocation2 + $0x80] sm:$0xf] %v1357_v41  ;;  %v1398_v11 = vshrl.u32 %v1357_v41, 16  ;;  %v1401_v21 = vshll.u32 %v1357_v41, 16  ;;  %v1305_v49 = vadd.f32 %v1304_v42, %v1156_v33  ;;  %v1129_v53 = vpop.f32.mrf.mxu0  ;;  %v10316_v55 = vpop.f32.mrf.mxu3  ;;  %v9365_v32 = vld [vmem:[%s11764_s3 + $0x2d0] sm:$0xff]  ;;  %v9398_v51 = vld [vmem:[%s11764_s3 + $0x318] sm:$0xff]  ;;  %2895 = vmatpush.bf16.msrb.mxu1 %v9358_v62 }
  0xd9   : > { %1508 = vst [vmem:[#allocation2 + $0x70] sm:$0xf] %v1507_v46  ;;  %v7154_v54 = vor.u32 %v9309_v43, %v7153_v50  ;;  %v1159_v12 = vadd.f32 %v10272_v37, %v1129_v53  ;;  %v778_v31 = vor.u32 %v777_v23, %v774_v6  ;;  %v469_v33 = vld [vmem:[%s10054_s17 + $0x14] sm:$0xf]  ;;  %v370_v34 = vld [vmem:[#allocation2 + $0x108] sm:$0x11]  ;;  %2925 = vmatpush.bf16.msrb.mxu3 %v9365_v32 }
  0xda   : > { %v1400_v60 = vrot.slane %v1398_v11, 7  ;;  %v1473_v61 = vrot.slane %v1398_v11, 4  ;;  %v1474_v0 = vrot.slane %v1401_v21, 5  ;;  %v1334_v1 = vadd.f32 %v10254_v22, %v1305_v49  ;;  %485 = vst [vmem:[#allocation2 + $0x84] sm:$0xf] %v468_v14  ;;  %3482 = vmatpush.bf16.msrb.mxu0 %v9398_v51 }
  0xdb   : > { %2846 = vmatmul.bf16.gmra.mxu0 %v7154_v54  ;;  %v10325_v8 = vpop.f32.mrf.mxu1  ;;  %v665_v19 = vld [vmem:[#allocation2 + $0xc4] sm:$0xf]  ;;  %v437_v41 = vld [vmem:[#allocation2 + $0x118] sm:$0x88]  ;;  %v1448_v50 = vld [vmem:[#allocation2 + $0x90] sm:$0xf] }
  0xdc   : > { %v1403_v47 = vor.u32 %v1401_v21, %v1400_v60  ;;  %v1475_v22 = vor.u32 %v1474_v0, %v1473_v61  ;;  %v1350_v58 = vadd.f32 %v10177_v4, %v1334_v1  ;;  %v666_v30 = vsel %vm10082_vm2, %v568_v17, %v665_v19  ;;  %486 = vst [vmem:[#allocation2 + $0x9c] sm:$0xf] %v469_v33  ;;  %v505_v59 = vld [vmem:[%s10054_s17 + $0x20] sm:$0xf]  ;;  %v1451_v23 = vld [vmem:[#allocation2 + $0xa8] sm:$0xf] }
  0xdd   : > { %v779_v42 = vrot.slane %v778_v31, 4  ;;  %v371_v44 = vsel %vm10060_vm11, 0, %v370_v34  ;;  %667 = vst [vmem:[#allocation2 + $0xc4] sm:$0xf] %v666_v30  ;;  %v438_v53 = vsel %vm10070_vm14, 0, %v437_v41  ;;  %v570_v1 = vshrl.u32 %v505_v59, 16 }
  0xde   : > { %v1446_v25 = vsel %vm10082_vm2, %v1403_v47, %v1445_v52  ;;  %v1476_v37 = vrot.slane %v1475_v22, 4  ;;  %v1358_v13 = vpack.c.bf16 %v1350_v58, %v1350_v58  ;;  %v9308_v26 = vld [vmem:[#allocation2 + $0x5c] sm:$0xf0]  ;;  %v891_v52 = vld [vmem:[#allocation2 + $0xd4] sm:$0xf]  ;;  %v573_v2 = vshll.u32 %v505_v59, 16 }
  0xdf   : > { %1447 = vst [vmem:[#allocation2 + $0x78] sm:$0xf] %v1446_v25  ;;  %v1307_v27 = vpop.f32.mrf.mxu2  ;;  %v7146_v29 = vor.u32 %v9308_v26, %v7145_v16  ;;  %v700_v60 = vld [vmem:[%s10054_s17 + $0x20] sm:$0xf]  ;;  %v9357_v34 = vld [vmem:[%s11764_s3 + $0x290] sm:$0xff] }
  0xe0   : > { %v1510_v36 = vsel %vm10097_vm4, %v1476_v37, %v1509_v10  ;;  %1366 = vst [vmem:[#allocation2 + $0x98] sm:$0xf] %v1358_v13  ;;  %v1405_v38 = vshrl.u32 %v1358_v13, 16  ;;  %v1408_v39 = vshll.u32 %v1358_v13, 16  ;;  %v1308_v40 = vadd.f32 %v1307_v27, %v1159_v12  ;;  %v1131_v45 = vpop.f32.mrf.mxu0  ;;  %v1746_v43 = vpop.f32.mrf.mxu3  ;;  %v1512_v61 = vld [vmem:[#allocation2 + $0xa0] sm:$0xf]  ;;  %2896 = vmatpush.bf16.msrb.mxu1 %v9357_v34 }
  0xe1   : > { %1511 = vst [vmem:[#allocation2 + $0x88] sm:$0xf] %v1510_v36  ;;  %2788 = vmatmul.bf16.gmra.mxu1 %v7146_v29  ;;  %v1161_v0 = vadd.f32 %v10295_v18, %v1131_v45  ;;  %v7177_v9 = vld [vmem:[#allocation2 + $0x80] sm:$0xf]  ;;  %v781_v47 = vshrl.u32 %v700_v60, 16  ;;  %v1747_v10 = vadd.f32 %v1746_v43, %v10325_v8  ;;  %v572_v12 = vrot.slane %v570_v1, 7 }
  0xe2   : > { %v1407_v46 = vrot.slane %v1405_v38, 7  ;;  %v1477_v11 = vrot.slane %v1405_v38, 4  ;;  %v1478_v21 = vrot.slane %v1408_v39, 5  ;;  %v1337_v49 = vadd.f32 %v10283_v5, %v1308_v40  ;;  %372 = vst [vmem:[#allocation2 + $0x108] sm:$0x11] %v371_v44 }
  0xe3   : > { %v10360_v54 = vpop.f32.mrf.mxu1  ;;  %v892_v5 = vsel %vm10097_vm4, %v779_v42, %v891_v52  ;;  %439 = vst [vmem:[#allocation2 + $0x118] sm:$0x88] %v438_v53  ;;  %v784_v14 = vshll.u32 %v700_v60, 16  ;;  %v9312_v19 = vld [vmem:[#allocation2 + $0x84] sm:$0xf]  ;;  %v575_v37 = vor.u32 %v573_v2, %v572_v12  ;;  %v783_v13 = vrot.slane %v781_v47, 4 }
  0xe4   : > { %v1410_v20 = vor.u32 %v1408_v39, %v1407_v46  ;;  %v1479_v56 = vor.u32 %v1478_v21, %v1477_v11  ;;  %v1351_v57 = vadd.f32 %v10177_v4, %v1337_v49  ;;  %893 = vst [vmem:[#allocation2 + $0xd4] sm:$0xf] %v892_v5  ;;  %v9317_v8 = vld [vmem:[#allocation2 + $0xac] sm:$0xf]  ;;  %v7179_v33 = vld [vmem:[#allocation2 + $0x98] sm:$0xf0] }
  0xe5   : > { %v786_v26 = vrot.slane %v784_v14, 5  ;;  %v1515_v36 = vld [vmem:[#allocation2 + $0xb8] sm:$0xf]  ;;  %v7182_v38 = vor.u32 %v9312_v19, %v7179_v33  ;;  %v10383_v44 = vld [vmem:[%s11765_s4] ss:$0 sm:$0xff] }
  0xe6   : > { %v1449_v3 = vsel %vm10082_vm2, %v1410_v20, %v1448_v50  ;;  %v1480_v6 = vrot.slane %v1479_v56, 4  ;;  %v1359_v7 = vpack.c.bf16 %v1351_v57, %v1351_v57  ;;  %v7195_v50 = vld [vmem:[#allocation2 + $0xc0] sm:$0xf0]  ;;  %v7169_v62 = vld [vmem:[#allocation2 + $0x78] sm:$0xf] }
  0xe7   : > { %1450 = vst [vmem:[#allocation2 + $0x90] sm:$0xf] %v1449_v3  ;;  %v1309_v22 = vpop.f32.mrf.mxu2  ;;  %v9315_v58 = vld [vmem:[#allocation2 + $0x94] sm:$0xf0]  ;;  %v787_v41 = vor.u32 %v786_v26, %v783_v13  ;;  %v373_v46 = vld [vmem:[#allocation2 + $0x120] sm:$0x11]  ;;  %2880 = vmatmul.bf16.gmra.mxu2 %v7182_v38  ;;  %v7198_v51 = vor.u32 %v9317_v8, %v7195_v50 }
  0xe8   : > { %v1513_v18 = vsel %vm10097_vm4, %v1480_v6, %v1512_v61  ;;  %1367 = vst [vmem:[#allocation2 + $0xb0] sm:$0xf] %v1359_v7  ;;  %v1412_v15 = vshrl.u32 %v1359_v7, 16  ;;  %v1415_v16 = vshll.u32 %v1359_v7, 16  ;;  %v1310_v17 = vadd.f32 %v1309_v22, %v1161_v0  ;;  %v1895_v25 = vpop.f32.mrf.mxu0  ;;  %v1748_v32 = vpop.f32.mrf.mxu3  ;;  %v10386_v11 = vld [vmem:[%s10054_s17 + $0x24] sm:$0xf] }
  0xe9   : > { %1514 = vst [vmem:[#allocation2 + $0xa0] sm:$0xf] %v1513_v18  ;;  %v7178_v24 = vor.u32 %v9315_v58, %v7177_v9  ;;  %v1896_v39 = vadd.f32 %v1895_v25, %v1747_v10  ;;  %v668_v40 = vld [vmem:[#allocation2 + $0x10c] sm:$0xf]  ;;  %v788_v49 = vrot.slane %v787_v41, 4  ;;  %2827 = vmatmul.bf16.gmra.mxu3 %v7198_v51  ;;  %v374_v61 = vsel %vm10060_vm11, 0, %v373_v46 }
  0xea   : > { %v1414_v27 = vrot.slane %v1412_v15, 7  ;;  %v1481_v29 = vrot.slane %v1412_v15, 4  ;;  %v1482_v30 = vrot.slane %v1415_v16, 5  ;;  %v1339_v31 = vadd.f32 %v10316_v55, %v1310_v17  ;;  %v440_v57 = vld [vmem:[#allocation2 + $0x130] sm:$0x88] }
  0xeb   : > { %2851 = vmatmul.bf16.gmra.mxu0 %v7178_v24  ;;  %v669_v55 = vsel %vm10082_vm2, %v575_v37, %v668_v40  ;;  %v10388_v21 = vpop.f32.mrf.mxu1  ;;  %v577_v0 = vshrl.u32 %v10386_v11, 16  ;;  %v701_v1 = vld [vmem:[%s10054_s17 + $0x24] sm:$0xf]  ;;  %v470_v9 = vld [vmem:[%s10054_s17 + $0x18] sm:$0xf]  ;;  %v1749_v22 = vadd.f32 %v1748_v32, %v10360_v54  ;;  %v441_v58 = vsel %vm10070_vm14, 0, %v440_v57 }
  0xec   : > { %v1417_v45 = vor.u32 %v1415_v16, %v1414_v27  ;;  %v1483_v42 = vor.u32 %v1482_v30, %v1481_v29  ;;  %v1352_v43 = vadd.f32 %v10177_v4, %v1339_v31  ;;  %670 = vst [vmem:[#allocation2 + $0x10c] sm:$0xf] %v669_v55  ;;  %v894_v4 = vld [vmem:[#allocation2 + $0x11c] sm:$0xf]  ;;  %v1454_v47 = vld [vmem:[#allocation2 + $0xc0] sm:$0xf] }
  0xed   : > { %v895_v5 = vsel %vm10097_vm4, %v788_v49, %v894_v4  ;;  %v790_v12 = vshrl.u32 %v701_v1, 16  ;;  %v793_v14 = vshll.u32 %v701_v1, 16  ;;  %v9405_v15 = vld [vmem:[%s11764_s3 + $0x350] sm:$0xff]  ;;  %v9364_v54 = vld [vmem:[%s11764_s3 + $0x2c8] sm:$0xff]  ;;  %375 = vst [vmem:[#allocation2 + $0x120] sm:$0x11] %v374_v61 }
  0xee   : > { %v1452_v52 = vsel %vm10082_vm2, %v1417_v45, %v1451_v23  ;;  %v1484_v53 = vrot.slane %v1483_v42, 4  ;;  %v1360_v20 = vpack.c.bf16 %v1352_v43, %v1352_v43  ;;  %v9314_v56 = vld [vmem:[#allocation2 + $0x8c] sm:$0xf0]  ;;  %896 = vst [vmem:[#allocation2 + $0x11c] sm:$0xf] %v895_v5  ;;  %v579_v25 = vrot.slane %v577_v0, 7  ;;  %3512 = vmatpush.bf16.msrb.mxu2 %v9405_v15  ;;  %2926 = vmatpush.bf16.msrb.mxu3 %v9364_v54 }
  0xef   : > { %1453 = vst [vmem:[#allocation2 + $0xa8] sm:$0xf] %v1452_v52  ;;  %v1924_v59 = vpop.f32.mrf.mxu2  ;;  %v7170_v60 = vor.u32 %v9314_v56, %v7169_v62  ;;  %v1518_v24 = vld [vmem:[#allocation2 + $0xd0] sm:$0xf]  ;;  %v580_v37 = vshll.u32 %v10386_v11, 16  ;;  %v792_v13 = vrot.slane %v790_v12, 4 }
  0xf0   : > { %v1516_v2 = vsel %vm10097_vm4, %v1484_v53, %v1515_v36  ;;  %1368 = vst [vmem:[#allocation2 + $0xc8] sm:$0xf] %v1360_v20  ;;  %v1419_v3 = vshrl.u32 %v1360_v20, 16  ;;  %v1422_v6 = vshll.u32 %v1360_v20, 16  ;;  %v1925_v7 = vadd.f32 %v1924_v59, %v1896_v39  ;;  %v1897_v10 = vpop.f32.mrf.mxu0  ;;  %v1751_v18 = vpop.f32.mrf.mxu3  ;;  %v471_v29 = vld [vmem:[%s10054_s17 + $0x1c] sm:$0xf] }
  0xf1   : > { %1517 = vst [vmem:[#allocation2 + $0xb8] sm:$0xf] %v1516_v2  ;;  %2793 = vmatmul.bf16.gmra.mxu1 %v7170_v60  ;;  %v795_v26 = vrot.slane %v793_v14, 5  ;;  %v9397_v30 = vld [vmem:[%s11764_s3 + $0x310] sm:$0xff]  ;;  %v9356_v31 = vld [vmem:[%s11764_s3 + $0x288] sm:$0xff]  ;;  %v1898_v55 = vadd.f32 %v1897_v10, %v1749_v22  ;;  %v582_v62 = vor.u32 %v580_v37, %v579_v25  ;;  %v9363_v56 = vld [vmem:[%s11764_s3 + $0x2c0] sm:$0xff]  ;;  %v1752_v5 = vadd.f32 %v1751_v18, %v10388_v21 }
  0xf2   : > { %v1421_v16 = vrot.slane %v1419_v3, 7  ;;  %v1485_v17 = vrot.slane %v1419_v3, 4  ;;  %v1486_v19 = vrot.slane %v1422_v6, 5  ;;  %v1948_v23 = vadd.f32 %v10383_v44, %v1925_v7  ;;  %442 = vst [vmem:[#allocation2 + $0x130] sm:$0x88] %v441_v58  ;;  %3483 = vmatpush.bf16.msrb.mxu0 %v9397_v30  ;;  %2897 = vmatpush.bf16.msrb.mxu1 %v9356_v31  ;;  %v9404_v42 = vld [vmem:[%s11764_s3 + $0x348] sm:$0xff] }
  0xf3   : > { %v796_v33 = vor.u32 %v795_v26, %v792_v13  ;;  %487 = vst [vmem:[#allocation2 + $0xb4] sm:$0xf] %v470_v9  ;;  %v376_v34 = vld [vmem:[#allocation2 + $0x138] sm:$0x11]  ;;  %v443_v36 = vld [vmem:[#allocation2 + $0x148] sm:$0x88]  ;;  %v1724_v45 = vpop.f32.mrf.mxu1  ;;  %3513 = vmatpush.bf16.msrb.mxu2 %v9404_v42  ;;  %2927 = vmatpush.bf16.msrb.mxu3 %v9363_v56 }
  0xf4   : > { %v1424_v32 = vor.u32 %v1422_v6, %v1421_v16  ;;  %v1487_v8 = vor.u32 %v1486_v19, %v1485_v17  ;;  %v1956_v27 = vpack.c.bf16 %v1948_v23, %v1948_v23  ;;  %v7201_v50 = vld [vmem:[#allocation2 + $0xb0] sm:$0xf]  ;;  %v2037_v43 = vld [vmem:[#allocation2 + $0x108] sm:$0xf]  ;;  %v377_v4 = vsel %vm10060_vm11, 0, %v376_v34  ;;  %v9403_v23 = vld [vmem:[%s11764_s3 + $0x340] sm:$0xff] }
  0xf5   : > { %v797_v46 = vrot.slane %v796_v33, 4  ;;  %488 = vst [vmem:[#allocation2 + $0xcc] sm:$0xf] %v471_v29  ;;  %v444_v61 = vsel %vm10070_vm14, 0, %v443_v36  ;;  %v507_v0 = vld [vmem:[%s10054_s17 + $0x28] sm:$0xf] }
  0xf6   : > { %v1455_v38 = vsel %vm10082_vm2, %v1424_v32, %v1454_v47  ;;  %v1488_v39 = vrot.slane %v1487_v8, 4  ;;  %1965 = vst [vmem:[#allocation2 + $0x110] sm:$0xf] %v1956_v27  ;;  %v1974_v40 = vshrl.u32 %v1956_v27, 16  ;;  %v1977_v41 = vshll.u32 %v1956_v27, 16  ;;  %v9396_v2 = vld [vmem:[%s11764_s3 + $0x308] sm:$0xff] }
  0xf7   : > { %1456 = vst [vmem:[#allocation2 + $0xc0] sm:$0xf] %v1455_v38  ;;  %v1926_v11 = vpop.f32.mrf.mxu2  ;;  %v9321_v49 = vld [vmem:[#allocation2 + $0xc4] sm:$0xf0]  ;;  %v671_v7 = vld [vmem:[#allocation2 + $0x124] sm:$0xf]  ;;  %3484 = vmatpush.bf16.msrb.mxu0 %v9396_v2  ;;  %3514 = vmatpush.bf16.msrb.mxu2 %v9403_v23 }
  0xf8   : > { %v1519_v51 = vsel %vm10097_vm4, %v1488_v39, %v1518_v24  ;;  %v1976_v52 = vrot.slane %v1974_v40, 7  ;;  %v2061_v53 = vrot.slane %v1974_v40, 4  ;;  %v2062_v20 = vrot.slane %v1977_v41, 5  ;;  %v1900_v60 = vpop.f32.mrf.mxu0  ;;  %v1753_v1 = vpop.f32.mrf.mxu3  ;;  %378 = vst [vmem:[#allocation2 + $0x138] sm:$0x11] %v377_v4  ;;  %v9355_v13 = vld [vmem:[%s11764_s3 + $0x280] sm:$0xff] }
  0xf9   : > { %1520 = vst [vmem:[#allocation2 + $0xd0] sm:$0xf] %v1519_v51  ;;  %v1927_v57 = vadd.f32 %v1926_v11, %v1898_v55  ;;  %v7202_v59 = vor.u32 %v9321_v49, %v7201_v50  ;;  %v2101_v9 = vld [vmem:[#allocation2 + $0x118] sm:$0xf]  ;;  %v672_v47 = vsel %vm10082_vm2, %v582_v62, %v671_v7  ;;  %v897_v21 = vld [vmem:[#allocation2 + $0x134] sm:$0xf]  ;;  %v1901_v16 = vadd.f32 %v1900_v60, %v1752_v5 }
  0xfa   : > { %v1979_v3 = vor.u32 %v1977_v41, %v1976_v52  ;;  %v2063_v6 = vor.u32 %v2062_v20, %v2061_v53  ;;  %445 = vst [vmem:[#allocation2 + $0x148] sm:$0x88] %v444_v61  ;;  %v898_v12 = vsel %vm10097_vm4, %v797_v46, %v897_v21  ;;  %v9318_v14 = vld [vmem:[#allocation2 + $0xb4] sm:$0xf]  ;;  %v584_v18 = vshrl.u32 %v507_v0, 16  ;;  %2898 = vmatpush.bf16.msrb.mxu1 %v9355_v13  ;;  %v9434_v13 = vld [vmem:[%s11764_s3 + $0x438] sm:$0xff] }
  0xfb   : > { %v1949_v22 = vadd.f32 %v10383_v44, %v1927_v57  ;;  %2856 = vmatmul.bf16.gmra.mxu0 %v7202_v59  ;;  %673 = vst [vmem:[#allocation2 + $0x124] sm:$0xf] %v672_v47  ;;  %v587_v17 = vshll.u32 %v507_v0, 16  ;;  %v702_v19 = vld [vmem:[%s10054_s17 + $0x28] sm:$0xf]  ;;  %v1754_v29 = vadd.f32 %v1753_v1, %v1724_v45  ;;  %v1727_v38 = vpop.f32.mrf.mxu1  ;;  %v9395_v45 = vld [vmem:[%s11764_s3 + $0x300] sm:$0xff] }
  0xfc   : > { %v2038_v10 = vsel %vm10082_vm2, %v1979_v3, %v2037_v43  ;;  %v2064_v58 = vrot.slane %v2063_v6, 4  ;;  %899 = vst [vmem:[#allocation2 + $0x134] sm:$0xf] %v898_v12  ;;  %v586_v24 = vrot.slane %v584_v18, 7  ;;  %v799_v25 = vshrl.u32 %v702_v19, 16  ;;  %3485 = vmatpush.bf16.msrb.mxu0 %v9395_v45  ;;  %v9426_v0 = vld [vmem:[%s11764_s3 + $0x3f8] sm:$0xff] }
  0xfd   : > { %2039 = vst [vmem:[#allocation2 + $0x108] sm:$0xf] %v2038_v10  ;;  %v1957_v15 = vpack.c.bf16 %v1949_v22, %v1949_v22  ;;  %v802_v37 = vshll.u32 %v702_v19, 16  ;;  %v7203_v8 = vld [vmem:[#allocation2 + $0xc8] sm:$0xf0]  ;;  %v9418_v47 = vld [vmem:[%s11764_s3 + $0x3b8] sm:$0xff]  ;;  %3565 = vmatpush.bf16.msra.mxu3 %v9426_v0 }
  0xfe   : > { %v2102_v54 = vsel %vm10097_vm4, %v2064_v58, %v2101_v9  ;;  %v2040_v30 = vld [vmem:[#allocation2 + $0x120] sm:$0xf]  ;;  %v7206_v31 = vor.u32 %v9318_v14, %v7203_v8  ;;  %v589_v33 = vor.u32 %v587_v17, %v586_v24  ;;  %v801_v34 = vrot.slane %v799_v25, 4  ;;  %v2104_v62 = vld [vmem:[#allocation2 + $0x130] sm:$0xf]  ;;  %v9442_v12 = vld [vmem:[%s11764_s3 + $0x478] sm:$0xff]  ;;  %3536 = vmatpush.bf16.msra.mxu1 %v9418_v47 }
  0xff   : > { %2103 = vst [vmem:[#allocation2 + $0x118] sm:$0xf] %v2102_v54  ;;  %v1981_v26 = vshrl.u32 %v1957_v15, 16  ;;  %v1984_v32 = vshll.u32 %v1957_v15, 16  ;;  %v1929_v27 = vpop.f32.mrf.mxu2  ;;  %v804_v36 = vrot.slane %v802_v37, 5  ;;  %v9425_v19 = vld [vmem:[%s11764_s3 + $0x3f0] sm:$0xff]  ;;  %3623 = vmatpush.bf16.msra.mxu2 %v9442_v12 }
 0x100   : > { %1966 = vst [vmem:[#allocation2 + $0x128] sm:$0xf] %v1957_v15  ;;  %v674_v50 = vld [vmem:[#allocation2 + $0x13c] sm:$0xf]  ;;  %v1930_v42 = vadd.f32 %v1929_v27, %v1901_v16  ;;  %v1902_v43 = vpop.f32.mrf.mxu0  ;;  %v1756_v55 = vpop.f32.mrf.mxu3  ;;  %2885 = vmatmul.bf16.gmra.mxu2 %v7206_v31  ;;  %v7193_v4 = vld [vmem:[#allocation2 + $0xa8] sm:$0xf]  ;;  %3594 = vmatpush.bf16.msra.mxu0 %v9434_v13 }
 0x101   : > { %v1983_v39 = vrot.slane %v1981_v26, 7  ;;  %v2065_v40 = vrot.slane %v1981_v26, 4  ;;  %v2066_v41 = vrot.slane %v1984_v32, 5  ;;  %v675_v46 = vsel %vm10082_vm2, %v589_v33, %v674_v50  ;;  %v900_v49 = vld [vmem:[#allocation2 + $0x14c] sm:$0xf]  ;;  %3566 = vmatpush.bf16.msra.mxu3 %v9425_v19 }
 0x102   : > { %v805_v11 = vor.u32 %v804_v36, %v801_v34  ;;  %676 = vst [vmem:[#allocation2 + $0x13c] sm:$0xf] %v675_v46  ;;  %v1950_v53 = vadd.f32 %v10383_v44, %v1930_v42  ;;  %v9320_v20 = vld [vmem:[#allocation2 + $0xbc] sm:$0xf0]  ;;  %v9301_v56 = vld [vmem:[#allocation2 + $0x2c] sm:$0xf]  ;;  %v1903_v59 = vadd.f32 %v1902_v43, %v1754_v29  ;;  %v1757_v37 = vadd.f32 %v1756_v55, %v1727_v38 }
 0x103   : > { %v1986_v51 = vor.u32 %v1984_v32, %v1983_v39  ;;  %v2067_v52 = vor.u32 %v2066_v41, %v2065_v40  ;;  %v7194_v5 = vor.u32 %v9320_v20, %v7193_v4  ;;  %v7139_v60 = vld [vmem:[#allocation2 + $0x40] sm:$0xf0]  ;;  %v379_v61 = vld [vmem:[#allocation2 + $0x150] sm:$0x11]  ;;  %v508_v9 = vld [vmem:[%s10054_s17 + $0x2c] sm:$0xf]  ;;  %v1729_v36 = vpop.f32.mrf.mxu1 }
 0x104   : > { %v806_v57 = vrot.slane %v805_v11, 4  ;;  %v1958_v3 = vpack.c.bf16 %v1950_v53, %v1950_v53  ;;  %v7142_v6 = vor.u32 %v9301_v56, %v7139_v60  ;;  %v446_v7 = vld [vmem:[#allocation2 + $0x160] sm:$0x88]  ;;  %v380_v22 = vsel %vm10060_vm11, 0, %v379_v61  ;;  %v2043_v23 = vld [vmem:[#allocation2 + $0x138] sm:$0xf] }
 0x105   : > { %v2041_v1 = vsel %vm10082_vm2, %v1986_v51, %v2040_v30  ;;  %v2068_v2 = vrot.slane %v2067_v52, 4  ;;  %2798 = vmatmul.bf16.gmra.mxu1 %v7194_v5  ;;  %v447_v10 = vsel %vm10070_vm14, 0, %v446_v7  ;;  %v591_v58 = vshrl.u32 %v508_v9, 16  ;;  %v703_v24 = vld [vmem:[%s10054_s17 + $0x2c] sm:$0xf]  ;;  %v9417_v38 = vld [vmem:[%s11764_s3 + $0x3b0] sm:$0xff] }
 0x106   : > { %2042 = vst [vmem:[#allocation2 + $0x120] sm:$0xf] %v2041_v1  ;;  %v901_v21 = vsel %vm10097_vm4, %v806_v57, %v900_v49  ;;  %v1988_v18 = vshrl.u32 %v1958_v3, 16  ;;  %v1991_v15 = vshll.u32 %v1958_v3, 16  ;;  %2928 = vmatmul.bf16.vlgmr.msrb.gmra.mxu3 %v7142_v6  ;;  %v594_v16 = vshll.u32 %v508_v9, 16  ;;  %v9441_v43 = vld [vmem:[%s11764_s3 + $0x470] sm:$0xff]  ;;  %3537 = vmatpush.bf16.msra.mxu1 %v9417_v38 }
 0x107   : > { %v2105_v14 = vsel %vm10097_vm4, %v2068_v2, %v2104_v62  ;;  %902 = vst [vmem:[#allocation2 + $0x14c] sm:$0xf] %v901_v21  ;;  %v1931_v17 = vpop.f32.mrf.mxu2  ;;  %v593_v54 = vrot.slane %v591_v58, 7  ;;  %v808_v27 = vshrl.u32 %v703_v24, 16  ;;  %v2107_v30 = vld [vmem:[#allocation2 + $0x148] sm:$0xf]  ;;  %3624 = vmatpush.bf16.msra.mxu2 %v9441_v43 }
 0x108   : > { %2106 = vst [vmem:[#allocation2 + $0x130] sm:$0xf] %v2105_v14  ;;  %v1932_v25 = vadd.f32 %v1931_v17, %v1903_v59  ;;  %v1990_v26 = vrot.slane %v1988_v18, 7  ;;  %v2069_v32 = vrot.slane %v1988_v18, 4  ;;  %v2070_v8 = vrot.slane %v1991_v15, 5  ;;  %v1905_v29 = vpop.f32.mrf.mxu0  ;;  %v1758_v42 = vpop.f32.mrf.mxu3  ;;  %v9424_v4 = vld [vmem:[%s11764_s3 + $0x3e8] sm:$0xff] }
 0x109   : > { %1967 = vst [vmem:[#allocation2 + $0x140] sm:$0xf] %v1958_v3  ;;  %v811_v31 = vshll.u32 %v703_v24, 16  ;;  %v9371_v34 = vld [vmem:[#allocation2 + $0x10c] sm:$0xf]  ;;  %v810_v41 = vrot.slane %v808_v27, 4  ;;  %v596_v55 = vor.u32 %v594_v16, %v593_v54  ;;  %v1906_v46 = vadd.f32 %v1905_v29, %v1757_v37  ;;  %3567 = vmatpush.bf16.msra.mxu3 %v9424_v4 }
 0x10a   : > { %381 = vst [vmem:[#allocation2 + $0x150] sm:$0x11] %v380_v22  ;;  %v1951_v33 = vadd.f32 %v10383_v44, %v1932_v25  ;;  %v1993_v39 = vor.u32 %v1991_v15, %v1990_v26  ;;  %v2071_v40 = vor.u32 %v2070_v8, %v2069_v32  ;;  %v7507_v50 = vld [vmem:[#allocation2 + $0x120] sm:$0xf0]  ;;  %v382_v11 = vld [vmem:[#allocation2 + $0x168] sm:$0x11]  ;;  %v1759_v12 = vadd.f32 %v1758_v42, %v1729_v36 }
 0x10b   : > { %448 = vst [vmem:[#allocation2 + $0x160] sm:$0x88] %v447_v10  ;;  %v813_v45 = vrot.slane %v811_v31, 5  ;;  %v449_v49 = vld [vmem:[#allocation2 + $0x178] sm:$0x88]  ;;  %v7510_v53 = vor.u32 %v9371_v34, %v7507_v50  ;;  %v383_v20 = vsel %vm10060_vm11, 0, %v382_v11  ;;  %v1732_v27 = vpop.f32.mrf.mxu1 }
 0x10c   : > { %v1959_v62 = vpack.c.bf16 %v1951_v33, %v1951_v33  ;;  %v2044_v51 = vsel %vm10082_vm2, %v1993_v39, %v2043_v23  ;;  %v2072_v52 = vrot.slane %v2071_v40, 4  ;;  %v509_v56 = vld [vmem:[%s10054_s17 + $0x30] sm:$0xf]  ;;  %v450_v61 = vsel %vm10070_vm14, 0, %v449_v49  ;;  %384 = vst [vmem:[#allocation2 + $0x168] sm:$0x11] %v383_v20 }
 0x10d   : > { %v9433_v57 = vld [vmem:[%s11764_s3 + $0x430] sm:$0xff]  ;;  %2045 = vst [vmem:[#allocation2 + $0x138] sm:$0xf] %v2044_v51  ;;  %v814_v5 = vor.u32 %v813_v45, %v810_v41  ;;  %v598_v1 = vshrl.u32 %v509_v56, 16  ;;  %v601_v2 = vshll.u32 %v509_v56, 16  ;;  %v9416_v37 = vld [vmem:[%s11764_s3 + $0x3a8] sm:$0xff] }
 0x10e   : > { %v1995_v59 = vshrl.u32 %v1959_v62, 16  ;;  %v1998_v60 = vshll.u32 %v1959_v62, 16  ;;  %v2108_v0 = vsel %vm10097_vm4, %v2072_v52, %v2107_v30  ;;  %1968 = vst [vmem:[#allocation2 + $0x158] sm:$0xf] %v1959_v62  ;;  %v704_v3 = vld [vmem:[%s10054_s17 + $0x30] sm:$0xf]  ;;  %3595 = vmatpush.bf16.msra.mxu0 %v9433_v57  ;;  %3538 = vmatpush.bf16.msra.mxu1 %v9416_v37 }
 0x10f   : > { %v1934_v6 = vpop.f32.mrf.mxu2  ;;  %2109 = vst [vmem:[#allocation2 + $0x148] sm:$0xf] %v2108_v0  ;;  %v815_v7 = vrot.slane %v814_v5, 4  ;;  %v600_v54 = vrot.slane %v598_v1, 7  ;;  %v817_v24 = vshrl.u32 %v704_v3, 16  ;;  %v820_v25 = vshll.u32 %v704_v3, 16 }
 0x110   : > { %v1997_v9 = vrot.slane %v1995_v59, 7  ;;  %v2073_v47 = vrot.slane %v1995_v59, 4  ;;  %v2074_v21 = vrot.slane %v1998_v60, 5  ;;  %v1935_v58 = vadd.f32 %v1934_v6, %v1906_v46  ;;  %v1907_v14 = vpop.f32.mrf.mxu0  ;;  %3515 = vmatmul.bf16.vlgmr.msrb.gmra.mxu2 %v7510_v53  ;;  %451 = vst [vmem:[#allocation2 + $0x178] sm:$0x88] %v450_v61  ;;  %v9440_v29 = vld [vmem:[%s11764_s3 + $0x468] sm:$0xff]  ;;  %v1761_v36 = vpop.f32.mrf.mxu3 }
 0x111   : > { %v677_v22 = vld [vmem:[#allocation2 + $0x154] sm:$0xf]  ;;  %v2046_v10 = vld [vmem:[#allocation2 + $0x150] sm:$0xf]  ;;  %v7505_v8 = vld [vmem:[#allocation2 + $0x108] sm:$0xf]  ;;  %v603_v30 = vor.u32 %v601_v2, %v600_v54  ;;  %v1908_v42 = vadd.f32 %v1907_v14, %v1759_v12  ;;  %3625 = vmatpush.bf16.msra.mxu2 %v9440_v29  ;;  %v1762_v49 = vadd.f32 %v1761_v36, %v1732_v27 }
 0x112   : > { %v678_v18 = vsel %vm10082_vm2, %v596_v55, %v677_v22  ;;  %v903_v15 = vld [vmem:[#allocation2 + $0x164] sm:$0xf]  ;;  %v2000_v16 = vor.u32 %v1998_v60, %v1997_v9  ;;  %v2075_v17 = vor.u32 %v2074_v21, %v2073_v47  ;;  %v2110_v19 = vld [vmem:[#allocation2 + $0x160] sm:$0xf]  ;;  %v1952_v32 = vadd.f32 %v10383_v44, %v1935_v58  ;;  %v7137_v41 = vld [vmem:[#allocation2 + $0x28] sm:$0xf] }
 0x113   : > { %679 = vst [vmem:[#allocation2 + $0x154] sm:$0xf] %v678_v18  ;;  %v904_v23 = vsel %vm10097_vm4, %v815_v7, %v903_v15  ;;  %v819_v31 = vrot.slane %v817_v24, 4  ;;  %v822_v33 = vrot.slane %v820_v25, 5  ;;  %v9374_v34 = vld [vmem:[#allocation2 + $0x11c] sm:$0xf0]  ;;  %v1734_v25 = vpop.f32.mrf.mxu1 }
 0x114   : > { %905 = vst [vmem:[#allocation2 + $0x164] sm:$0xf] %v904_v23  ;;  %v2047_v13 = vsel %vm10082_vm2, %v2000_v16, %v2046_v10  ;;  %v2076_v26 = vrot.slane %v2075_v17, 4  ;;  %v1960_v39 = vpack.c.bf16 %v1952_v32, %v1952_v32  ;;  %v7506_v40 = vor.u32 %v9374_v34, %v7505_v8  ;;  %v9304_v50 = vld [vmem:[#allocation2 + $0x3c] sm:$0xf0]  ;;  %v9432_v18 = vld [vmem:[%s11764_s3 + $0x428] sm:$0xff] }
 0x115   : > { %2048 = vst [vmem:[#allocation2 + $0x150] sm:$0xf] %v2047_v13  ;;  %v9307_v43 = vld [vmem:[#allocation2 + $0x5c] sm:$0xf]  ;;  %v823_v55 = vor.u32 %v822_v33, %v819_v31  ;;  %v7138_v45 = vor.u32 %v9304_v50, %v7137_v41  ;;  %v7163_v62 = vld [vmem:[#allocation2 + $0x70] sm:$0xf0]  ;;  %3596 = vmatpush.bf16.msra.mxu0 %v9432_v18 }
 0x116   : > { %v2111_v38 = vsel %vm10097_vm4, %v2076_v26, %v2110_v19  ;;  %v385_v46 = vld [vmem:[#allocation2 + $0x180] sm:$0x11]  ;;  %v680_v4 = vld [vmem:[#allocation2 + $0x16c] sm:$0xf]  ;;  %1969 = vst [vmem:[#allocation2 + $0x170] sm:$0xf] %v1960_v39  ;;  %3486 = vmatmul.bf16.vlgmr.msrb.gmra.mxu0 %v7506_v40  ;;  %v7166_v53 = vor.u32 %v9307_v43, %v7163_v62 }
 0x117   : > { %2112 = vst [vmem:[#allocation2 + $0x160] sm:$0xf] %v2111_v38  ;;  %v1936_v11 = vpop.f32.mrf.mxu2  ;;  %v2002_v51 = vshrl.u32 %v1960_v39, 16  ;;  %v2005_v52 = vshll.u32 %v1960_v39, 16  ;;  %v681_v56 = vsel %vm10082_vm2, %v603_v30, %v680_v4  ;;  %v824_v57 = vrot.slane %v823_v55, 4  ;;  %2899 = vmatmul.bf16.vlgmr.msrb.gmra.mxu1 %v7138_v45  ;;  %v9423_v6 = vld [vmem:[%s11764_s3 + $0x3e0] sm:$0xff] }
 0x118   : > { %v1937_v20 = vadd.f32 %v1936_v11, %v1908_v42  ;;  %v906_v5 = vld [vmem:[#allocation2 + $0x17c] sm:$0xf]  ;;  %v2049_v59 = vld [vmem:[#allocation2 + $0x168] sm:$0xf]  ;;  %v386_v60 = vsel %vm10060_vm11, 0, %v385_v46  ;;  %v1910_v61 = vpop.f32.mrf.mxu0  ;;  %2933 = vmatmul.bf16.gmra.mxu3 %v7166_v53  ;;  %v9415_v37 = vld [vmem:[%s11764_s3 + $0x3a0] sm:$0xff]  ;;  %v1763_v27 = vpop.f32.mrf.mxu3 }
 0x119   : > { %682 = vst [vmem:[#allocation2 + $0x16c] sm:$0xf] %v681_v56  ;;  %v2004_v0 = vrot.slane %v2002_v51, 7  ;;  %v2077_v1 = vrot.slane %v2002_v51, 4  ;;  %v2078_v2 = vrot.slane %v2005_v52, 5  ;;  %v907_v7 = vsel %vm10097_vm4, %v824_v57, %v906_v5  ;;  %3568 = vmatpush.bf16.msra.mxu3 %v9423_v6  ;;  %v9439_v29 = vld [vmem:[%s11764_s3 + $0x460] sm:$0xff]  ;;  %3539 = vmatpush.bf16.msra.mxu1 %v9415_v37 }
 0x11a   : > { %v1953_v3 = vadd.f32 %v10383_v44, %v1937_v20  ;;  %v2113_v9 = vld [vmem:[#allocation2 + $0x178] sm:$0xf]  ;;  %387 = vst [vmem:[#allocation2 + $0x180] sm:$0x11] %v386_v60  ;;  %v452_v47 = vld [vmem:[#allocation2 + $0x190] sm:$0x88]  ;;  %v1911_v21 = vadd.f32 %v1910_v61, %v1762_v49  ;;  %3626 = vmatpush.bf16.msra.mxu2 %v9439_v29  ;;  %v1764_v49 = vadd.f32 %v1763_v27, %v1734_v25 }
 0x11b   : > { %908 = vst [vmem:[#allocation2 + $0x17c] sm:$0xf] %v907_v7  ;;  %v2007_v22 = vor.u32 %v2005_v52, %v2004_v0  ;;  %v2079_v10 = vor.u32 %v2078_v2, %v2077_v1  ;;  %v453_v58 = vsel %vm10070_vm14, 0, %v452_v47  ;;  %v510_v12 = vld [vmem:[%s10054_s17 + $0x34] sm:$0xf]  ;;  %v9422_v42 = vld [vmem:[%s11764_s3 + $0x3d8] sm:$0xff] }
 0x11c   : > { %v1961_v14 = vpack.c.bf16 %v1953_v3, %v1953_v3  ;;  %454 = vst [vmem:[#allocation2 + $0x190] sm:$0x88] %v453_v58  ;;  %v605_v15 = vshrl.u32 %v510_v12, 16  ;;  %v608_v16 = vshll.u32 %v510_v12, 16  ;;  %v705_v17 = vld [vmem:[%s10054_s17 + $0x34] sm:$0xf] }
 0x11d   : > { %v2050_v19 = vsel %vm10082_vm2, %v2007_v22, %v2049_v59  ;;  %v2080_v23 = vrot.slane %v2079_v10, 4  ;;  %v826_v54 = vshrl.u32 %v705_v17, 16  ;;  %v829_v24 = vshll.u32 %v705_v17, 16  ;;  %v9377_v34 = vld [vmem:[#allocation2 + $0x13c] sm:$0xf]  ;;  %3569 = vmatpush.bf16.msra.mxu3 %v9422_v42  ;;  %v9431_v5 = vld [vmem:[%s11764_s3 + $0x420] sm:$0xff] }
 0x11e   : > { %1970 = vst [vmem:[#allocation2 + $0x188] sm:$0xf] %v1961_v14  ;;  %v607_v13 = vrot.slane %v605_v15, 7  ;;  %v2009_v26 = vshrl.u32 %v1961_v14, 16  ;;  %v2012_v32 = vshll.u32 %v1961_v14, 16  ;;  %3597 = vmatpush.bf16.msra.mxu0 %v9431_v5  ;;  %v9414_v15 = vld [vmem:[%s11764_s3 + $0x398] sm:$0xff] }
 0x11f   : > { %2051 = vst [vmem:[#allocation2 + $0x168] sm:$0xf] %v2050_v19  ;;  %v1939_v8 = vpop.f32.mrf.mxu2  ;;  %v2114_v30 = vsel %vm10097_vm4, %v2080_v23, %v2113_v9  ;;  %v828_v31 = vrot.slane %v826_v54, 4  ;;  %v831_v33 = vrot.slane %v829_v24, 5  ;;  %v7531_v36 = vld [vmem:[#allocation2 + $0x150] sm:$0xf0]  ;;  %3540 = vmatpush.bf16.msra.mxu1 %v9414_v15 }
 0x120   : > { %v1940_v38 = vadd.f32 %v1939_v8, %v1911_v21  ;;  %2115 = vst [vmem:[#allocation2 + $0x178] sm:$0xf] %v2114_v30  ;;  %v610_v39 = vor.u32 %v608_v16, %v607_v13  ;;  %v2011_v40 = vrot.slane %v2009_v26, 7  ;;  %v2081_v41 = vrot.slane %v2009_v26, 4  ;;  %v388_v46 = vld [vmem:[#allocation2 + $0x198] sm:$0x11]  ;;  %v1912_v57 = vpop.f32.mrf.mxu0 }
 0x121   : > { %v2082_v50 = vrot.slane %v2012_v32, 5  ;;  %v683_v43 = vld [vmem:[#allocation2 + $0x184] sm:$0xf]  ;;  %v832_v55 = vor.u32 %v831_v33, %v828_v31  ;;  %v2052_v45 = vld [vmem:[#allocation2 + $0x180] sm:$0xf]  ;;  %v7534_v62 = vor.u32 %v9377_v34, %v7531_v36  ;;  %v389_v53 = vsel %vm10060_vm11, 0, %v388_v46 }
 0x122   : > { %v1954_v11 = vadd.f32 %v10383_v44, %v1940_v38  ;;  %v684_v4 = vsel %vm10082_vm2, %v610_v39, %v683_v43  ;;  %v2014_v51 = vor.u32 %v2012_v32, %v2011_v40  ;;  %v455_v20 = vld [vmem:[#allocation2 + $0x1a8] sm:$0x88]  ;;  %v511_v56 = vld [vmem:[%s10054_s17 + $0x38] sm:$0xf]  ;;  %390 = vst [vmem:[#allocation2 + $0x198] sm:$0x11] %v389_v53  ;;  %v1913_v22 = vadd.f32 %v1912_v57, %v1764_v49 }
 0x123   : > { %v2083_v52 = vor.u32 %v2082_v50, %v2081_v41  ;;  %685 = vst [vmem:[#allocation2 + $0x184] sm:$0xf] %v684_v4  ;;  %v833_v59 = vrot.slane %v832_v55, 4  ;;  %v909_v60 = vld [vmem:[#allocation2 + $0x194] sm:$0xf]  ;;  %3520 = vmatmul.bf16.gmra.mxu2 %v7534_v62  ;;  %v456_v61 = vsel %vm10070_vm14, 0, %v455_v20 }
 0x124   : > { %v1962_v0 = vpack.c.bf16 %v1954_v11, %v1954_v11  ;;  %v2053_v1 = vsel %vm10082_vm2, %v2014_v51, %v2052_v45  ;;  %v2116_v3 = vld [vmem:[#allocation2 + $0x190] sm:$0xf]  ;;  %v612_v6 = vshrl.u32 %v511_v56, 16  ;;  %v615_v9 = vshll.u32 %v511_v56, 16  ;;  %v706_v47 = vld [vmem:[%s10054_s17 + $0x38] sm:$0xf] }
 0x125   : > { %v2084_v2 = vrot.slane %v2083_v52, 4  ;;  %v910_v7 = vsel %vm10097_vm4, %v833_v59, %v909_v60  ;;  %2054 = vst [vmem:[#allocation2 + $0x180] sm:$0xf] %v2053_v1  ;;  %v835_v12 = vshrl.u32 %v706_v47, 16  ;;  %v838_v14 = vshll.u32 %v706_v47, 16  ;;  %v9438_v54 = vld [vmem:[%s11764_s3 + $0x458] sm:$0xff] }
 0x126   : > { %v2016_v21 = vshrl.u32 %v1962_v0, 16  ;;  %911 = vst [vmem:[#allocation2 + $0x194] sm:$0xf] %v910_v7  ;;  %v614_v58 = vrot.slane %v612_v6, 7  ;;  %v2019_v17 = vshll.u32 %v1962_v0, 16  ;;  %3627 = vmatpush.bf16.msra.mxu2 %v9438_v54  ;;  %v9421_v29 = vld [vmem:[%s11764_s3 + $0x3d0] sm:$0xff] }
 0x127   : > { %v2117_v10 = vsel %vm10097_vm4, %v2084_v2, %v2116_v3  ;;  %v1941_v18 = vpop.f32.mrf.mxu2  ;;  %457 = vst [vmem:[#allocation2 + $0x1a8] sm:$0x88] %v456_v61  ;;  %v837_v25 = vrot.slane %v835_v12, 4  ;;  %v840_v37 = vrot.slane %v838_v14, 5  ;;  %v7529_v13 = vld [vmem:[#allocation2 + $0x138] sm:$0xf]  ;;  %3570 = vmatpush.bf16.msra.mxu3 %v9421_v29 }
 0x128   : > { %2118 = vst [vmem:[#allocation2 + $0x190] sm:$0xf] %v2117_v10  ;;  %v2018_v16 = vrot.slane %v2016_v21, 7  ;;  %v2085_v19 = vrot.slane %v2016_v21, 4  ;;  %v1942_v23 = vadd.f32 %v1941_v18, %v1913_v22  ;;  %v617_v24 = vor.u32 %v615_v9, %v614_v58  ;;  %v9380_v8 = vld [vmem:[#allocation2 + $0x14c] sm:$0xf0] }
 0x129   : > { %1971 = vst [vmem:[#allocation2 + $0x1a0] sm:$0xf] %v1962_v0  ;;  %v2086_v32 = vrot.slane %v2019_v17, 5  ;;  %v841_v30 = vor.u32 %v840_v37, %v837_v25  ;;  %v7530_v31 = vor.u32 %v9380_v8, %v7529_v13  ;;  %v7161_v33 = vld [vmem:[#allocation2 + $0x58] sm:$0xf]  ;;  %v9413_v12 = vld [vmem:[%s11764_s3 + $0x390] sm:$0xff] }
 0x12a   : > { %v2021_v26 = vor.u32 %v2019_v17, %v2018_v16  ;;  %v1955_v27 = vadd.f32 %v10383_v44, %v1942_v23  ;;  %v9310_v34 = vld [vmem:[#allocation2 + $0x6c] sm:$0xf0]  ;;  %v9313_v36 = vld [vmem:[#allocation2 + $0x8c] sm:$0xf]  ;;  %v686_v38 = vld [vmem:[#allocation2 + $0x19c] sm:$0xf]  ;;  %3541 = vmatpush.bf16.msra.mxu1 %v9413_v12 }
 0x12b   : > { %v2055_v39 = vld [vmem:[#allocation2 + $0x198] sm:$0xf]  ;;  %v2087_v40 = vor.u32 %v2086_v32, %v2085_v19  ;;  %v7162_v41 = vor.u32 %v9310_v34, %v7161_v33  ;;  %v7187_v50 = vld [vmem:[#allocation2 + $0xa0] sm:$0xf0]  ;;  %v687_v44 = vsel %vm10082_vm2, %v617_v24, %v686_v38  ;;  %v842_v43 = vrot.slane %v841_v30, 4  ;;  %3491 = vmatmul.bf16.gmra.mxu0 %v7530_v31  ;;  %v9437_v31 = vld [vmem:[%s11764_s3 + $0x450] sm:$0xff]  ;;  %v10620_v38 = vpop.f32.mrf.mxu3 }
 0x12c   : > { %v1963_v42 = vpack.c.bf16 %v1955_v27, %v1955_v27  ;;  %v2056_v55 = vsel %vm10082_vm2, %v2021_v26, %v2055_v39  ;;  %v7190_v45 = vor.u32 %v9313_v36, %v7187_v50  ;;  %v391_v62 = vld [vmem:[#allocation2 + $0x1b0] sm:$0x11]  ;;  %v458_v46 = vld [vmem:[#allocation2 + $0x1c0] sm:$0x88]  ;;  %v9430_v11 = vld [vmem:[%s11764_s3 + $0x418] sm:$0xff]  ;;  %3628 = vmatpush.bf16.msra.mxu2 %v9437_v31 }
 0x12d   : > { %688 = vst [vmem:[#allocation2 + $0x19c] sm:$0xf] %v687_v44  ;;  %v2088_v49 = vrot.slane %v2087_v40, 4  ;;  %2904 = vmatmul.bf16.gmra.mxu1 %v7162_v41  ;;  %v392_v4 = vsel %vm10060_vm11, 0, %v391_v62  ;;  %v459_v51 = vsel %vm10070_vm14, 0, %v458_v46  ;;  %3598 = vmatpush.bf16.msra.mxu0 %v9430_v11  ;;  %v9420_v33 = vld [vmem:[%s11764_s3 + $0x3c8] sm:$0xff] }
 0x12e   : > { %v2023_v52 = vshrl.u32 %v1963_v42, 16  ;;  %2057 = vst [vmem:[#allocation2 + $0x198] sm:$0xf] %v2056_v55  ;;  %2938 = vmatmul.bf16.gmra.mxu3 %v7190_v45  ;;  %v512_v53 = vld [vmem:[%s10054_s17 + $0x3c] sm:$0xf]  ;;  %v2026_v6 = vshll.u32 %v1963_v42, 16 }
 0x12f   : > { %v707_v20 = vld [vmem:[%s10054_s17 + $0x3c] sm:$0xf]  ;;  %v912_v56 = vld [vmem:[#allocation2 + $0x1ac] sm:$0xf]  ;;  %v2119_v57 = vld [vmem:[#allocation2 + $0x1a8] sm:$0xf]  ;;  %3571 = vmatpush.bf16.msra.mxu3 %v9420_v33 }
 0x130   : > { %393 = vst [vmem:[#allocation2 + $0x1b0] sm:$0x11] %v392_v4  ;;  %v913_v5 = vsel %vm10097_vm4, %v842_v43, %v912_v56  ;;  %v2120_v59 = vsel %vm10097_vm4, %v2088_v49, %v2119_v57  ;;  %v619_v60 = vshrl.u32 %v512_v53, 16  ;;  %v622_v61 = vshll.u32 %v512_v53, 16  ;;  %v9383_v0 = vld [vmem:[#allocation2 + $0x16c] sm:$0xf] }
 0x131   : > { %460 = vst [vmem:[#allocation2 + $0x1c0] sm:$0x88] %v459_v51  ;;  %v844_v1 = vshrl.u32 %v707_v20, 16  ;;  %v847_v2 = vshll.u32 %v707_v20, 16  ;;  %v2025_v3 = vrot.slane %v2023_v52, 7  ;;  %v2089_v9 = vrot.slane %v2023_v52, 4 }
 0x132   : > { %914 = vst [vmem:[#allocation2 + $0x1ac] sm:$0xf] %v913_v5  ;;  %v621_v7 = vrot.slane %v619_v60, 7  ;;  %v7555_v47 = vld [vmem:[#allocation2 + $0x180] sm:$0xf0]  ;;  %v2090_v58 = vrot.slane %v2026_v6, 5 }
 0x133   : > { %2121 = vst [vmem:[#allocation2 + $0x1a8] sm:$0xf] %v2120_v59  ;;  %v846_v21 = vrot.slane %v844_v1, 4  ;;  %v849_v22 = vrot.slane %v847_v2, 5  ;;  %v2028_v10 = vor.u32 %v2026_v6, %v2025_v3  ;;  %v7558_v18 = vor.u32 %v9383_v0, %v7555_v47  ;;  %v7553_v17 = vld [vmem:[#allocation2 + $0x168] sm:$0xf]  ;;  %3572 = vmatpush.bf16.msra.mxu3 %v9419_v63  ;;  %v10662_v60 = vpop.f32.mrf.mxu3 }
 0x134   : > { %1972 = vst [vmem:[#allocation2 + $0x1b8] sm:$0xf] %v1963_v42  ;;  %v624_v14 = vor.u32 %v622_v61, %v621_v7  ;;  %v2091_v16 = vor.u32 %v2090_v58, %v2089_v9  ;;  %v9386_v19 = vld [vmem:[#allocation2 + $0x17c] sm:$0xf0]  ;;  %v9319_v23 = vld [vmem:[#allocation2 + $0xbc] sm:$0xf] }
 0x135   : > { %v850_v15 = vor.u32 %v849_v22, %v846_v21  ;;  %3525 = vmatmul.bf16.gmra.mxu2 %v7558_v18  ;;  %v9316_v25 = vld [vmem:[#allocation2 + $0x9c] sm:$0xf0]  ;;  %v7211_v37 = vld [vmem:[#allocation2 + $0xd0] sm:$0xf0]  ;;  %v7554_v30 = vor.u32 %v9386_v19, %v7553_v17  ;;  %v7185_v39 = vld [vmem:[#allocation2 + $0x88] sm:$0xf] }
 0x136   : > { %v2092_v27 = vrot.slane %v2091_v16, 4  ;;  %v9429_v34 = vld [vmem:[%s11764_s3 + $0x410] sm:$0xff]  ;;  %v7214_v40 = vor.u32 %v9319_v23, %v7211_v37  ;;  %v9412_v41 = vld [vmem:[%s11764_s3 + $0x388] sm:$0xff]  ;;  %v7186_v42 = vor.u32 %v9316_v25, %v7185_v39  ;;  %v472_v44 = vld [vmem:[%s10054_s17 + $0x20] sm:$0xf]  ;;  %v9726_v11 = vmov 0  }
 0x137   : > { %v689_v54 = vld [vmem:[#allocation2 + $0x1b4] sm:$0xf]  ;;  %v2058_v24 = vld [vmem:[#allocation2 + $0x1b0] sm:$0xf]  ;;  %v851_v26 = vrot.slane %v850_v15, 4  ;;  %v9436_v50 = vld [vmem:[%s11764_s3 + $0x448] sm:$0xff]  ;;  %3599 = vmatpush.bf16.msra.mxu0 %v9429_v34  ;;  %3542 = vmatpush.bf16.msra.mxu1 %v9412_v41 }
 0x138   : > { %v690_v13 = vsel %vm10082_vm2, %v624_v14, %v689_v54  ;;  %v915_v32 = vld [vmem:[#allocation2 + $0x1c4] sm:$0xf]  ;;  %v2059_v8 = vsel %vm10082_vm2, %v2028_v10, %v2058_v24  ;;  %v2122_v29 = vld [vmem:[#allocation2 + $0x1c0] sm:$0xf]  ;;  %v9428_v43 = vld [vmem:[%s11764_s3 + $0x408] sm:$0xff]  ;;  %3629 = vmatpush.bf16.msra.mxu2 %v9436_v50  ;;  %317 = vst [vmem:[#allocation2] sm:$0xff] %v9726_v11  ;;  %v10676_v10 = vpop.f32.mrf.mxu2 }
 0x139   : > { %691 = vst [vmem:[#allocation2 + $0x1b4] sm:$0xf] %v690_v13  ;;  %v916_v48 = vsel %vm10097_vm4, %v851_v26, %v915_v32  ;;  %v2123_v36 = vsel %vm10097_vm4, %v2092_v27, %v2122_v29  ;;  %v473_v55 = vld [vmem:[%s10054_s17 + $0x24] sm:$0xf]  ;;  %v9266_v46 = vld [vmem:[%s11764_s3 + $0x78] sm:$0xff]  ;;  %v9265_v5 = vld [vmem:[%s11764_s3 + $0x70] sm:$0xff] }
 0x13a   : > { %2060 = vst [vmem:[#allocation2 + $0x1b0] sm:$0xf] %v2059_v8  ;;  %v9411_v45 = vld [vmem:[%s11764_s3 + $0x380] sm:$0xff]  ;;  %v9389_v49 = vld [vmem:[#allocation2 + $0x19c] sm:$0xf]  ;;  %4089 = vmatpush.bf16.msrb.mxu3 %v9266_v46  ;;  %v9257_v1 = vld [vmem:[%s11764_s3 + $0x30] sm:$0xff] }
 0x13b   : > { %917 = vst [vmem:[#allocation2 + $0x1c4] sm:$0xf] %v916_v48  ;;  %3496 = vmatmul.bf16.gmra.mxu0 %v7554_v30  ;;  %v9435_v62 = vld [vmem:[%s11764_s3 + $0x440] sm:$0xff]  ;;  %3543 = vmatpush.bf16.msra.mxu1 %v9411_v45  ;;  %v9258_v52 = vld [vmem:[%s11764_s3 + $0x38] sm:$0xff]  ;;  %v474_v20 = vld [vmem:[%s10054_s17 + $0x28] sm:$0xf]  ;;  %v2818_v17 = vpop.f32.mrf.mxu3 }
 0x13c   : > { %2124 = vst [vmem:[#allocation2 + $0x1c0] sm:$0xf] %v2123_v36  ;;  %3600 = vmatpush.bf16.msra.mxu0 %v9428_v43  ;;  %v9427_v51 = vld [vmem:[%s11764_s3 + $0x400] sm:$0xff]  ;;  %v9282_v53 = vld [vmem:[%s11764_s3 + $0xf8] sm:$0xff]  ;;  %v475_v56 = vld [vmem:[%s10054_s17 + $0x2c] sm:$0xf]  ;;  %3630 = vmatpush.bf16.msra.mxu2 %v9435_v62 }
 0x13d   : > { %489 = vst [vmem:[#allocation2 + $0x114] sm:$0xf] %v472_v44  ;;  %2909 = vmatmul.bf16.gmra.mxu1 %v7186_v42  ;;  %v9274_v59 = vld [vmem:[%s11764_s3 + $0xb8] sm:$0xff]  ;;  %v9281_v2 = vld [vmem:[%s11764_s3 + $0xf0] sm:$0xff]  ;;  %v9264_v3 = vld [vmem:[%s11764_s3 + $0x68] sm:$0xff] }
 0x13e   : > { %490 = vst [vmem:[#allocation2 + $0x12c] sm:$0xf] %v473_v55  ;;  %2943 = vmatmul.bf16.gmra.mxu3 %v7214_v40  ;;  %v7577_v61 = vld [vmem:[#allocation2 + $0x198] sm:$0xf]  ;;  %v9273_v47 = vld [vmem:[%s11764_s3 + $0xb0] sm:$0xff]  ;;  %v9256_v19 = vld [vmem:[%s11764_s3 + $0x28] sm:$0xff] }
 0x13f   : > { %319 = vst [vmem:[#allocation2 + $0x10] sm:$0xff] %v9726_v11  ;;  %4060 = vmatpush.bf16.msrb.mxu1 %v9258_v52  ;;  %4090 = vmatpush.bf16.msrb.mxu3 %v9265_v5  ;;  %v9322_v22 = vld [vmem:[#allocation2 + $0xcc] sm:$0xf0]  ;;  %v7209_v58 = vld [vmem:[#allocation2 + $0xb8] sm:$0xf]  ;;  %v9280_v23 = vld [vmem:[%s11764_s3 + $0xe8] sm:$0xff] }
 0x140   : > { %v7579_v4 = vld [vmem:[#allocation2 + $0x1b0] sm:$0xf0]  ;;  %491 = vst [vmem:[#allocation2 + $0x144] sm:$0xf] %v474_v20  ;;  %3601 = vmatpush.bf16.msra.mxu0 %v9427_v51  ;;  %4147 = vmatpush.bf16.msrb.mxu2 %v9282_v53  ;;  %v7210_v14 = vor.u32 %v9322_v22, %v7209_v58  ;;  %v476_v54 = vld [vmem:[%s10054_s17 + $0x30] sm:$0xf]  ;;  %v10701_v33 = vpop.f32.mrf.mxu2 }
 0x141   : > { %v7582_v57 = vor.u32 %v9389_v49, %v7579_v4  ;;  %492 = vst [vmem:[#allocation2 + $0x15c] sm:$0xf] %v475_v56  ;;  %v9392_v0 = vld [vmem:[#allocation2 + $0x1ac] sm:$0xf0]  ;;  %v477_v25 = vld [vmem:[%s10054_s17 + $0x34] sm:$0xf] }
 0x142   : > { %320 = vst [vmem:[#allocation2 + $0xf0] sm:$0xff] %v9726_v11  ;;  %v7578_v21 = vor.u32 %v9392_v0, %v7577_v61  ;;  %v9263_v37 = vld [vmem:[%s11764_s3 + $0x60] sm:$0xff]  ;;  %v9272_v13 = vld [vmem:[%s11764_s3 + $0xa8] sm:$0xff]  ;;  %v9373_v26 = vld [vmem:[#allocation2 + $0x11c] sm:$0xf] }
 0x143   : > { %327 = vst [vmem:[#allocation2 + $0x1c8] sm:$0xff] %v9726_v11  ;;  %4061 = vmatpush.bf16.msrb.mxu1 %v9257_v1  ;;  %4091 = vmatpush.bf16.msrb.mxu3 %v9264_v3  ;;  %v7523_v32 = vld [vmem:[#allocation2 + $0x130] sm:$0xf0]  ;;  %v9376_v34 = vld [vmem:[#allocation2 + $0x12c] sm:$0xf0]  ;;  %v9279_v39 = vld [vmem:[%s11764_s3 + $0xe0] sm:$0xff]  ;;  %v10711_v41 = vpop.f32.mrf.mxu3 }
 0x144   : > { %4118 = vmatpush.bf16.msrb.mxu0 %v9274_v59  ;;  %v9372_v6 = vld [vmem:[#allocation2 + $0x114] sm:$0xf]  ;;  %329 = vst [vmem:[#allocation2 + $0x1d8] sm:$0xff] %v9726_v11  ;;  %4148 = vmatpush.bf16.msrb.mxu2 %v9281_v2  ;;  %v7526_v31 = vor.u32 %v9373_v26, %v7523_v32  ;;  %v9262_v50 = vld [vmem:[%s11764_s3 + $0x58] sm:$0xff]  ;;  %v9271_v42 = vld [vmem:[%s11764_s3 + $0xa0] sm:$0xff] }
 0x145   : > { %3530 = vmatmul.bf16.gmra.mxu2 %v7582_v57  ;;  %v7515_v7 = vld [vmem:[#allocation2 + $0x128] sm:$0xf0]  ;;  %321 = vst [vmem:[#allocation2 + $0xf8] sm:$0xff] %v9726_v11  ;;  %v9375_v63 = vld [vmem:[#allocation2 + $0x124] sm:$0xf0]  ;;  %v9254_v4 = vld [vmem:[%s11764_s3 + $0x18] sm:$0xff] }
 0x146   : > { %322 = vst [vmem:[#allocation2 + $0x100] sm:$0xff] %v9726_v11  ;;  %v7518_v12 = vor.u32 %v9372_v6, %v7515_v7  ;;  %v7521_v44 = vld [vmem:[#allocation2 + $0x118] sm:$0xf]  ;;  %v7513_v55 = vld [vmem:[#allocation2 + $0x110] sm:$0xf]  ;;  %v9260_v58 = vld [vmem:[%s11764_s3 + $0x48] sm:$0xff] }
 0x147   : > { %324 = vst [vmem:[#allocation2 + $0xd8] sm:$0xff] %v9726_v11  ;;  %4062 = vmatpush.bf16.msrb.mxu1 %v9256_v19  ;;  %4092 = vmatpush.bf16.msrb.mxu3 %v9263_v37  ;;  %v9378_v36 = vld [vmem:[#allocation2 + $0x144] sm:$0xf]  ;;  %v7522_v43 = vor.u32 %v9376_v34, %v7521_v44  ;;  %v7514_v46 = vor.u32 %v9375_v63, %v7513_v55  ;;  %v9278_v51 = vld [vmem:[%s11764_s3 + $0xd8] sm:$0xff]  ;;  %v9261_v56 = vld [vmem:[%s11764_s3 + $0x50] sm:$0xff] }
 0x148   : > { %v2842_v9 = vpop.f32.mrf.mxu0  ;;  %4119 = vmatpush.bf16.msrb.mxu0 %v9273_v47  ;;  %325 = vst [vmem:[#allocation2 + $0xe0] sm:$0xff] %v9726_v11  ;;  %4149 = vmatpush.bf16.msrb.mxu2 %v9280_v23  ;;  %v7539_v40 = vld [vmem:[#allocation2 + $0x158] sm:$0xf0]  ;;  %v478_v52 = vld [vmem:[%s10054_s17 + $0x38] sm:$0xf]  ;;  %v9253_v47 = vld [vmem:[%s11764_s3 + $0x10] sm:$0xff] }
 0x149   : > { %v367_v18 = vld [vmem:[#allocation2 + $0xf0] sm:$0x11]  ;;  %326 = vst [vmem:[#allocation2 + $0xe8] sm:$0xff] %v9726_v11  ;;  %v7542_v45 = vor.u32 %v9378_v36, %v7539_v40  ;;  %v10719_v11 = vpop.f32.mrf.mxu2  ;;  %v479_v20 = vld [vmem:[%s10054_s17 + $0x3c] sm:$0xf]  ;;  %v9252_v26 = vld [vmem:[%s11764_s3 + $0x8] sm:$0xff] }
 0x14a   : > { %v368_v15 = vsel %vm10060_vm11, 0, %v367_v18  ;;  %493 = vst [vmem:[#allocation2 + $0x174] sm:$0xf] %v476_v54  ;;  %v9270_v57 = vld [vmem:[%s11764_s3 + $0x98] sm:$0xff]  ;;  %v9379_v5 = vld [vmem:[#allocation2 + $0x14c] sm:$0xf] }
 0x14b   : > { %3501 = vmatmul.bf16.gmra.mxu0 %v7578_v21  ;;  %369 = vst [vmem:[#allocation2 + $0xf0] sm:$0x11] %v368_v15  ;;  %4093 = vmatpush.bf16.msrb.mxu3 %v9262_v50  ;;  %v7547_v59 = vld [vmem:[#allocation2 + $0x160] sm:$0xf0]  ;;  %v9382_v3 = vld [vmem:[#allocation2 + $0x15c] sm:$0xf0] }
 0x14c   : > { %494 = vst [vmem:[#allocation2 + $0x18c] sm:$0xf] %v477_v25  ;;  %4120 = vmatpush.bf16.msrb.mxu0 %v9272_v13  ;;  %4150 = vmatpush.bf16.msrb.mxu2 %v9279_v39  ;;  %v7550_v1 = vor.u32 %v9379_v5, %v7547_v59  ;;  %v9277_v21 = vld [vmem:[%s11764_s3 + $0xd0] sm:$0xff]  ;;  %v7545_v18 = vld [vmem:[#allocation2 + $0x148] sm:$0xf] }
 0x14d   : > { %2914 = vmatmul.bf16.gmra.mxu1 %v7210_v14  ;;  %v434_v29 = vld [vmem:[#allocation2 + $0x100] sm:$0x88]  ;;  %495 = vst [vmem:[#allocation2 + $0x1a4] sm:$0xf] %v478_v52  ;;  %v9381_v14 = vld [vmem:[#allocation2 + $0x154] sm:$0xf0]  ;;  %v7546_v15 = vor.u32 %v9382_v3, %v7545_v18 }
 0x14e   : > { %v2784_v16 = vpop.f32.mrf.mxu1  ;;  %3573 = vmatmul.bf16.vlgmr.msra.gmra.mxu3 %v7518_v12  ;;  %v435_v30 = vsel %vm10070_vm14, 0, %v434_v29  ;;  %496 = vst [vmem:[#allocation2 + $0x1bc] sm:$0xf] %v479_v20  ;;  %v9269_v12 = vld [vmem:[%s11764_s3 + $0x90] sm:$0xff]  ;;  %v364_v54 = vld [vmem:[#allocation2 + $0xd8] sm:$0x11] }
 0x14f   : > { %v2814_v24 = vadd.f32 %v10620_v38, %v2784_v16  ;;  %436 = vst [vmem:[#allocation2 + $0x100] sm:$0x88] %v435_v30  ;;  %v9255_v38 = vld [vmem:[%s11764_s3 + $0x20] sm:$0xff]  ;;  %4094 = vmatpush.bf16.msrb.mxu3 %v9261_v56  ;;  %v9385_v25 = vld [vmem:[#allocation2 + $0x17c] sm:$0xf]  ;;  %v9276_v32 = vld [vmem:[%s11764_s3 + $0xc8] sm:$0xff] }
 0x150   : > { %v10697_v27 = vpop.f32.mrf.mxu0  ;;  %4063 = vmatpush.bf16.msrb.mxu1 %v9255_v38  ;;  %4121 = vmatpush.bf16.msrb.mxu0 %v9271_v42  ;;  %v7537_v16 = vld [vmem:[#allocation2 + $0x140] sm:$0xf]  ;;  %v7571_v37 = vld [vmem:[#allocation2 + $0x190] sm:$0xf0]  ;;  %v394_v36 = vld [vmem:[#allocation2 + $0x1c8] sm:$0x11] }
 0x151   : > { %v10695_v8 = vadd.f32 %v2842_v9, %v2814_v24  ;;  %4151 = vmatpush.bf16.msrb.mxu2 %v9278_v51  ;;  %v10741_v7 = vpop.f32.mrf.mxu2  ;;  %v9384_v9 = vld [vmem:[#allocation2 + $0x174] sm:$0xf]  ;;  %v7538_v19 = vor.u32 %v9381_v14, %v7537_v16  ;;  %v365_v24 = vsel %vm10060_vm11, 0, %v364_v54  ;;  %v9259_v29 = vld [vmem:[%s11764_s3 + $0x40] sm:$0xff]  ;;  %v395_v40 = vsel %vm10060_vm11, 0, %v394_v36  ;;  %v9268_v63 = vld [vmem:[%s11764_s3 + $0x88] sm:$0xff] }
 0x152   : > { %v2823_v0 = vpop.f32.mrf.mxu3  ;;  %366 = vst [vmem:[#allocation2 + $0xd8] sm:$0x11] %v365_v24  ;;  %v337_v34 = vld [vmem:[#allocation2] sm:$0x11]  ;;  %v404_v38 = vld [vmem:[#allocation2 + $0x10] sm:$0x88] }
 0x153   : > { %v7563_v22 = vld [vmem:[#allocation2 + $0x188] sm:$0xf0]  ;;  %4095 = vmatpush.bf16.msrb.mxu3 %v9260_v58  ;;  %v338_v39 = vsel %vm10060_vm11, 0, %v337_v34  ;;  %v405_v50 = vsel %vm10070_vm14, 0, %v404_v38  ;;  %v461_v42 = vld [vmem:[#allocation2 + $0x1d8] sm:$0x88]  ;;  %v10797_v51 = vadd.f32 %v10676_v10, %v10695_v8 }
 0x154   : > { %4064 = vmatpush.bf16.msrb.mxu1 %v9254_v4  ;;  %4122 = vmatpush.bf16.msrb.mxu0 %v9270_v57  ;;  %339 = vst [vmem:[#allocation2] sm:$0x11] %v338_v39  ;;  %v462_v55 = vsel %vm10070_vm14, 0, %v461_v42  ;;  %v9298_v4 = vld [vmem:[%s11764_s3 + $0x178] sm:$0xff]  ;;  %v9388_v52 = vld [vmem:[#allocation2 + $0x18c] sm:$0xf0] }
 0x155   : > { %3631 = vmatmul.bf16.vlgmr.msra.gmra.mxu2 %v7526_v31  ;;  %396 = vst [vmem:[#allocation2 + $0x1c8] sm:$0x11] %v395_v40  ;;  %v7587_v20 = vld [vmem:[#allocation2 + $0x1b8] sm:$0xf0]  ;;  %v9387_v57 = vld [vmem:[#allocation2 + $0x184] sm:$0xf0] }
 0x156   : > { %v10703_v48 = vpop.f32.mrf.mxu1  ;;  %4152 = vmatpush.bf16.msrb.mxu2 %v9277_v21  ;;  %406 = vst [vmem:[#allocation2 + $0x10] sm:$0x88] %v405_v50  ;;  %v431_v59 = vld [vmem:[#allocation2 + $0xe8] sm:$0x88]  ;;  %v9290_v21 = vld [vmem:[%s11764_s3 + $0x138] sm:$0xff]  ;;  %v9545_v50 = vld [vmem:[%s11764_s3 + $0x1b0] sm:$0xff] }
 0x157   : > { %4096 = vmatpush.bf16.msrb.mxu3 %v9259_v29  ;;  %463 = vst [vmem:[#allocation2 + $0x1d8] sm:$0x88] %v462_v55  ;;  %v9546_v58 = vld [vmem:[%s11764_s3 + $0x1b8] sm:$0xff]  ;;  %v7595_v14 = vld [vmem:[#allocation2 + $0x1c0] sm:$0xf0]  ;;  %v9296_v40 = vld [vmem:[%s11764_s3 + $0x168] sm:$0xff] }
 0x158   : > { %v2847_v62 = vpop.f32.mrf.mxu0  ;;  %4065 = vmatpush.bf16.msrb.mxu1 %v9253_v47  ;;  %4123 = vmatpush.bf16.msrb.mxu0 %v9269_v12  ;;  %v9391_v12 = vld [vmem:[#allocation2 + $0x1ac] sm:$0xf]  ;;  %v9393_v29 = vld [vmem:[#allocation2 + $0x1b4] sm:$0xf0]  ;;  %v7585_v36 = vld [vmem:[#allocation2 + $0x1a0] sm:$0xf] }
 0x159   : > { %v7598_v16 = vor.u32 %v9391_v12, %v7595_v14  ;;  %v9230_v12 = vld [vmem:[#allocation2 + $0x104] sm:$0xf0] }
 0x15a   : > { %v10755_v23 = vpop.f32.mrf.mxu3  ;;  %4153 = vmatpush.bf16.msrb.mxu2 %v9276_v32  ;;  %v7795_v32 = vld [vmem:[#allocation2 + $0x108] sm:$0xf0] }
 0x15b   : > { %3602 = vmatmul.bf16.vlgmr.msra.gmra.mxu0 %v7522_v43  ;;  %4205 = vmatpush.bf16.msra.mxu3 %v9298_v4 }
 0x15c   : > { %4066 = vmatpush.bf16.msrb.mxu1 %v9252_v26  ;;  %4124 = vmatpush.bf16.msrb.mxu0 %v9268_v63  ;;  %v9227_v26 = vld [vmem:[#allocation2 + $0xf4] sm:$0xf]  ;;  %v7586_v63 = vor.u32 %v9393_v29, %v7585_v36 }
 0x15d   : > { %3544 = vmatmul.bf16.vlgmr.msra.gmra.mxu1 %v7514_v46  ;;  %v7798_v38 = vor.u32 %v9227_v26, %v7795_v32  ;;  %v9234_v26 = vld [vmem:[#allocation2 + $0x12c] sm:$0xf]  ;;  %v7827_v32 = vld [vmem:[#allocation2 + $0x140] sm:$0xf0] }
 0x15e   : > { %v2789_v49 = vpop.f32.mrf.mxu1  ;;  %3578 = vmatmul.bf16.gmra.mxu3 %v7542_v45  ;;  %v9251_v45 = vld [vmem:[%s11764_s3] sm:$0xff]  ;;  %4154 = vmatpush.bf16.msrb.mxu2 %v9275_v28 }
 0x15f   : > { %v2819_v53 = vadd.f32 %v2818_v17, %v2789_v49  ;;  %v7566_v17 = vor.u32 %v9384_v9, %v7563_v22  ;;  %v9267_v49 = vld [vmem:[%s11764_s3 + $0x80] sm:$0xff]  ;;  %v7561_v9 = vld [vmem:[#allocation2 + $0x170] sm:$0xf]  ;;  %v9554_v22 = vld [vmem:[%s11764_s3 + $0x1f8] sm:$0xff]  ;;  %4206 = vmatpush.bf16.msra.mxu3 %v9297_v35 }
 0x160   : > { %v10737_v2 = vpop.f32.mrf.mxu0  ;;  %4067 = vmatpush.bf16.msrb.mxu1 %v9251_v45  ;;  %4125 = vmatpush.bf16.msrb.mxu0 %v9267_v49  ;;  %v7562_v8 = vor.u32 %v9387_v57, %v7561_v9  ;;  %v7803_v49 = vld [vmem:[#allocation2 + $0x110] sm:$0xf0]  ;;  %v9231_v9 = vld [vmem:[#allocation2 + $0x10c] sm:$0xf0]  ;;  %v7819_v35 = vld [vmem:[#allocation2 + $0x138] sm:$0xf0] }
 0x161   : > { %v10735_v61 = vadd.f32 %v2847_v62, %v2819_v53  ;;  %v7574_v62 = vor.u32 %v9385_v25, %v7571_v37  ;;  %v9390_v53 = vld [vmem:[#allocation2 + $0x1a4] sm:$0xf]  ;;  %v9289_v25 = vld [vmem:[%s11764_s3 + $0x130] sm:$0xff] }
 0x162   : > { %v7590_v10 = vor.u32 %v9390_v53, %v7587_v20  ;;  %4971 = vmatpush.bf16.msra.mxu2 %v9554_v22  ;;  %v9553_v37 = vld [vmem:[%s11764_s3 + $0x1f0] sm:$0xff]  ;;  %v9544_v20 = vld [vmem:[%s11764_s3 + $0x1a8] sm:$0xff]  ;;  %v9233_v22 = vld [vmem:[#allocation2 + $0x124] sm:$0xf] }
 0x163   : > { %v10839_v42 = vadd.f32 %v10719_v11, %v10735_v61  ;;  %4207 = vmatpush.bf16.msra.mxu3 %v9296_v40  ;;  %v9552_v11 = vld [vmem:[%s11764_s3 + $0x1e8] sm:$0xff]  ;;  %v9228_v61 = vld [vmem:[#allocation2 + $0xfc] sm:$0xf]  ;;  %v9549_v40 = vld [vmem:[%s11764_s3 + $0x1d0] sm:$0xff] }
 0x164   : > { %4176 = vmatpush.bf16.msra.mxu1 %v9290_v21  ;;  %4942 = vmatpush.bf16.msra.mxu0 %v9546_v58  ;;  %v7806_v4 = vor.u32 %v9228_v61, %v7803_v49  ;;  %v7801_v21 = vld [vmem:[#allocation2 + $0xf8] sm:$0xf]  ;;  %v7793_v58 = vld [vmem:[#allocation2 + $0xf0] sm:$0xf]  ;;  %v7825_v61 = vld [vmem:[#allocation2 + $0x128] sm:$0xf] }
 0x165   : > { %3636 = vmatmul.bf16.gmra.mxu2 %v7550_v1  ;;  %v432_v1 = vsel %vm10070_vm14, 0, %v431_v59  ;;  %v7802_v14 = vor.u32 %v9231_v9, %v7801_v21  ;;  %v9548_v21 = vld [vmem:[%s11764_s3 + $0x1c8] sm:$0xff] }
 0x166   : > { %v10739_v6 = vpop.f32.mrf.mxu1  ;;  %433 = vst [vmem:[#allocation2 + $0xe8] sm:$0x88] %v432_v1  ;;  %4972 = vmatpush.bf16.msra.mxu2 %v9553_v37 }
 0x168   : > { %v2852_v30 = vpop.f32.mrf.mxu0  ;;  %4177 = vmatpush.bf16.msra.mxu1 %v9289_v25  ;;  %4943 = vmatpush.bf16.msra.mxu0 %v9545_v50  ;;  %v9237_v50 = vld [vmem:[#allocation2 + $0x13c] sm:$0xf0] }
 0x16a   : > { %v10777_v44 = vpop.f32.mrf.mxu2  ;;  %4973 = vmatpush.bf16.msra.mxu2 %v9552_v11 }
 0x16b   : > { %3607 = vmatmul.bf16.gmra.mxu0 %v7546_v15 }
 0x16c   : > { %v2828_v46 = vpop.f32.mrf.mxu3  ;;  %4944 = vmatpush.bf16.msra.mxu0 %v9544_v20  ;;  %v7817_v20 = vld [vmem:[#allocation2 + $0x120] sm:$0xf] }
 0x16d   : > { %3549 = vmatmul.bf16.gmra.mxu1 %v7538_v19 }
 0x16e   : > { %v2794_v13 = vpop.f32.mrf.mxu1  ;;  %3583 = vmatmul.bf16.gmra.mxu3 %v7566_v17 }
 0x16f   : > { %v2824_v31 = vadd.f32 %v2823_v0, %v2794_v13  ;;  %v7569_v0 = vld [vmem:[#allocation2 + $0x178] sm:$0xf]  ;;  %v9394_v13 = vld [vmem:[#allocation2 + $0x1bc] sm:$0xf0] }
 0x170   : > { %v10799_v56 = vpop.f32.mrf.mxu0  ;;  %v7570_v3 = vor.u32 %v9388_v52, %v7569_v0  ;;  %v9295_v52 = vld [vmem:[%s11764_s3 + $0x160] sm:$0xff] }
 0x171   : > { %v10779_v43 = vadd.f32 %v2852_v30, %v2824_v31  ;;  %v7593_v30 = vld [vmem:[#allocation2 + $0x1a8] sm:$0xf]  ;;  %4208 = vmatpush.bf16.msra.mxu3 %v9295_v52  ;;  %v7826_v52 = vor.u32 %v9237_v50, %v7825_v61 }
 0x172   : > { %v10805_v47 = vpop.f32.mrf.mxu2  ;;  %v7594_v34 = vor.u32 %v9394_v13, %v7593_v30  ;;  %v9286_v13 = vld [vmem:[%s11764_s3 + $0x118] sm:$0xff]  ;;  %v7830_v30 = vor.u32 %v9234_v26, %v7827_v32  ;;  %v9539_v26 = vld [vmem:[%s11764_s3 + $0x180] sm:$0xff] }
 0x173   : > { %v9570_v32 = vld [vmem:[%s11764_s3 + $0x278] sm:$0xff] }
 0x174   : > { %v2830_v18 = vpop.f32.mrf.mxu3 }
 0x175   : > { %3641 = vmatmul.bf16.gmra.mxu2 %v7574_v62 }
 0x176   : > { %v10801_v5 = vpop.f32.mrf.mxu1 }
 0x178   : > { %v2857_v15 = vpop.f32.mrf.mxu0 }
 0x17b   : > { %3612 = vmatmul.bf16.gmra.mxu0 %v7570_v3 }
 0x17d   : > { %3554 = vmatmul.bf16.gmra.mxu1 %v7562_v8  ;;  %v9551_v8 = vld [vmem:[%s11764_s3 + $0x1e0] sm:$0xff] }
 0x17e   : > { %3588 = vmatmul.bf16.gmra.mxu3 %v7590_v10  ;;  %v9287_v10 = vld [vmem:[%s11764_s3 + $0x120] sm:$0xff]  ;;  %4974 = vmatpush.bf16.msra.mxu2 %v9551_v8  ;;  %v9284_v8 = vld [vmem:[%s11764_s3 + $0x108] sm:$0xff] }
 0x180   : > { %v2859_v28 = vpop.f32.mrf.mxu0 }
 0x182   : > { %v2799_v17 = vpop.f32.mrf.mxu1 }
 0x183   : > { %v2829_v19 = vadd.f32 %v2828_v46, %v2799_v17  ;;  %v10819_v54 = vpop.f32.mrf.mxu2  ;;  %v9288_v46 = vld [vmem:[%s11764_s3 + $0x128] sm:$0xff]  ;;  %v10880_v17 = vadd.f32 %v10777_v44, %v10779_v43  ;;  %v9550_v44 = vld [vmem:[%s11764_s3 + $0x1d8] sm:$0xff] }
 0x184   : > { %4178 = vmatpush.bf16.msra.mxu1 %v9288_v46  ;;  %4975 = vmatpush.bf16.msra.mxu2 %v9550_v44  ;;  %v2821_v46 = vadd.f32 %v10711_v41, %v10739_v6  ;;  %v9242_v44 = vld [vmem:[#allocation2 + $0x164] sm:$0xf0] }
 0x185   : > { %v10821_v24 = vadd.f32 %v2857_v15, %v2829_v19  ;;  %3646 = vmatmul.bf16.gmra.mxu2 %v7598_v16  ;;  %v9294_v15 = vld [vmem:[%s11764_s3 + $0x158] sm:$0xff]  ;;  %v9543_v16 = vld [vmem:[%s11764_s3 + $0x1a0] sm:$0xff]  ;;  %v7794_v19 = vor.u32 %v9230_v12, %v7793_v58 }
 0x186   : > { %4209 = vmatpush.bf16.msra.mxu3 %v9294_v15  ;;  %4945 = vmatpush.bf16.msra.mxu0 %v9543_v16 }
 0x187   : > { %v10924_v9 = vadd.f32 %v10819_v54, %v10821_v24  ;;  %v9291_v54 = vld [vmem:[%s11764_s3 + $0x140] sm:$0xff] }
 0x188   : > { %4179 = vmatpush.bf16.msra.mxu1 %v9287_v10  ;;  %4976 = vmatpush.bf16.msra.mxu2 %v9549_v40  ;;  %v2850_v10 = vadd.f32 %v10737_v2, %v2821_v46  ;;  %v9562_v46 = vld [vmem:[%s11764_s3 + $0x238] sm:$0xff] }
 0x189   : > { %v10829_v31 = vpop.f32.mrf.mxu3 }
 0x18a   : > { %v2801_v39 = vpop.f32.mrf.mxu1 }
 0x18b   : > { %v2831_v55 = vadd.f32 %v2830_v18, %v2801_v39  ;;  %3617 = vmatmul.bf16.gmra.mxu0 %v7594_v34  ;;  %v10841_v45 = vpop.f32.mrf.mxu2  ;;  %v7822_v18 = vor.u32 %v9233_v22, %v7819_v35  ;;  %v9293_v34 = vld [vmem:[%s11764_s3 + $0x150] sm:$0xff]  ;;  %v2879_v35 = vadd.f32 %v10741_v7, %v2850_v10  ;;  %v9547_v7 = vld [vmem:[%s11764_s3 + $0x1c0] sm:$0xff] }
 0x18c   : > { %4180 = vmatpush.bf16.msra.mxu1 %v9286_v13  ;;  %4210 = vmatpush.bf16.msra.mxu3 %v9293_v34  ;;  %v9285_v39 = vld [vmem:[%s11764_s3 + $0x110] sm:$0xff]  ;;  %v7867_v13 = vld [vmem:[#allocation2 + $0x198] sm:$0xf0]  ;;  %v9249_v10 = vld [vmem:[#allocation2 + $0x19c] sm:$0xf0] }
 0x18d   : > { %3559 = vmatmul.bf16.gmra.mxu1 %v7586_v63  ;;  %v10843_v62 = vadd.f32 %v2859_v28, %v2831_v55  ;;  %v7843_v55 = vld [vmem:[#allocation2 + $0x168] sm:$0xf0]  ;;  %v9236_v28 = vld [vmem:[#allocation2 + $0x134] sm:$0xf0]  ;;  %v7851_v22 = vld [vmem:[#allocation2 + $0x170] sm:$0xf0]  ;;  %4977 = vmatpush.bf16.msra.mxu2 %v9548_v21 }
 0x18e   : > { %4097 = vmatmul.bf16.vlgmr.msrb.gmra.mxu3 %v7798_v38  ;;  %v9542_v38 = vld [vmem:[%s11764_s3 + $0x198] sm:$0xff]  ;;  %v7818_v6 = vor.u32 %v9236_v28, %v7817_v20  ;;  %v7875_v28 = vld [vmem:[#allocation2 + $0x1a0] sm:$0xf0] }
 0x18f   : > { %4946 = vmatpush.bf16.msra.mxu0 %v9542_v38  ;;  %v10949_v15 = vadd.f32 %v10841_v45, %v10843_v62  ;;  %v9229_v21 = vld [vmem:[#allocation2 + $0x104] sm:$0xf] }
 0x190   : > { %4181 = vmatpush.bf16.msra.mxu1 %v9285_v39  ;;  %v7841_v39 = vld [vmem:[#allocation2 + $0x150] sm:$0xf] }
 0x191   : > { %v10854_v53 = vpop.f32.mrf.mxu3  ;;  %4978 = vmatpush.bf16.msra.mxu2 %v9547_v7 }
 0x193   : > { %v3487_v57 = vpop.f32.mrf.mxu0  ;;  %v3516_v59 = vpop.f32.mrf.mxu2 }
 0x194   : > { %v10859_v0 = vadd.f32 %v3516_v59, %v3487_v57  ;;  %v2900_v1 = vpop.f32.mrf.mxu1  ;;  %v9292_v59 = vld [vmem:[%s11764_s3 + $0x148] sm:$0xff]  ;;  %4182 = vmatpush.bf16.msra.mxu1 %v9284_v8  ;;  %v2816_v8 = vadd.f32 %v10662_v60, %v10703_v48  ;;  %v9577_v60 = vld [vmem:[%s11764_s3 + $0x2b0] sm:$0xff] }
 0x195   : > { %4155 = vmatmul.bf16.vlgmr.msrb.gmra.mxu2 %v7806_v4  ;;  %v10862_v3 = vadd.f32 %v2900_v1, %v10797_v51  ;;  %v2826_v51 = vadd.f32 %v10755_v23, %v10801_v5  ;;  %v9541_v1 = vld [vmem:[%s11764_s3 + $0x190] sm:$0xff]  ;;  %4211 = vmatpush.bf16.msra.mxu3 %v9292_v59 }
 0x196   : > { %4947 = vmatpush.bf16.msra.mxu0 %v9541_v1  ;;  %v9578_v1 = vld [vmem:[%s11764_s3 + $0x2b8] sm:$0xff] }
 0x197   : > { %v2855_v43 = vadd.f32 %v10799_v56, %v2826_v51 }
 0x199   : > { %v10899_v36 = vadd.f32 %v10805_v47, %v2855_v43  ;;  %v9239_v47 = vld [vmem:[#allocation2 + $0x154] sm:$0xf]  ;;  %4212 = vmatpush.bf16.msra.mxu3 %v9291_v54  ;;  %v7849_v43 = vld [vmem:[#allocation2 + $0x158] sm:$0xf]  ;;  %v7811_v54 = vld [vmem:[#allocation2 + $0x118] sm:$0xf0] }
 0x19a   : > { %v7846_v57 = vor.u32 %v9239_v47, %v7843_v55  ;;  %v7842_v47 = vor.u32 %v9242_v44, %v7841_v39  ;;  %v9246_v55 = vld [vmem:[#allocation2 + $0x18c] sm:$0xf] }
 0x19b   : > { %4126 = vmatmul.bf16.vlgmr.msrb.gmra.mxu0 %v7802_v14  ;;  %v3489_v25 = vpop.f32.mrf.mxu0  ;;  %v3518_v37 = vpop.f32.mrf.mxu2  ;;  %v7878_v59 = vor.u32 %v9246_v55, %v7875_v28  ;;  %v9518_v28 = vld [vmem:[#allocation2 + $0x11c] sm:$0xf0] }
 0x19c   : > { %v10882_v23 = vadd.f32 %v3518_v37, %v3489_v25  ;;  %v10884_v5 = vpop.f32.mrf.mxu3  ;;  %v10893_v29 = vpop.f32.mrf.mxu1  ;;  %v9243_v25 = vld [vmem:[#allocation2 + $0x16c] sm:$0xf0]  ;;  %v9245_v37 = vld [vmem:[#allocation2 + $0x184] sm:$0xf] }
 0x19d   : > { %4068 = vmatmul.bf16.vlgmr.msrb.gmra.mxu1 %v7794_v19  ;;  %v9283_v19 = vld [vmem:[%s11764_s3 + $0x100] sm:$0xff]  ;;  %v7850_v38 = vor.u32 %v9243_v25, %v7849_v43  ;;  %v7870_v40 = vor.u32 %v9245_v37, %v7867_v13  ;;  %5029 = vmatpush.bf16.msrb.mxu3 %v9570_v32  ;;  %v7814_v25 = vor.u32 %v9229_v21, %v7811_v54 }
 0x19e   : > { %4102 = vmatmul.bf16.gmra.mxu3 %v7822_v18  ;;  %v9540_v18 = vld [vmem:[%s11764_s3 + $0x188] sm:$0xff]  ;;  %4183 = vmatpush.bf16.msra.mxu1 %v9283_v19  ;;  %v7865_v19 = vld [vmem:[#allocation2 + $0x180] sm:$0xf]  ;;  %v2845_v37 = vadd.f32 %v10697_v27, %v2816_v8 }
 0x19f   : > { %4948 = vmatpush.bf16.msra.mxu0 %v9540_v18  ;;  %v9560_v27 = vld [vmem:[%s11764_s3 + $0x228] sm:$0xff] }
 0x1a0   : > { %v2874_v43 = vadd.f32 %v10701_v33, %v2845_v37 }
 0x1a2   : > { %5000 = vmatpush.bf16.msrb.mxu1 %v9562_v46  ;;  %v2903_v32 = vadd.f32 %v10893_v29, %v2874_v43  ;;  %v9235_v46 = vld [vmem:[#allocation2 + $0x134] sm:$0xf] }
 0x1a3   : > { %4949 = vmatpush.bf16.msra.mxu0 %v9539_v26  ;;  %v8179_v26 = vld [vmem:[#allocation2 + $0x120] sm:$0xf0] }
 0x1a4   : > { %v10910_v63 = vpop.f32.mrf.mxu3  ;;  %v11037_v29 = vadd.f32 %v10854_v53, %v2903_v32  ;;  %v9566_v53 = vld [vmem:[%s11764_s3 + $0x258] sm:$0xff]  ;;  %v9241_v32 = vld [vmem:[#allocation2 + $0x164] sm:$0xf] }
 0x1a5   : > { %4160 = vmatmul.bf16.gmra.mxu2 %v7830_v30 }
 0x1a6   : > { %v3521_v56 = vpop.f32.mrf.mxu2 }
 0x1a7   : > { %5058 = vmatpush.bf16.msrb.mxu0 %v9578_v1  ;;  %v8177_v1 = vld [vmem:[#allocation2 + $0x108] sm:$0xf] }
 0x1a8   : > { %v3492_v11 = vpop.f32.mrf.mxu0  ;;  %v8178_v21 = vor.u32 %v9518_v28, %v8177_v1  ;;  %v9527_v1 = vld [vmem:[#allocation2 + $0x16c] sm:$0xf] }
 0x1a9   : > { %v10914_v49 = vadd.f32 %v3521_v56, %v3492_v11  ;;  %v9586_v11 = vld [vmem:[%s11764_s3 + $0x2f8] sm:$0xff] }
 0x1aa   : > { %v2905_v4 = vpop.f32.mrf.mxu1  ;;  %5087 = vmatpush.bf16.msrb.mxu2 %v9586_v11  ;;  %v7835_v11 = vld [vmem:[#allocation2 + $0x148] sm:$0xf0] }
 0x1ab   : > { %v10927_v41 = vadd.f32 %v2905_v4, %v10839_v42  ;;  %4131 = vmatmul.bf16.gmra.mxu0 %v7826_v52  ;;  %v9240_v42 = vld [vmem:[#allocation2 + $0x15c] sm:$0xf] }
 0x1ac   : > { %v7854_v14 = vor.u32 %v9240_v42, %v7851_v22  ;;  %v9248_v42 = vld [vmem:[#allocation2 + $0x194] sm:$0xf0]  ;;  %v9585_v22 = vld [vmem:[%s11764_s3 + $0x2f0] sm:$0xff]  ;;  %5059 = vmatpush.bf16.msrb.mxu0 %v9577_v60 }
 0x1ad   : > { %4073 = vmatmul.bf16.gmra.mxu1 %v7818_v6  ;;  %v7866_v44 = vor.u32 %v9248_v42, %v7865_v19  ;;  %v8203_v60 = vld [vmem:[#allocation2 + $0x150] sm:$0xf0] }
 0x1ae   : > { %4107 = vmatmul.bf16.gmra.mxu3 %v7846_v57  ;;  %v3523_v24 = vpop.f32.mrf.mxu2  ;;  %5088 = vmatpush.bf16.msrb.mxu2 %v9585_v22 }
 0x1b0   : > { %v3494_v2 = vpop.f32.mrf.mxu0 }
 0x1b1   : > { %v10940_v58 = vpop.f32.mrf.mxu3  ;;  %v10942_v12 = vadd.f32 %v3523_v24, %v3494_v2  ;;  %v9561_v24 = vld [vmem:[%s11764_s3 + $0x230] sm:$0xff] }
 0x1b2   : > { %v2907_v51 = vpop.f32.mrf.mxu1  ;;  %5001 = vmatpush.bf16.msrb.mxu1 %v9561_v24  ;;  %v7838_v24 = vor.u32 %v9235_v46, %v7835_v11  ;;  %v7833_v11 = vld [vmem:[#allocation2 + $0x130] sm:$0xf] }
 0x1b3   : > { %v10951_v16 = vadd.f32 %v2907_v51, %v2879_v35  ;;  %v7873_v35 = vld [vmem:[#allocation2 + $0x188] sm:$0xf] }
 0x1b4   : > { %v9568_v51 = vld [vmem:[%s11764_s3 + $0x268] sm:$0xff]  ;;  %v7874_v18 = vor.u32 %v9249_v10, %v7873_v35  ;;  %v9575_v10 = vld [vmem:[%s11764_s3 + $0x2a0] sm:$0xff]  ;;  %v9521_v35 = vld [vmem:[#allocation2 + $0x13c] sm:$0xf] }
 0x1b5   : > { %4165 = vmatmul.bf16.gmra.mxu2 %v7854_v14  ;;  %v8206_v37 = vor.u32 %v9521_v35, %v8203_v60 }
 0x1b6   : > { %5002 = vmatpush.bf16.msrb.mxu1 %v9560_v27  ;;  %v9524_v27 = vld [vmem:[#allocation2 + $0x14c] sm:$0xf0] }
 0x1b8   : > { %v3497_v45 = vpop.f32.mrf.mxu0  ;;  %v3526_v62 = vpop.f32.mrf.mxu2 }
 0x1b9   : > { %v10965_v30 = vadd.f32 %v3526_v62, %v3497_v45  ;;  %v10967_v56 = vpop.f32.mrf.mxu3  ;;  %v11015_v45 = vadd.f32 %v10829_v31, %v10862_v3  ;;  %v9515_v62 = vld [vmem:[#allocation2 + $0x10c] sm:$0xf]  ;;  %v9567_v31 = vld [vmem:[%s11764_s3 + $0x260] sm:$0xff] }
 0x1ba   : > { %v2910_v34 = vpop.f32.mrf.mxu1 }
 0x1bb   : > { %v10970_v50 = vadd.f32 %v2910_v34, %v10880_v17  ;;  %4136 = vmatmul.bf16.gmra.mxu0 %v7850_v38  ;;  %v9569_v17 = vld [vmem:[%s11764_s3 + $0x270] sm:$0xff] }
 0x1bc   : > { %5030 = vmatpush.bf16.msrb.mxu3 %v9569_v17  ;;  %v9232_v17 = vld [vmem:[#allocation2 + $0x114] sm:$0xf0] }
 0x1bd   : > { %4078 = vmatmul.bf16.gmra.mxu1 %v7842_v47  ;;  %v9576_v47 = vld [vmem:[%s11764_s3 + $0x2a8] sm:$0xff] }
 0x1be   : > { %4112 = vmatmul.bf16.gmra.mxu3 %v7870_v40  ;;  %v8182_v40 = vor.u32 %v9515_v62, %v8179_v26  ;;  %5060 = vmatpush.bf16.msrb.mxu0 %v9576_v47  ;;  %v11077_v26 = vadd.f32 %v10910_v63, %v10951_v16  ;;  %v8201_v63 = vld [vmem:[#allocation2 + $0x138] sm:$0xf]  ;;  %v9564_v16 = vld [vmem:[%s11764_s3 + $0x248] sm:$0xff] }
 0x1bf   : > { %v8202_v28 = vor.u32 %v9524_v27, %v8201_v63  ;;  %v9618_v63 = vld [vmem:[%s11764_s3 + $0x338] sm:$0xff] }
 0x1c0   : > { %v3499_v61 = vpop.f32.mrf.mxu0  ;;  %v3528_v4 = vpop.f32.mrf.mxu2  ;;  %5031 = vmatpush.bf16.msrb.mxu3 %v9568_v51 }
 0x1c1   : > { %v10981_v52 = vadd.f32 %v3528_v4, %v3499_v61  ;;  %v10983_v57 = vpop.f32.mrf.mxu3  ;;  %v9559_v61 = vld [vmem:[%s11764_s3 + $0x220] sm:$0xff] }
 0x1c2   : > { %v2912_v20 = vpop.f32.mrf.mxu1  ;;  %v7809_v4 = vld [vmem:[#allocation2 + $0x100] sm:$0xf]  ;;  %5003 = vmatpush.bf16.msrb.mxu1 %v9559_v61  ;;  %5061 = vmatpush.bf16.msrb.mxu0 %v9575_v10 }
 0x1c3   : > { %v10989_v6 = vadd.f32 %v2912_v20, %v10899_v36  ;;  %v7810_v22 = vor.u32 %v9232_v17, %v7809_v4 }
 0x1c4   : > { %5032 = vmatpush.bf16.msrb.mxu3 %v9567_v31  ;;  %v9238_v31 = vld [vmem:[#allocation2 + $0x144] sm:$0xf0] }
 0x1c5   : > { %4170 = vmatmul.bf16.gmra.mxu2 %v7878_v59  ;;  %v7834_v17 = vor.u32 %v9238_v31, %v7833_v11  ;;  %v11119_v60 = vadd.f32 %v10967_v56, %v10989_v6  ;;  %v8225_v56 = vld [vmem:[#allocation2 + $0x168] sm:$0xf]  ;;  %v9571_v6 = vld [vmem:[%s11764_s3 + $0x280] sm:$0xff] }
 0x1c8   : > { %v3502_v36 = vpop.f32.mrf.mxu0  ;;  %v3531_v2 = vpop.f32.mrf.mxu2  ;;  %5033 = vmatpush.bf16.msrb.mxu3 %v9566_v53  ;;  %v8227_v53 = vld [vmem:[#allocation2 + $0x180] sm:$0xf0] }
 0x1c9   : > { %v11005_v48 = vadd.f32 %v3531_v2, %v3502_v36  ;;  %v11007_v7 = vpop.f32.mrf.mxu3  ;;  %v11056_v2 = vadd.f32 %v10884_v5, %v10927_v41  ;;  %v9565_v5 = vld [vmem:[%s11764_s3 + $0x250] sm:$0xff] }
 0x1ca   : > { %v2915_v14 = vpop.f32.mrf.mxu1 }
 0x1cb   : > { %v11011_v13 = vadd.f32 %v2915_v14, %v10924_v9  ;;  %4141 = vmatmul.bf16.gmra.mxu0 %v7874_v18  ;;  %v9584_v9 = vld [vmem:[%s11764_s3 + $0x2e8] sm:$0xff]  ;;  %v9558_v14 = vld [vmem:[%s11764_s3 + $0x218] sm:$0xff] }
 0x1cc   : > { %5089 = vmatpush.bf16.msrb.mxu2 %v9584_v9  ;;  %5004 = vmatpush.bf16.msrb.mxu1 %v9558_v14  ;;  %v9530_v14 = vld [vmem:[#allocation2 + $0x17c] sm:$0xf0] }
 0x1cd   : > { %4083 = vmatmul.bf16.gmra.mxu1 %v7866_v44  ;;  %v9574_v44 = vld [vmem:[%s11764_s3 + $0x298] sm:$0xff]  ;;  %5034 = vmatpush.bf16.msrb.mxu3 %v9565_v5  ;;  %v7883_v5 = vld [vmem:[#allocation2 + $0x1a8] sm:$0xf0]  ;;  %v8226_v27 = vor.u32 %v9530_v14, %v8225_v56 }
 0x1ce   : > { %4213 = vmatmul.bf16.vlgmr.msra.gmra.mxu3 %v7814_v25  ;;  %5062 = vmatpush.bf16.msrb.mxu0 %v9574_v44  ;;  %v9616_v56 = vld [vmem:[%s11764_s3 + $0x328] sm:$0xff] }
 0x1d0   : > { %v3504_v34 = vpop.f32.mrf.mxu0  ;;  %v3533_v38 = vpop.f32.mrf.mxu2 }
 0x1d1   : > { %v11028_v33 = vadd.f32 %v3533_v38, %v3504_v34  ;;  %v3574_v39 = vpop.f32.mrf.mxu3  ;;  %v7859_v34 = vld [vmem:[#allocation2 + $0x178] sm:$0xf0]  ;;  %v9557_v38 = vld [vmem:[%s11764_s3 + $0x210] sm:$0xff]  ;;  %5035 = vmatpush.bf16.msrb.mxu3 %v9564_v16 }
 0x1d2   : > { %v2917_v3 = vpop.f32.mrf.mxu1  ;;  %5005 = vmatpush.bf16.msrb.mxu1 %v9557_v38  ;;  %v7862_v61 = vor.u32 %v9241_v32, %v7859_v34  ;;  %v7857_v34 = vld [vmem:[#allocation2 + $0x160] sm:$0xf]  ;;  %v9642_v16 = vld [vmem:[%s11764_s3 + $0x3f8] sm:$0xff] }
 0x1d3   : > { %v11034_v55 = vadd.f32 %v2917_v3, %v10949_v15  ;;  %v9583_v15 = vld [vmem:[%s11764_s3 + $0x2e0] sm:$0xff] }
 0x1d4   : > { %5090 = vmatpush.bf16.msrb.mxu2 %v9583_v15 }
 0x1d5   : > { %4979 = vmatmul.bf16.vlgmr.msra.gmra.mxu2 %v8182_v40  ;;  %v9573_v40 = vld [vmem:[%s11764_s3 + $0x290] sm:$0xff] }
 0x1d6   : > { %5063 = vmatpush.bf16.msrb.mxu0 %v9573_v40  ;;  %v11146_v40 = vadd.f32 %v10983_v57, %v11011_v13  ;;  %v9634_v57 = vld [vmem:[%s11764_s3 + $0x3b8] sm:$0xff] }
 0x1d8   : > { %v3603_v20 = vpop.f32.mrf.mxu0  ;;  %v11045_v59 = vpop.f32.mrf.mxu2 }
 0x1d9   : > { %v3576_v54 = vpop.f32.mrf.mxu3 }
 0x1da   : > { %v3545_v8 = vpop.f32.mrf.mxu1 }
 0x1db   : > { %v3546_v42 = vadd.f32 %v3545_v8, %v10859_v0  ;;  %4950 = vmatmul.bf16.vlgmr.msra.gmra.mxu0 %v8178_v21  ;;  %v9582_v0 = vld [vmem:[%s11764_s3 + $0x2d8] sm:$0xff]  ;;  %v9556_v8 = vld [vmem:[%s11764_s3 + $0x208] sm:$0xff]  ;;  %v9563_v21 = vld [vmem:[%s11764_s3 + $0x240] sm:$0xff] }
 0x1dc   : > { %5091 = vmatpush.bf16.msrb.mxu2 %v9582_v0  ;;  %5006 = vmatpush.bf16.msrb.mxu1 %v9556_v8  ;;  %v9247_v0 = vld [vmem:[#allocation2 + $0x194] sm:$0xf] }
 0x1dd   : > { %v3575_v36 = vadd.f32 %v3574_v39, %v3546_v42  ;;  %4184 = vmatmul.bf16.vlgmr.msra.gmra.mxu1 %v7810_v22  ;;  %v8230_v22 = vor.u32 %v9527_v1, %v8227_v53  ;;  %5036 = vmatpush.bf16.msrb.mxu3 %v9563_v21  ;;  %v7886_v38 = vor.u32 %v9247_v0, %v7883_v5  ;;  %v9617_v8 = vld [vmem:[%s11764_s3 + $0x330] sm:$0xff] }
 0x1de   : > { %4218 = vmatmul.bf16.gmra.mxu3 %v7838_v24  ;;  %v11161_v53 = vadd.f32 %v11007_v7, %v11034_v55  ;;  %v8249_v55 = vld [vmem:[#allocation2 + $0x198] sm:$0xf]  ;;  %v7881_v5 = vld [vmem:[#allocation2 + $0x190] sm:$0xf] }
 0x1df   : > { %v11058_v51 = vadd.f32 %v3603_v20, %v3575_v36  ;;  %v11098_v20 = vadd.f32 %v10940_v58, %v10970_v50  ;;  %v9572_v50 = vld [vmem:[%s11764_s3 + $0x288] sm:$0xff] }
 0x1e0   : > { %v3605_v18 = vpop.f32.mrf.mxu0  ;;  %v11066_v19 = vpop.f32.mrf.mxu2  ;;  %5064 = vmatpush.bf16.msrb.mxu0 %v9572_v50  ;;  %v8187_v50 = vld [vmem:[#allocation2 + $0x128] sm:$0xf0] }
 0x1e1   : > { %v3579_v25 = vpop.f32.mrf.mxu3 }
 0x1e2   : > { %v3547_v41 = vpop.f32.mrf.mxu1 }
 0x1e3   : > { %v3548_v62 = vadd.f32 %v3547_v41, %v10882_v23  ;;  %v9581_v23 = vld [vmem:[%s11764_s3 + $0x2d0] sm:$0xff]  ;;  %v9579_v41 = vld [vmem:[%s11764_s3 + $0x2c0] sm:$0xff] }
 0x1e4   : > { %5092 = vmatpush.bf16.msrb.mxu2 %v9581_v23  ;;  %5065 = vmatpush.bf16.msrb.mxu0 %v9571_v6  ;;  %v9640_v6 = vld [vmem:[%s11764_s3 + $0x3e8] sm:$0xff] }
 0x1e5   : > { %v3577_v43 = vadd.f32 %v3576_v54, %v3548_v62  ;;  %4984 = vmatmul.bf16.gmra.mxu2 %v8206_v37  ;;  %v9626_v62 = vld [vmem:[%s11764_s3 + $0x378] sm:$0xff] }
 0x1e6   : > { %5674 = vmatpush.bf16.msra.mxu3 %v9626_v62 }
 0x1e7   : > { %v11079_v9 = vadd.f32 %v3605_v18, %v3577_v43 }
 0x1e8   : > { %v3608_v3 = vpop.f32.mrf.mxu0  ;;  %v11087_v39 = vpop.f32.mrf.mxu2  ;;  %5703 = vmatpush.bf16.msra.mxu0 %v9634_v57  ;;  %v8193_v57 = vld [vmem:[#allocation2 + $0x118] sm:$0xf] }
 0x1e9   : > { %v3581_v46 = vpop.f32.mrf.mxu3 }
 0x1ea   : > { %v3550_v47 = vpop.f32.mrf.mxu1 }
 0x1eb   : > { %v3551_v4 = vadd.f32 %v3550_v47, %v10914_v49  ;;  %4955 = vmatmul.bf16.gmra.mxu0 %v8202_v28  ;;  %v9580_v49 = vld [vmem:[%s11764_s3 + $0x2c8] sm:$0xff]  ;;  %v9533_v47 = vld [vmem:[#allocation2 + $0x19c] sm:$0xf]  ;;  %v8251_v28 = vld [vmem:[#allocation2 + $0x1b0] sm:$0xf0] }
 0x1ec   : > { %5093 = vmatpush.bf16.msrb.mxu2 %v9580_v49  ;;  %v9641_v49 = vld [vmem:[%s11764_s3 + $0x3f0] sm:$0xff] }
 0x1ed   : > { %v3580_v15 = vadd.f32 %v3579_v25, %v3551_v4  ;;  %4189 = vmatmul.bf16.gmra.mxu1 %v7834_v17  ;;  %v9244_v25 = vld [vmem:[#allocation2 + $0x174] sm:$0xf0] }
 0x1ee   : > { %4223 = vmatmul.bf16.gmra.mxu3 %v7862_v61  ;;  %v7858_v23 = vor.u32 %v9244_v25, %v7857_v34  ;;  %v9625_v61 = vld [vmem:[%s11764_s3 + $0x370] sm:$0xff]  ;;  %v9623_v34 = vld [vmem:[%s11764_s3 + $0x360] sm:$0xff] }
 0x1ef   : > { %v11100_v10 = vadd.f32 %v3608_v3, %v3580_v15  ;;  %v8254_v15 = vor.u32 %v9533_v47, %v8251_v28  ;;  %5675 = vmatpush.bf16.msra.mxu3 %v9625_v61  ;;  %v9615_v28 = vld [vmem:[%s11764_s3 + $0x320] sm:$0xff] }
 0x1f0   : > { %v3610_v54 = vpop.f32.mrf.mxu0  ;;  %v11111_v58 = vpop.f32.mrf.mxu2  ;;  %5094 = vmatpush.bf16.msrb.mxu2 %v9579_v41  ;;  %v9522_v61 = vld [vmem:[#allocation2 + $0x144] sm:$0xf] }
 0x1f1   : > { %v3584_v42 = vpop.f32.mrf.mxu3 }
 0x1f2   : > { %v3552_v24 = vpop.f32.mrf.mxu1 }
 0x1f3   : > { %v3553_v36 = vadd.f32 %v3552_v24, %v10942_v12  ;;  %v9555_v12 = vld [vmem:[%s11764_s3 + $0x200] sm:$0xff]  ;;  %v9250_v24 = vld [vmem:[#allocation2 + $0x1a4] sm:$0xf0] }
 0x1f4   : > { %5007 = vmatpush.bf16.msrb.mxu1 %v9555_v12  ;;  %5732 = vmatpush.bf16.msra.mxu2 %v9642_v16  ;;  %v7882_v25 = vor.u32 %v9250_v24, %v7881_v5  ;;  %v9621_v5 = vld [vmem:[%s11764_s3 + $0x350] sm:$0xff] }
 0x1f5   : > { %v3582_v35 = vadd.f32 %v3581_v46, %v3553_v36  ;;  %4989 = vmatmul.bf16.gmra.mxu2 %v8230_v22  ;;  %v9624_v22 = vld [vmem:[%s11764_s3 + $0x368] sm:$0xff]  ;;  %v9633_v36 = vld [vmem:[%s11764_s3 + $0x3b0] sm:$0xff] }
 0x1f6   : > { %5676 = vmatpush.bf16.msra.mxu3 %v9624_v22  ;;  %5704 = vmatpush.bf16.msra.mxu0 %v9633_v36  ;;  %v9614_v22 = vld [vmem:[%s11764_s3 + $0x318] sm:$0xff] }
 0x1f7   : > { %v11121_v18 = vadd.f32 %v3610_v54, %v3582_v35  ;;  %v9536_v54 = vld [vmem:[#allocation2 + $0x1ac] sm:$0xf0]  ;;  %v9638_v36 = vld [vmem:[%s11764_s3 + $0x3d8] sm:$0xff] }
 0x1f8   : > { %v3613_v37 = vpop.f32.mrf.mxu0  ;;  %v11129_v44 = vpop.f32.mrf.mxu2  ;;  %5645 = vmatpush.bf16.msra.mxu1 %v9618_v63  ;;  %5733 = vmatpush.bf16.msra.mxu2 %v9641_v49  ;;  %v8250_v14 = vor.u32 %v9536_v54, %v8249_v55  ;;  %v9632_v63 = vld [vmem:[%s11764_s3 + $0x3a8] sm:$0xff] }
 0x1f9   : > { %v3586_v32 = vpop.f32.mrf.mxu3 }
 0x1fa   : > { %v3555_v43 = vpop.f32.mrf.mxu1  ;;  %5677 = vmatpush.bf16.msra.mxu3 %v9623_v34  ;;  %5705 = vmatpush.bf16.msra.mxu0 %v9632_v63  ;;  %v9525_v34 = vld [vmem:[#allocation2 + $0x154] sm:$0xf0]  ;;  %v9620_v63 = vld [vmem:[%s11764_s3 + $0x348] sm:$0xff] }
 0x1fb   : > { %v3556_v31 = vadd.f32 %v3555_v43, %v10965_v30  ;;  %4960 = vmatmul.bf16.gmra.mxu0 %v8226_v27  ;;  %v9517_v43 = vld [vmem:[#allocation2 + $0x11c] sm:$0xf]  ;;  %v8195_v27 = vld [vmem:[#allocation2 + $0x130] sm:$0xf0] }
 0x1fc   : > { %5646 = vmatpush.bf16.msra.mxu1 %v9617_v8  ;;  %5734 = vmatpush.bf16.msra.mxu2 %v9640_v6  ;;  %v9637_v6 = vld [vmem:[%s11764_s3 + $0x3d0] sm:$0xff] }
 0x1fd   : > { %v3585_v3 = vadd.f32 %v3584_v42, %v3556_v31  ;;  %4194 = vmatmul.bf16.gmra.mxu1 %v7858_v23 }
 0x1fe   : > { %4228 = vmatmul.bf16.gmra.mxu3 %v7886_v38  ;;  %v11195_v38 = vadd.f32 %v11045_v59, %v11058_v51  ;;  %v9639_v59 = vld [vmem:[%s11764_s3 + $0x3e0] sm:$0xff] }
 0x1ff   : > { %v11148_v30 = vadd.f32 %v3613_v37, %v3585_v3  ;;  %v8198_v3 = vor.u32 %v9517_v43, %v8195_v27  ;;  %v9526_v43 = vld [vmem:[#allocation2 + $0x15c] sm:$0xf0]  ;;  %v9528_v27 = vld [vmem:[#allocation2 + $0x174] sm:$0xf] }
 0x200   : > { %v3615_v46 = vpop.f32.mrf.mxu0  ;;  %v11150_v11 = vpop.f32.mrf.mxu2  ;;  %5647 = vmatpush.bf16.msra.mxu1 %v9616_v56  ;;  %5735 = vmatpush.bf16.msra.mxu2 %v9639_v59  ;;  %v9613_v56 = vld [vmem:[%s11764_s3 + $0x310] sm:$0xff] }
 0x201   : > { %v3589_v17 = vpop.f32.mrf.mxu3 }
 0x202   : > { %v3557_v4 = vpop.f32.mrf.mxu1 }
 0x203   : > { %v3558_v13 = vadd.f32 %v3557_v4, %v10981_v52  ;;  %v9516_v52 = vld [vmem:[#allocation2 + $0x114] sm:$0xf]  ;;  %v8211_v4 = vld [vmem:[#allocation2 + $0x158] sm:$0xf0] }
 0x204   : > { %v8190_v41 = vor.u32 %v9516_v52, %v8187_v50  ;;  %5648 = vmatpush.bf16.msra.mxu1 %v9615_v28  ;;  %v8185_v52 = vld [vmem:[#allocation2 + $0x110] sm:$0xf]  ;;  %v8214_v50 = vor.u32 %v9522_v61, %v8211_v4  ;;  %5736 = vmatpush.bf16.msra.mxu2 %v9638_v36 }
 0x205   : > { %v3587_v1 = vadd.f32 %v3586_v32, %v3558_v13  ;;  %4994 = vmatmul.bf16.gmra.mxu2 %v8254_v15  ;;  %v9622_v13 = vld [vmem:[%s11764_s3 + $0x358] sm:$0xff] }
 0x206   : > { %5678 = vmatpush.bf16.msra.mxu3 %v9622_v13  ;;  %v9612_v13 = vld [vmem:[%s11764_s3 + $0x308] sm:$0xff] }
 0x207   : > { %v11169_v21 = vadd.f32 %v3615_v46, %v3587_v1  ;;  %v9520_v46 = vld [vmem:[#allocation2 + $0x12c] sm:$0xf0]  ;;  %v9631_v1 = vld [vmem:[%s11764_s3 + $0x3a0] sm:$0xff] }
 0x208   : > { %v3618_v42 = vpop.f32.mrf.mxu0  ;;  %v11171_v7 = vpop.f32.mrf.mxu2  ;;  %v8194_v49 = vor.u32 %v9520_v46, %v8193_v57  ;;  %5706 = vmatpush.bf16.msra.mxu0 %v9631_v1  ;;  %5649 = vmatpush.bf16.msra.mxu1 %v9614_v22  ;;  %v8209_v46 = vld [vmem:[#allocation2 + $0x140] sm:$0xf]  ;;  %v9636_v1 = vld [vmem:[%s11764_s3 + $0x3c8] sm:$0xff] }
 0x209   : > { %v3591_v0 = vpop.f32.mrf.mxu3  ;;  %5737 = vmatpush.bf16.msra.mxu2 %v9637_v6 }
 0x20a   : > { %v3560_v35 = vpop.f32.mrf.mxu1  ;;  %5679 = vmatpush.bf16.msra.mxu3 %v9621_v5  ;;  %v9532_v5 = vld [vmem:[#allocation2 + $0x18c] sm:$0xf0] }
 0x20b   : > { %v3561_v12 = vadd.f32 %v3560_v35, %v11005_v48  ;;  %4965 = vmatmul.bf16.gmra.mxu0 %v8250_v14  ;;  %v9523_v35 = vld [vmem:[#allocation2 + $0x14c] sm:$0xf]  ;;  %v8219_v14 = vld [vmem:[#allocation2 + $0x160] sm:$0xf0] }
 0x20c   : > { %5650 = vmatpush.bf16.msra.mxu1 %v9613_v56 }
 0x20d   : > { %v3590_v37 = vadd.f32 %v3589_v17, %v3561_v12  ;;  %4199 = vmatmul.bf16.gmra.mxu1 %v7882_v25  ;;  %v9519_v17 = vld [vmem:[#allocation2 + $0x124] sm:$0xf0]  ;;  %v8222_v25 = vor.u32 %v9523_v35, %v8219_v14  ;;  %5738 = vmatpush.bf16.msra.mxu2 %v9636_v1  ;;  %v9635_v35 = vld [vmem:[%s11764_s3 + $0x3c0] sm:$0xff] }
 0x20e   : > { %5037 = vmatmul.bf16.vlgmr.msrb.gmra.mxu3 %v8190_v41  ;;  %v9611_v14 = vld [vmem:[%s11764_s3 + $0x300] sm:$0xff] }
 0x20f   : > { %v11186_v62 = vadd.f32 %v3618_v42, %v3590_v37  ;;  %v8186_v42 = vor.u32 %v9519_v17, %v8185_v52  ;;  %v9630_v37 = vld [vmem:[%s11764_s3 + $0x398] sm:$0xff]  ;;  %v8210_v17 = vor.u32 %v9525_v34, %v8209_v46  ;;  %5680 = vmatpush.bf16.msra.mxu3 %v9620_v63  ;;  %v8267_v1 = vld [vmem:[#allocation2 + $0x1c0] sm:$0xf0] }
 0x210   : > { %v3620_v48 = vpop.f32.mrf.mxu0  ;;  %v11188_v32 = vpop.f32.mrf.mxu2  ;;  %5707 = vmatpush.bf16.msra.mxu0 %v9630_v37  ;;  %5651 = vmatpush.bf16.msra.mxu1 %v9612_v13  ;;  %v9531_v37 = vld [vmem:[#allocation2 + $0x184] sm:$0xf0]  ;;  %v9535_v13 = vld [vmem:[#allocation2 + $0x1ac] sm:$0xf] }
 0x211   : > { %v4098_v23 = vpop.f32.mrf.mxu3  ;;  %5739 = vmatpush.bf16.msra.mxu2 %v9635_v35  ;;  %v9587_v35 = vld [vmem:[#allocation2 + $0x34] sm:$0xf] }
 0x212   : > { %v3562_v31 = vpop.f32.mrf.mxu1 }
 0x213   : > { %v3563_v16 = vadd.f32 %v3562_v31, %v11028_v33 }
 0x214   : > { %5652 = vmatpush.bf16.msra.mxu1 %v9611_v14  ;;  %v8563_v14 = vld [vmem:[#allocation2 + $0x48] sm:$0xf0] }
 0x215   : > { %v3592_v47 = vadd.f32 %v3591_v0, %v3563_v16  ;;  %5095 = vmatmul.bf16.vlgmr.msrb.gmra.mxu2 %v8198_v3  ;;  %v8217_v3 = vld [vmem:[#allocation2 + $0x148] sm:$0xf]  ;;  %v9629_v16 = vld [vmem:[%s11764_s3 + $0x390] sm:$0xff] }
 0x216   : > { %v8218_v28 = vor.u32 %v9526_v43, %v8217_v3  ;;  %5708 = vmatpush.bf16.msra.mxu0 %v9629_v16  ;;  %v8241_v43 = vld [vmem:[#allocation2 + $0x178] sm:$0xf]  ;;  %v8233_v3 = vld [vmem:[#allocation2 + $0x170] sm:$0xf]  ;;  %v9627_v16 = vld [vmem:[%s11764_s3 + $0x380] sm:$0xff] }
 0x217   : > { %v11207_v51 = vadd.f32 %v3620_v48, %v3592_v47  ;;  %v8235_v48 = vld [vmem:[#allocation2 + $0x188] sm:$0xf0] }
 0x218   : > { %v11209_v33 = vpop.f32.mrf.mxu0  ;;  %v11211_v15 = vpop.f32.mrf.mxu2  ;;  %v8238_v61 = vor.u32 %v9528_v27, %v8235_v48  ;;  %v8242_v48 = vor.u32 %v9532_v5, %v8241_v43  ;;  %v9537_v5 = vld [vmem:[#allocation2 + $0x1b4] sm:$0xf0] }
 0x219   : > { %v11219_v54 = vpop.f32.mrf.mxu3 }
 0x21a   : > { %v4069_v8 = vpop.f32.mrf.mxu1 }
 0x21b   : > { %v4070_v24 = vadd.f32 %v4069_v8, %v11015_v45  ;;  %5066 = vmatmul.bf16.vlgmr.msrb.gmra.mxu0 %v8194_v49  ;;  %v9619_v8 = vld [vmem:[%s11764_s3 + $0x340] sm:$0xff]  ;;  %v8243_v49 = vld [vmem:[#allocation2 + $0x190] sm:$0xf0] }
 0x21c   : > { %5681 = vmatpush.bf16.msra.mxu3 %v9619_v8 }
 0x21d   : > { %v11222_v55 = vadd.f32 %v4098_v23, %v4070_v24  ;;  %5008 = vmatmul.bf16.vlgmr.msrb.gmra.mxu1 %v8186_v42  ;;  %v9628_v24 = vld [vmem:[%s11764_s3 + $0x388] sm:$0xff] }
 0x21e   : > { %5042 = vmatmul.bf16.gmra.mxu3 %v8214_v50  ;;  %5709 = vmatpush.bf16.msra.mxu0 %v9628_v24  ;;  %v9657_v24 = vld [vmem:[%s11764_s3 + $0x470] sm:$0xff] }
 0x220   : > { %v11230_v45 = vpop.f32.mrf.mxu0  ;;  %v11232_v0 = vpop.f32.mrf.mxu2 }
 0x221   : > { %v4103_v12 = vpop.f32.mrf.mxu3 }
 0x222   : > { %v11237_v41 = vpop.f32.mrf.mxu1  ;;  %5710 = vmatpush.bf16.msra.mxu0 %v9627_v16 }
 0x225   : > { %5100 = vmatmul.bf16.gmra.mxu2 %v8222_v25  ;;  %v8259_v25 = vld [vmem:[#allocation2 + $0x1b8] sm:$0xf0] }
 0x228   : > { %v11248_v31 = vpop.f32.mrf.mxu0  ;;  %v11250_v23 = vpop.f32.mrf.mxu2 }
 0x229   : > { %v11258_v59 = vpop.f32.mrf.mxu3 }
 0x22a   : > { %v4074_v47 = vpop.f32.mrf.mxu1 }
 0x22b   : > { %v4075_v4 = vadd.f32 %v4074_v47, %v11056_v2  ;;  %5071 = vmatmul.bf16.gmra.mxu0 %v8218_v28  ;;  %v9529_v2 = vld [vmem:[#allocation2 + $0x17c] sm:$0xf]  ;;  %v4128_v28 = vadd.f32 %v11209_v33, %v11222_v55 }
 0x22c   : > { %v8246_v36 = vor.u32 %v9529_v2, %v8243_v49  ;;  %v9658_v47 = vld [vmem:[%s11764_s3 + $0x478] sm:$0xff]  ;;  %v8270_v49 = vor.u32 %v9535_v13, %v8267_v1  ;;  %v9656_v13 = vld [vmem:[%s11764_s3 + $0x468] sm:$0xff] }
 0x22d   : > { %v11261_v57 = vadd.f32 %v4103_v12, %v4075_v4  ;;  %5013 = vmatmul.bf16.gmra.mxu1 %v8210_v17  ;;  %v9534_v12 = vld [vmem:[#allocation2 + $0x1a4] sm:$0xf]  ;;  %5790 = vmatpush.bf16.msrb.mxu3 %v9658_v47  ;;  %v11303_v4 = vadd.f32 %v11211_v15, %v4128_v28  ;;  %v9482_v33 = vld [vmem:[%s11764_s3 + $0x78] sm:$0xff]  ;;  %v9649_v28 = vld [vmem:[%s11764_s3 + $0x430] sm:$0xff] }
 0x22e   : > { %5047 = vmatmul.bf16.gmra.mxu3 %v8238_v61  ;;  %v8262_v63 = vor.u32 %v9534_v12, %v8259_v25  ;;  %v8234_v61 = vor.u32 %v9531_v37, %v8233_v3  ;;  %6256 = vmatpush.bf16.msrb.mxu2 %v9482_v33  ;;  %v8265_v37 = vld [vmem:[#allocation2 + $0x1a8] sm:$0xf]  ;;  %v8257_v3 = vld [vmem:[#allocation2 + $0x1a0] sm:$0xf] }
 0x22f   : > { %v8258_v47 = vor.u32 %v9537_v5, %v8257_v3  ;;  %v4072_v5 = vadd.f32 %v11237_v41, %v11037_v29  ;;  %v9590_v3 = vld [vmem:[#allocation2 + $0x44] sm:$0xf0]  ;;  %v8561_v29 = vld [vmem:[#allocation2 + $0x30] sm:$0xf] }
 0x230   : > { %v11272_v52 = vpop.f32.mrf.mxu0  ;;  %v11274_v50 = vpop.f32.mrf.mxu2 }
 0x231   : > { %v4108_v22 = vpop.f32.mrf.mxu3  ;;  %5791 = vmatpush.bf16.msrb.mxu3 %v9657_v24 }
 0x232   : > { %v11279_v42 = vpop.f32.mrf.mxu1 }
 0x235   : > { %5105 = vmatmul.bf16.gmra.mxu2 %v8246_v36  ;;  %v9538_v36 = vld [vmem:[#allocation2 + $0x1bc] sm:$0xf0]  ;;  %5792 = vmatpush.bf16.msrb.mxu3 %v9656_v13 }
 0x238   : > { %v11287_v56 = vpop.f32.mrf.mxu0  ;;  %v11289_v6 = vpop.f32.mrf.mxu2 }
 0x239   : > { %v11291_v34 = vpop.f32.mrf.mxu3 }
 0x23a   : > { %v4079_v27 = vpop.f32.mrf.mxu1 }
 0x23b   : > { %v4080_v46 = vadd.f32 %v4079_v27, %v11098_v20  ;;  %5076 = vmatmul.bf16.gmra.mxu0 %v8242_v48  ;;  %v9650_v20 = vld [vmem:[%s11764_s3 + $0x438] sm:$0xff]  ;;  %v8266_v27 = vor.u32 %v9538_v36, %v8265_v37  ;;  %v9480_v36 = vld [vmem:[%s11764_s3 + $0x68] sm:$0xff]  ;;  %v9591_v37 = vld [vmem:[#allocation2 + $0x4c] sm:$0xf0] }
 0x23c   : > { %5761 = vmatpush.bf16.msrb.mxu1 %v9650_v20 }
 0x23d   : > { %v11305_v17 = vadd.f32 %v4108_v22, %v4080_v46  ;;  %5018 = vmatmul.bf16.gmra.mxu1 %v8234_v61  ;;  %v9474_v22 = vld [vmem:[%s11764_s3 + $0x38] sm:$0xff]  ;;  %v4133_v46 = vadd.f32 %v11248_v31, %v11261_v57  ;;  %v9481_v61 = vld [vmem:[%s11764_s3 + $0x70] sm:$0xff] }
 0x23e   : > { %5052 = vmatmul.bf16.gmra.mxu3 %v8262_v63  ;;  %6227 = vmatpush.bf16.msrb.mxu0 %v9474_v22  ;;  %v8566_v63 = vor.u32 %v9587_v35, %v8563_v14  ;;  %v9588_v31 = vld [vmem:[#allocation2 + $0x3c] sm:$0xf]  ;;  %v8571_v57 = vld [vmem:[#allocation2 + $0x50] sm:$0xf0]  ;;  %v9655_v35 = vld [vmem:[%s11764_s3 + $0x460] sm:$0xff] }
 0x23f   : > { %v11349_v20 = vadd.f32 %v11250_v23, %v4133_v46  ;;  %6257 = vmatpush.bf16.msrb.mxu2 %v9481_v61  ;;  %v9648_v23 = vld [vmem:[%s11764_s3 + $0x428] sm:$0xff]  ;;  %5793 = vmatpush.bf16.msrb.mxu3 %v9655_v35 }
 0x240   : > { %v11307_v8 = vpop.f32.mrf.mxu0  ;;  %v11309_v2 = vpop.f32.mrf.mxu2  ;;  %5762 = vmatpush.bf16.msrb.mxu1 %v9649_v28  ;;  %v9472_v14 = vld [vmem:[%s11764_s3 + $0x28] sm:$0xff]  ;;  %v8569_v28 = vld [vmem:[#allocation2 + $0x38] sm:$0xf] }
 0x241   : > { %v4113_v55 = vpop.f32.mrf.mxu3  ;;  %v8570_v13 = vor.u32 %v9591_v37, %v8569_v28  ;;  %v8595_v37 = vld [vmem:[#allocation2 + $0x80] sm:$0xf0]  ;;  %v4077_v28 = vadd.f32 %v11279_v42, %v11077_v26  ;;  %v8611_v26 = vld [vmem:[#allocation2 + $0xa8] sm:$0xf0] }
 0x242   : > { %v11317_v15 = vpop.f32.mrf.mxu1 }
 0x243   : > { %6258 = vmatpush.bf16.msrb.mxu2 %v9480_v36  ;;  %v9654_v36 = vld [vmem:[%s11764_s3 + $0x458] sm:$0xff]  ;;  %v4106_v42 = vadd.f32 %v11258_v59, %v4077_v28 }
 0x244   : > { %5763 = vmatpush.bf16.msrb.mxu1 %v9648_v23  ;;  %v9479_v23 = vld [vmem:[%s11764_s3 + $0x60] sm:$0xff]  ;;  %5794 = vmatpush.bf16.msrb.mxu3 %v9654_v36 }
 0x245   : > { %5110 = vmatmul.bf16.gmra.mxu2 %v8270_v49 }
 0x247   : > { %6259 = vmatpush.bf16.msrb.mxu2 %v9479_v23 }
 0x248   : > { %v11325_v12 = vpop.f32.mrf.mxu0  ;;  %v11327_v25 = vpop.f32.mrf.mxu2 }
 0x249   : > { %v11329_v48 = vpop.f32.mrf.mxu3 }
 0x24a   : > { %v4084_v43 = vpop.f32.mrf.mxu1 }
 0x24b   : > { %v4085_v16 = vadd.f32 %v4084_v43, %v11146_v40  ;;  %5081 = vmatmul.bf16.gmra.mxu0 %v8266_v27  ;;  %v9473_v40 = vld [vmem:[%s11764_s3 + $0x30] sm:$0xff]  ;;  %v9593_v43 = vld [vmem:[#allocation2 + $0x64] sm:$0xf]  ;;  %v8587_v27 = vld [vmem:[#allocation2 + $0x78] sm:$0xf0] }
 0x24c   : > { %6228 = vmatpush.bf16.msrb.mxu0 %v9473_v40  ;;  %v8590_v41 = vor.u32 %v9593_v43, %v8587_v27 }
 0x24d   : > { %v11346_v1 = vadd.f32 %v4113_v55, %v4085_v16  ;;  %5023 = vmatmul.bf16.gmra.mxu1 %v8258_v47  ;;  %v8574_v55 = vor.u32 %v9588_v31, %v8571_v57  ;;  %v8562_v57 = vor.u32 %v9590_v3, %v8561_v29 }
 0x24e   : > { %5682 = vmatmul.bf16.vlgmr.msra.gmra.mxu3 %v8566_v63  ;;  %v4101_v63 = vadd.f32 %v11219_v54, %v4072_v5  ;;  %v4138_v54 = vadd.f32 %v11287_v56, %v11305_v17  ;;  %v9594_v17 = vld [vmem:[#allocation2 + $0x6c] sm:$0xf] }
 0x250   : > { %v11351_v33 = vpop.f32.mrf.mxu0  ;;  %v11353_v49 = vpop.f32.mrf.mxu2  ;;  %6229 = vmatpush.bf16.msrb.mxu0 %v9472_v14  ;;  %v4130_v14 = vadd.f32 %v11230_v45, %v4101_v63  ;;  %v11391_v5 = vadd.f32 %v11289_v6, %v4138_v54  ;;  %v8598_v63 = vor.u32 %v9594_v17, %v8595_v37  ;;  %v8585_v37 = vld [vmem:[#allocation2 + $0x60] sm:$0xf] }
 0x251   : > { %v4214_v22 = vpop.f32.mrf.mxu3 }
 0x252   : > { %v11355_v24 = vpop.f32.mrf.mxu1  ;;  %v4159_v3 = vadd.f32 %v11232_v0, %v4130_v14  ;;  %v9653_v0 = vld [vmem:[%s11764_s3 + $0x450] sm:$0xff] }
 0x253   : > { %5795 = vmatpush.bf16.msrb.mxu3 %v9653_v0 }
 0x255   : > { %5740 = vmatmul.bf16.vlgmr.msra.gmra.mxu2 %v8574_v55  ;;  %v9647_v55 = vld [vmem:[%s11764_s3 + $0x420] sm:$0xff] }
 0x256   : > { %5764 = vmatpush.bf16.msrb.mxu1 %v9647_v55 }
 0x258   : > { %v4951_v16 = vpop.f32.mrf.mxu0  ;;  %v4980_v47 = vpop.f32.mrf.mxu2 }
 0x259   : > { %v11372_v46 = vadd.f32 %v4980_v47, %v4951_v16  ;;  %v4216_v40 = vpop.f32.mrf.mxu3  ;;  %v9646_v47 = vld [vmem:[%s11764_s3 + $0x418] sm:$0xff] }
 0x25a   : > { %v4185_v61 = vpop.f32.mrf.mxu1  ;;  %5765 = vmatpush.bf16.msrb.mxu1 %v9646_v47  ;;  %v9652_v47 = vld [vmem:[%s11764_s3 + $0x448] sm:$0xff] }
 0x25b   : > { %v4186_v31 = vadd.f32 %v4185_v61, %v11303_v4  ;;  %5711 = vmatmul.bf16.vlgmr.msra.gmra.mxu0 %v8570_v13  ;;  %v9471_v4 = vld [vmem:[%s11764_s3 + $0x20] sm:$0xff]  ;;  %v9470_v61 = vld [vmem:[%s11764_s3 + $0x18] sm:$0xff]  ;;  %v3635_v13 = vadd.f32 %v11066_v19, %v11079_v9  ;;  %5796 = vmatpush.bf16.msrb.mxu3 %v9652_v47 }
 0x25c   : > { %6230 = vmatpush.bf16.msrb.mxu0 %v9471_v4  ;;  %v9596_v19 = vld [vmem:[#allocation2 + $0x74] sm:$0xf0]  ;;  %v8593_v4 = vld [vmem:[#allocation2 + $0x68] sm:$0xf] }
 0x25d   : > { %v4215_v35 = vadd.f32 %v4214_v22, %v4186_v31  ;;  %5653 = vmatmul.bf16.vlgmr.msra.gmra.mxu1 %v8562_v57  ;;  %v9597_v31 = vld [vmem:[#allocation2 + $0x7c] sm:$0xf0]  ;;  %v9599_v57 = vld [vmem:[#allocation2 + $0x94] sm:$0xf] }
 0x25e   : > { %5687 = vmatmul.bf16.gmra.mxu3 %v8590_v41  ;;  %v8594_v17 = vor.u32 %v9597_v31, %v8593_v4  ;;  %v9603_v4 = vld [vmem:[#allocation2 + $0xac] sm:$0xf0] }
 0x25f   : > { %v4234_v56 = vadd.f32 %v4215_v35, %v11195_v38  ;;  %v9478_v38 = vld [vmem:[%s11764_s3 + $0x58] sm:$0xff] }
 0x260   : > { %v4953_v43 = vpop.f32.mrf.mxu0  ;;  %v4982_v27 = vpop.f32.mrf.mxu2  ;;  %6260 = vmatpush.bf16.msrb.mxu2 %v9478_v38  ;;  %6231 = vmatpush.bf16.msrb.mxu0 %v9470_v61  ;;  %v3638_v38 = vadd.f32 %v11087_v39, %v11100_v10  ;;  %v9600_v61 = vld [vmem:[#allocation2 + $0x9c] sm:$0xf] }
 0x261   : > { %v11395_v22 = vadd.f32 %v4982_v27, %v4953_v43  ;;  %v4219_v45 = vpop.f32.mrf.mxu3  ;;  %v4272_v9 = vmul.f32 %v4234_v56, %v4234_v56  ;;  %v8614_v43 = vor.u32 %v9599_v57, %v8611_v26 }
 0x262   : > { %v4187_v16 = vpop.f32.mrf.mxu1 }
 0x263   : > { %v4188_v6 = vadd.f32 %v4187_v16, %v4159_v3  ;;  %v8586_v16 = vor.u32 %v9596_v19, %v8585_v37  ;;  %v9644_v19 = vld [vmem:[%s11764_s3 + $0x408] sm:$0xff] }
 0x264   : > { %v9602_v37 = vld [vmem:[#allocation2 + $0xa4] sm:$0xf0] }
 0x265   : > { %v4217_v29 = vadd.f32 %v4216_v40, %v4188_v6  ;;  %5745 = vmatmul.bf16.gmra.mxu2 %v8598_v63  ;;  %v4143_v63 = vadd.f32 %v11325_v12, %v11346_v1  ;;  %v9477_v6 = vld [vmem:[%s11764_s3 + $0x50] sm:$0xff]  ;;  %v4135_v12 = vadd.f32 %v11272_v52, %v4106_v42 }
 0x266   : > { %6261 = vmatpush.bf16.msrb.mxu2 %v9477_v6  ;;  %v8609_v6 = vld [vmem:[#allocation2 + $0x90] sm:$0xf] }
 0x267   : > { %v4235_v41 = vadd.f32 %v4217_v29, %v3635_v13  ;;  %v11443_v1 = vadd.f32 %v11327_v25, %v4143_v63  ;;  %v8619_v13 = vld [vmem:[#allocation2 + $0xb0] sm:$0xf0]  ;;  %v4164_v39 = vadd.f32 %v11274_v50, %v4135_v12  ;;  %v9468_v50 = vld [vmem:[%s11764_s3 + $0x8] sm:$0xff] }
 0x268   : > { %v4956_v23 = vpop.f32.mrf.mxu0  ;;  %v4985_v36 = vpop.f32.mrf.mxu2  ;;  %v8622_v25 = vor.u32 %v9600_v61, %v8619_v13  ;;  %v9606_v13 = vld [vmem:[#allocation2 + $0xcc] sm:$0xf] }
 0x269   : > { %v9662_v40 = vpack.c.bf16 %v4235_v41, %v4234_v56  ;;  %v4258_v55 = vadd.f32 %v4235_v41, %v4234_v56  ;;  %v4273_v54 = vmul.f32 %v4235_v41, %v4235_v41  ;;  %v11421_v35 = vadd.f32 %v4985_v36, %v4956_v23  ;;  %v4221_v59 = vpop.f32.mrf.mxu3  ;;  %v9645_v56 = vld [vmem:[%s11764_s3 + $0x410] sm:$0xff] }
 0x26a   : > { %v4190_v14 = vpop.f32.mrf.mxu1  ;;  %5766 = vmatpush.bf16.msrb.mxu1 %v9645_v56 }
 0x26b   : > { %9663 = vst [vmem:[%s11419_s12] sm:$0xff] %v9662_v40   ;;  %v4280_v27 = vadd.f32 %v4273_v54, %v4272_v9  ;;  %v4191_v3 = vadd.f32 %v4190_v14, %v11349_v20  ;;  %5716 = vmatmul.bf16.gmra.mxu0 %v8594_v17  ;;  %v9469_v20 = vld [vmem:[%s11764_s3 + $0x10] sm:$0xff]  ;;  %v9476_v9 = vld [vmem:[%s11764_s3 + $0x48] sm:$0xff]  ;;  %v9651_v40 = vld [vmem:[%s11764_s3 + $0x440] sm:$0xff]  ;;  %v3640_v54 = vadd.f32 %v11111_v58, %v11121_v18 }
 0x26c   : > { %6232 = vmatpush.bf16.msrb.mxu0 %v9469_v20  ;;  %6262 = vmatpush.bf16.msrb.mxu2 %v9476_v9  ;;  %v9605_v14 = vld [vmem:[#allocation2 + $0xc4] sm:$0xf]  ;;  %v8635_v17 = vld [vmem:[#allocation2 + $0xd8] sm:$0xf0]  ;;  %v8617_v58 = vld [vmem:[#allocation2 + $0x98] sm:$0xf] }
 0x26d   : > { %v4220_v28 = vadd.f32 %v4219_v45, %v4191_v3  ;;  %5658 = vmatmul.bf16.gmra.mxu1 %v8586_v16  ;;  %5797 = vmatpush.bf16.msrb.mxu3 %v9651_v40  ;;  %v8618_v56 = vor.u32 %v9603_v4, %v8617_v58  ;;  %v8638_v47 = vor.u32 %v9605_v14, %v8635_v17  ;;  %v8641_v9 = vld [vmem:[#allocation2 + $0xc8] sm:$0xf]  ;;  %v9609_v40 = vld [vmem:[#allocation2 + $0xdc] sm:$0xf0] }
 0x26e   : > { %5692 = vmatmul.bf16.gmra.mxu3 %v8614_v43  ;;  %5767 = vmatpush.bf16.msrb.mxu1 %v9644_v19 }
 0x26f   : > { %v4236_v0 = vadd.f32 %v4220_v28, %v3638_v38  ;;  %v8610_v28 = vor.u32 %v9602_v37, %v8609_v6 }
 0x270   : > { %v4958_v31 = vpop.f32.mrf.mxu0  ;;  %v4987_v57 = vpop.f32.mrf.mxu2  ;;  %6233 = vmatpush.bf16.msrb.mxu0 %v9468_v50  ;;  %v8633_v50 = vld [vmem:[#allocation2 + $0xc0] sm:$0xf] }
 0x271   : > { %v4259_v29 = vadd.f32 %v4258_v55, %v4236_v0  ;;  %v4274_v41 = vmul.f32 %v4236_v0, %v4236_v0  ;;  %v11446_v10 = vadd.f32 %v4987_v57, %v4958_v31  ;;  %v4224_v45 = vpop.f32.mrf.mxu3  ;;  %v4082_v55 = vadd.f32 %v11317_v15, %v11119_v60 }
 0x272   : > { %v4192_v52 = vpop.f32.mrf.mxu1 }
 0x273   : > { %v4281_v26 = vadd.f32 %v4280_v27, %v4274_v41  ;;  %v4193_v42 = vadd.f32 %v4192_v52, %v4164_v39  ;;  %v4111_v43 = vadd.f32 %v11291_v34, %v4082_v55  ;;  %v3643_v34 = vadd.f32 %v11129_v44, %v11148_v30  ;;  %v9589_v55 = vld [vmem:[#allocation2 + $0x44] sm:$0xf] }
 0x275   : > { %v4222_v23 = vadd.f32 %v4221_v59, %v4193_v42  ;;  %5750 = vmatmul.bf16.gmra.mxu2 %v8622_v25 }
 0x277   : > { %v4237_v36 = vadd.f32 %v4222_v23, %v3640_v54  ;;  %v8579_v54 = vld [vmem:[#allocation2 + $0x58] sm:$0xf0]  ;;  %v9475_v23 = vld [vmem:[%s11764_s3 + $0x40] sm:$0xff] }
 0x278   : > { %v4961_v15 = vpop.f32.mrf.mxu0  ;;  %v4990_v16 = vpop.f32.mrf.mxu2  ;;  %6263 = vmatpush.bf16.msrb.mxu2 %v9475_v23  ;;  %v8582_v58 = vor.u32 %v9589_v55, %v8579_v54  ;;  %v9446_v55 = vld [vmem:[#allocation2 + $0x2c] sm:$0xf0]  ;;  %v8603_v54 = vld [vmem:[#allocation2 + $0x88] sm:$0xf0]  ;;  %v9592_v23 = vld [vmem:[#allocation2 + $0x54] sm:$0xf0] }
 0x279   : > { %v9667_v27 = vpack.c.bf16 %v4237_v36, %v4236_v0  ;;  %v4260_v3 = vadd.f32 %v4259_v29, %v4237_v36  ;;  %v4275_v60 = vmul.f32 %v4237_v36, %v4237_v36  ;;  %v11465_v18 = vadd.f32 %v4990_v16, %v4961_v15  ;;  %v4226_v63 = vpop.f32.mrf.mxu3  ;;  %v8643_v29 = vld [vmem:[#allocation2 + $0xe0] sm:$0xf0] }
 0x27a   : > { %v4195_v59 = vpop.f32.mrf.mxu1  ;;  %v4140_v0 = vadd.f32 %v11307_v8, %v4111_v43  ;;  %v8646_v42 = vor.u32 %v9606_v13, %v8643_v29  ;;  %v4087_v8 = vadd.f32 %v11355_v24, %v11161_v53  ;;  %v9643_v36 = vld [vmem:[%s11764_s3 + $0x400] sm:$0xff]  ;;  %v9608_v24 = vld [vmem:[#allocation2 + $0xd4] sm:$0xf0]  ;;  %v8642_v15 = vor.u32 %v9609_v40, %v8641_v9  ;;  %v8851_v13 = vld [vmem:[#allocation2 + $0x30] sm:$0xf0] }
 0x27b   : > { %9699 = vst [vmem:[%s11419_s12 + $0x8] sm:$0xff] %v9667_v27   ;;  %v4282_v20 = vadd.f32 %v4281_v26, %v4275_v60  ;;  %v4196_v38 = vadd.f32 %v4195_v59, %v11391_v5  ;;  %5721 = vmatmul.bf16.gmra.mxu0 %v8618_v56  ;;  %5768 = vmatpush.bf16.msrb.mxu1 %v9643_v36  ;;  %v9514_v27 = vld [vmem:[%s11764_s3 + $0x178] sm:$0xff]  ;;  %v9496_v29 = vld [vmem:[%s11764_s3 + $0xe8] sm:$0xff]  ;;  %v9487_v9 = vld [vmem:[%s11764_s3 + $0xa0] sm:$0xff] }
 0x27c   : > { %v4169_v52 = vadd.f32 %v11309_v2, %v4140_v0  ;;  %v4116_v53 = vadd.f32 %v11329_v48, %v4087_v8  ;;  %v9490_v48 = vld [vmem:[%s11764_s3 + $0xb8] sm:$0xff]  ;;  %v8634_v6 = vor.u32 %v9608_v24, %v8633_v50  ;;  %6372 = vmatpush.bf16.msra.mxu2 %v9514_v27  ;;  %v9511_v40 = vld [vmem:[%s11764_s3 + $0x160] sm:$0xff] }
 0x27d   : > { %v4225_v12 = vadd.f32 %v4224_v45, %v4196_v38  ;;  %5663 = vmatmul.bf16.gmra.mxu1 %v8610_v28  ;;  %v3645_v45 = vadd.f32 %v11150_v11, %v11169_v21  ;;  %v9467_v11 = vld [vmem:[%s11764_s3] sm:$0xff]  ;;  %v9498_v21 = vld [vmem:[%s11764_s3 + $0xf8] sm:$0xff]  ;;  %v9513_v38 = vld [vmem:[%s11764_s3 + $0x170] sm:$0xff]  ;;  %v3648_v28 = vadd.f32 %v11171_v7, %v11186_v62 }
 0x27e   : > { %5697 = vmatmul.bf16.gmra.mxu3 %v8638_v47  ;;  %6234 = vmatpush.bf16.msrb.mxu0 %v9467_v11  ;;  %v9506_v59 = vld [vmem:[%s11764_s3 + $0x138] sm:$0xff]  ;;  %v9497_v47 = vld [vmem:[%s11764_s3 + $0xf0] sm:$0xff]  ;;  %v9488_v7 = vld [vmem:[%s11764_s3 + $0xa8] sm:$0xff] }
 0x27f   : > { %v4238_v61 = vadd.f32 %v4225_v12, %v3643_v34  ;;  %6314 = vmatpush.bf16.msra.mxu3 %v9498_v21  ;;  %6285 = vmatpush.bf16.msra.mxu1 %v9490_v48  ;;  %v4145_v34 = vadd.f32 %v11351_v33, %v4116_v53  ;;  %v9505_v12 = vld [vmem:[%s11764_s3 + $0x130] sm:$0xff]  ;;  %v9443_v0 = vld [vmem:[#allocation2 + $0x1c] sm:$0xf]  ;;  %v9512_v62 = vld [vmem:[%s11764_s3 + $0x168] sm:$0xff] }
 0x280   : > { %v4963_v57 = vpop.f32.mrf.mxu0  ;;  %v4992_v39 = vpop.f32.mrf.mxu2  ;;  %6373 = vmatpush.bf16.msra.mxu2 %v9513_v38  ;;  %v8849_v11 = vld [vmem:[#allocation2 + $0x18] sm:$0xf] }
 0x281   : > { %v4261_v41 = vadd.f32 %v4260_v3, %v4238_v61  ;;  %v4276_v31 = vmul.f32 %v4238_v61, %v4238_v61  ;;  %v11473_v5 = vadd.f32 %v4992_v39, %v4963_v57  ;;  %v4229_v26 = vpop.f32.mrf.mxu3  ;;  %v4174_v39 = vadd.f32 %v11353_v49, %v4145_v34  ;;  %v9494_v21 = vld [vmem:[%s11764_s3 + $0xd8] sm:$0xff] }
 0x282   : > { %v4197_v25 = vpop.f32.mrf.mxu1  ;;  %6343 = vmatpush.bf16.msra.mxu0 %v9506_v59  ;;  %v3650_v49 = vadd.f32 %v11188_v32, %v11207_v51  ;;  %v9510_v59 = vld [vmem:[%s11764_s3 + $0x158] sm:$0xff] }
 0x283   : > { %v4283_v44 = vadd.f32 %v4282_v20, %v4276_v31  ;;  %v4198_v30 = vadd.f32 %v4197_v25, %v4169_v52  ;;  %v9489_v20 = vld [vmem:[%s11764_s3 + $0xb0] sm:$0xff]  ;;  %6315 = vmatpush.bf16.msra.mxu3 %v9497_v47 }
 0x284   : > { %6286 = vmatpush.bf16.msra.mxu1 %v9489_v20  ;;  %6374 = vmatpush.bf16.msra.mxu2 %v9512_v62  ;;  %v9493_v47 = vld [vmem:[%s11764_s3 + $0xd0] sm:$0xff]  ;;  %v9598_v62 = vld [vmem:[#allocation2 + $0x84] sm:$0xf0] }
 0x285   : > { %v4227_v19 = vadd.f32 %v4226_v63, %v4198_v30  ;;  %5755 = vmatmul.bf16.gmra.mxu2 %v8646_v42  ;;  %v8854_v42 = vor.u32 %v9443_v0, %v8851_v13  ;;  %v9485_v0 = vld [vmem:[%s11764_s3 + $0x90] sm:$0xff]  ;;  %v9452_v13 = vld [vmem:[#allocation2 + $0x5c] sm:$0xf0] }
 0x286   : > { %6344 = vmatpush.bf16.msra.mxu0 %v9505_v12 }
 0x287   : > { %v4239_v2 = vadd.f32 %v4227_v19, %v3645_v45  ;;  %6316 = vmatpush.bf16.msra.mxu3 %v9496_v29  ;;  %v9495_v45 = vld [vmem:[%s11764_s3 + $0xe0] sm:$0xff] }
 0x288   : > { %v4966_v37 = vpop.f32.mrf.mxu0  ;;  %v4995_v43 = vpop.f32.mrf.mxu2  ;;  %6287 = vmatpush.bf16.msra.mxu1 %v9488_v7  ;;  %6375 = vmatpush.bf16.msra.mxu2 %v9511_v40  ;;  %v9601_v29 = vld [vmem:[#allocation2 + $0xa4] sm:$0xf]  ;;  %v8627_v7 = vld [vmem:[#allocation2 + $0xb8] sm:$0xf0]  ;;  %v8899_v40 = vld [vmem:[#allocation2 + $0x90] sm:$0xf0] }
 0x289   : > { %v9672_v4 = vpack.c.bf16 %v4239_v2, %v4238_v61  ;;  %v4262_v14 = vadd.f32 %v4261_v41, %v4239_v2  ;;  %v4277_v17 = vmul.f32 %v4239_v2, %v4239_v2  ;;  %v11498_v3 = vadd.f32 %v4995_v43, %v4966_v37  ;;  %v4231_v16 = vpop.f32.mrf.mxu3  ;;  %v9595_v2 = vld [vmem:[#allocation2 + $0x74] sm:$0xf]  ;;  %v8577_v43 = vld [vmem:[#allocation2 + $0x40] sm:$0xf] }
 0x28a   : > { %v4200_v60 = vpop.f32.mrf.mxu1  ;;  %v8606_v48 = vor.u32 %v9595_v2, %v8603_v54  ;;  %v9500_v2 = vld [vmem:[%s11764_s3 + $0x108] sm:$0xff] }
 0x28b   : > { %9700 = vst [vmem:[%s11419_s12 + $0x10] sm:$0xff] %v9672_v4   ;;  %v4284_v56 = vadd.f32 %v4283_v44, %v4277_v17  ;;  %v4201_v63 = vadd.f32 %v4200_v60, %v11443_v1  ;;  %5726 = vmatmul.bf16.gmra.mxu0 %v8642_v15  ;;  %v9504_v44 = vld [vmem:[%s11764_s3 + $0x128] sm:$0xff]  ;;  %6317 = vmatpush.bf16.msra.mxu3 %v9495_v45  ;;  %v9503_v4 = vld [vmem:[%s11764_s3 + $0x120] sm:$0xff] }
 0x28c   : > { %6345 = vmatpush.bf16.msra.mxu0 %v9504_v44  ;;  %6288 = vmatpush.bf16.msra.mxu1 %v9487_v9  ;;  %v8850_v17 = vor.u32 %v9446_v55, %v8849_v11  ;;  %v8578_v15 = vor.u32 %v9592_v23, %v8577_v43  ;;  %v8630_v44 = vor.u32 %v9601_v29, %v8627_v7  ;;  %v9491_v9 = vld [vmem:[%s11764_s3 + $0xc0] sm:$0xff]  ;;  %v9604_v43 = vld [vmem:[#allocation2 + $0xb4] sm:$0xf0] }
 0x28d   : > { %v4230_v1 = vadd.f32 %v4229_v26, %v4201_v63  ;;  %5668 = vmatmul.bf16.gmra.mxu1 %v8634_v6  ;;  %v8875_v63 = vld [vmem:[#allocation2 + $0x60] sm:$0xf0]  ;;  %6376 = vmatpush.bf16.msra.mxu2 %v9510_v59 }
 0x28e   : > { %5798 = vmatmul.bf16.vlgmr.msrb.gmra.mxu3 %v8582_v58  ;;  %v9486_v58 = vld [vmem:[%s11764_s3 + $0x98] sm:$0xff] }
 0x28f   : > { %v4240_v61 = vadd.f32 %v4230_v1, %v3648_v28  ;;  %6318 = vmatpush.bf16.msra.mxu3 %v9494_v21  ;;  %v9502_v1 = vld [vmem:[%s11764_s3 + $0x118] sm:$0xff]  ;;  %v9507_v21 = vld [vmem:[%s11764_s3 + $0x140] sm:$0xff] }
 0x290   : > { %v4968_v31 = vpop.f32.mrf.mxu0  ;;  %v4997_v57 = vpop.f32.mrf.mxu2  ;;  %6346 = vmatpush.bf16.msra.mxu0 %v9503_v4  ;;  %6289 = vmatpush.bf16.msra.mxu1 %v9486_v58  ;;  %v9483_v4 = vld [vmem:[%s11764_s3 + $0x80] sm:$0xff] }
 0x291   : > { %v4263_v33 = vadd.f32 %v4262_v14, %v4240_v61  ;;  %v4278_v41 = vmul.f32 %v4240_v61, %v4240_v61  ;;  %v11530_v52 = vadd.f32 %v4997_v57, %v4968_v31  ;;  %v5038_v26 = vpop.f32.mrf.mxu3  ;;  %v9492_v31 = vld [vmem:[%s11764_s3 + $0xc8] sm:$0xff]  ;;  %v9501_v57 = vld [vmem:[%s11764_s3 + $0x110] sm:$0xff] }
 0x292   : > { %v4202_v25 = vpop.f32.mrf.mxu1 }
 0x293   : > { %v4285_v30 = vadd.f32 %v4284_v56, %v4278_v41  ;;  %v4203_v8 = vadd.f32 %v4202_v25, %v4174_v39  ;;  %v9449_v56 = vld [vmem:[#allocation2 + $0x4c] sm:$0xf]  ;;  %6319 = vmatpush.bf16.msra.mxu3 %v9493_v47  ;;  %v8873_v41 = vld [vmem:[#allocation2 + $0x48] sm:$0xf] }
 0x294   : > { %v8878_v28 = vor.u32 %v9449_v56, %v8875_v63  ;;  %6347 = vmatpush.bf16.msra.mxu0 %v9502_v1  ;;  %6290 = vmatpush.bf16.msra.mxu1 %v9485_v0  ;;  %v8874_v25 = vor.u32 %v9452_v13, %v8873_v41  ;;  %v8625_v63 = vld [vmem:[#allocation2 + $0xa0] sm:$0xf]  ;;  %v9461_v1 = vld [vmem:[#allocation2 + $0xac] sm:$0xf] }
 0x295   : > { %v4232_v19 = vadd.f32 %v4231_v16, %v4203_v8  ;;  %6264 = vmatmul.bf16.vlgmr.msrb.gmra.mxu2 %v8854_v42  ;;  %v8601_v42 = vld [vmem:[#allocation2 + $0x70] sm:$0xf] }
 0x296   : > { %v8602_v8 = vor.u32 %v9598_v62, %v8601_v42 }
 0x297   : > { %v4241_v50 = vadd.f32 %v4232_v19, %v3650_v49  ;;  %6320 = vmatpush.bf16.msra.mxu3 %v9492_v31  ;;  %v9484_v49 = vld [vmem:[%s11764_s3 + $0x88] sm:$0xff]  ;;  %v9444_v31 = vld [vmem:[#allocation2 + $0x24] sm:$0xf] }
 0x298   : > { %v11548_v53 = vpop.f32.mrf.mxu0  ;;  %v11550_v24 = vpop.f32.mrf.mxu2  ;;  %6348 = vmatpush.bf16.msra.mxu0 %v9501_v57  ;;  %v9508_v19 = vld [vmem:[%s11764_s3 + $0x148] sm:$0xff]  ;;  %6291 = vmatpush.bf16.msra.mxu1 %v9484_v49  ;;  %v8859_v57 = vld [vmem:[#allocation2 + $0x38] sm:$0xf0] }
 0x299   : > { %v9677_v32 = vpack.c.bf16 %v4241_v50, %v4240_v61  ;;  %v11546_v51 = vadd.f32 %v4263_v33, %v4241_v50  ;;  %v4279_v36 = vmul.f32 %v4241_v50, %v4241_v50  ;;  %v5040_v37 = vpop.f32.mrf.mxu3  ;;  %v9509_v61 = vld [vmem:[%s11764_s3 + $0x150] sm:$0xff] }
 0x29a   : > { %v5009_v14 = vpop.f32.mrf.mxu1  ;;  %6377 = vmatpush.bf16.msra.mxu2 %v9509_v61 }
 0x29b   : > { %9701 = vst [vmem:[%s11419_s12 + $0x18] sm:$0xff] %v9677_v32   ;;  %v11559_v27 = vadd.f32 %v4285_v30, %v4279_v36  ;;  %v5010_v60 = vadd.f32 %v5009_v14, %v11372_v46  ;;  %6235 = vmatmul.bf16.vlgmr.msrb.gmra.mxu0 %v8850_v17  ;;  %6321 = vmatpush.bf16.msra.mxu3 %v9491_v9  ;;  %v9458_v14 = vld [vmem:[#allocation2 + $0x8c] sm:$0xf0]  ;;  %v9607_v17 = vld [vmem:[#allocation2 + $0xd4] sm:$0xf] }
 0x29c   : > { %6349 = vmatpush.bf16.msra.mxu0 %v9500_v2  ;;  %6292 = vmatpush.bf16.msra.mxu1 %v9483_v4  ;;  %v8867_v2 = vld [vmem:[#allocation2 + $0x40] sm:$0xf0] }
 0x29d   : > { %v11562_v16 = vadd.f32 %v5038_v26, %v5010_v60  ;;  %5769 = vmatmul.bf16.vlgmr.msrb.gmra.mxu1 %v8578_v15  ;;  %v8897_v60 = vld [vmem:[#allocation2 + $0x78] sm:$0xf]  ;;  %v9499_v15 = vld [vmem:[%s11764_s3 + $0x100] sm:$0xff] }
 0x29e   : > { %5803 = vmatmul.bf16.gmra.mxu3 %v8606_v48  ;;  %6378 = vmatpush.bf16.msra.mxu2 %v9508_v19  ;;  %v8898_v59 = vor.u32 %v9458_v14, %v8897_v60  ;;  %v8862_v19 = vor.u32 %v9444_v31, %v8859_v57 }
 0x2a0   : > { %v11570_v46 = vpop.f32.mrf.mxu0  ;;  %v11572_v6 = vpop.f32.mrf.mxu2  ;;  %6350 = vmatpush.bf16.msra.mxu0 %v9499_v15 }
 0x2a1   : > { %v5043_v38 = vpop.f32.mrf.mxu3 }
 0x2a2   : > { %v5011_v20 = vpop.f32.mrf.mxu1  ;;  %6379 = vmatpush.bf16.msra.mxu2 %v9507_v21 }
 0x2a3   : > { %v5012_v34 = vadd.f32 %v5011_v20, %v11395_v22 }
 0x2a5   : > { %v11581_v12 = vadd.f32 %v5040_v37, %v5012_v34  ;;  %6269 = vmatmul.bf16.gmra.mxu2 %v8878_v28  ;;  %v8651_v37 = vld [vmem:[#allocation2 + $0xe8] sm:$0xf0]  ;;  %v8923_v34 = vld [vmem:[#allocation2 + $0xc0] sm:$0xf0] }
 0x2a6   : > { %v8654_v47 = vor.u32 %v9607_v17, %v8651_v37  ;;  %v8926_v7 = vor.u32 %v9461_v1, %v8923_v34  ;;  %v9450_v17 = vld [vmem:[#allocation2 + $0x54] sm:$0xf]  ;;  %v8883_v37 = vld [vmem:[#allocation2 + $0x68] sm:$0xf0]  ;;  %v9451_v34 = vld [vmem:[#allocation2 + $0x5c] sm:$0xf] }
 0x2a8   : > { %v11589_v22 = vpop.f32.mrf.mxu0  ;;  %v11591_v33 = vpop.f32.mrf.mxu2 }
 0x2a9   : > { %v5045_v26 = vpop.f32.mrf.mxu3 }
 0x2aa   : > { %v5014_v39 = vpop.f32.mrf.mxu1 }
 0x2ab   : > { %v5015_v30 = vadd.f32 %v5014_v39, %v11421_v35  ;;  %6240 = vmatmul.bf16.gmra.mxu0 %v8874_v25  ;;  %v9455_v35 = vld [vmem:[#allocation2 + $0x7c] sm:$0xf]  ;;  %v8649_v39 = vld [vmem:[#allocation2 + $0xd0] sm:$0xf]  ;;  %v9610_v25 = vld [vmem:[#allocation2 + $0xe4] sm:$0xf0] }
 0x2ac   : > { %v8902_v32 = vor.u32 %v9455_v35, %v8899_v40  ;;  %v9445_v40 = vld [vmem:[#allocation2 + $0x2c] sm:$0xf] }
 0x2ad   : > { %v11600_v45 = vadd.f32 %v5043_v38, %v5015_v30  ;;  %5774 = vmatmul.bf16.gmra.mxu1 %v8602_v8  ;;  %v8626_v38 = vor.u32 %v9604_v43, %v8625_v63  ;;  %v8870_v21 = vor.u32 %v9445_v40, %v8867_v2  ;;  %v9447_v43 = vld [vmem:[#allocation2 + $0x34] sm:$0xf0] }
 0x2ae   : > { %5808 = vmatmul.bf16.gmra.mxu3 %v8630_v44  ;;  %v8921_v44 = vld [vmem:[#allocation2 + $0xa8] sm:$0xf] }
 0x2b0   : > { %v11611_v50 = vpop.f32.mrf.mxu0  ;;  %v11613_v55 = vpop.f32.mrf.mxu2 }
 0x2b1   : > { %v5048_v23 = vpop.f32.mrf.mxu3 }
 0x2b2   : > { %v5016_v54 = vpop.f32.mrf.mxu1 }
 0x2b3   : > { %v5017_v36 = vadd.f32 %v5016_v54, %v11446_v10 }
 0x2b5   : > { %v11619_v11 = vadd.f32 %v5045_v26, %v5017_v36  ;;  %6274 = vmatmul.bf16.gmra.mxu2 %v8902_v32 }
 0x2b8   : > { %v11627_v48 = vpop.f32.mrf.mxu0  ;;  %v11629_v10 = vpop.f32.mrf.mxu2 }
 0x2b9   : > { %v5050_v56 = vpop.f32.mrf.mxu3 }
 0x2ba   : > { %v5019_v58 = vpop.f32.mrf.mxu1 }
 0x2bb   : > { %v5020_v20 = vadd.f32 %v5019_v58, %v11465_v18  ;;  %6245 = vmatmul.bf16.gmra.mxu0 %v8898_v59  ;;  %v9464_v18 = vld [vmem:[#allocation2 + $0xbc] sm:$0xf0]  ;;  %v8865_v58 = vld [vmem:[#allocation2 + $0x28] sm:$0xf] }
 0x2bc   : > { %v8922_v8 = vor.u32 %v9464_v18, %v8921_v44  ;;  %v9456_v44 = vld [vmem:[#allocation2 + $0x84] sm:$0xf] }
 0x2bd   : > { %v11635_v28 = vadd.f32 %v5048_v23, %v5020_v20  ;;  %5779 = vmatmul.bf16.gmra.mxu1 %v8626_v38  ;;  %v8886_v20 = vor.u32 %v9450_v17, %v8883_v37  ;;  %v9457_v17 = vld [vmem:[#allocation2 + $0x8c] sm:$0xf]  ;;  %v8915_v37 = vld [vmem:[#allocation2 + $0xa0] sm:$0xf0] }
 0x2be   : > { %5813 = vmatmul.bf16.gmra.mxu3 %v8654_v47  ;;  %v8857_v47 = vld [vmem:[#allocation2 + $0x20] sm:$0xf] }
 0x2bf   : > { %v8858_v1 = vor.u32 %v9447_v43, %v8857_v47 }
 0x2c0   : > { %v11637_v0 = vpop.f32.mrf.mxu0  ;;  %v11639_v61 = vpop.f32.mrf.mxu2 }
 0x2c1   : > { %v5053_v29 = vpop.f32.mrf.mxu3 }
 0x2c2   : > { %v5021_v13 = vpop.f32.mrf.mxu1 }
 0x2c3   : > { %v5022_v62 = vadd.f32 %v5021_v13, %v11473_v5  ;;  %v8650_v5 = vor.u32 %v9610_v25, %v8649_v39  ;;  %v8891_v13 = vld [vmem:[#allocation2 + $0x70] sm:$0xf0]  ;;  %v9454_v25 = vld [vmem:[#allocation2 + $0x6c] sm:$0xf0] }
 0x2c4   : > { %v8894_v31 = vor.u32 %v9451_v34, %v8891_v13  ;;  %v9459_v34 = vld [vmem:[#allocation2 + $0x94] sm:$0xf0] }
 0x2c5   : > { %v11642_v41 = vadd.f32 %v5050_v56, %v5022_v62  ;;  %6279 = vmatmul.bf16.gmra.mxu2 %v8926_v7 }
 0x2c8   : > { %v11644_v26 = vpop.f32.mrf.mxu0  ;;  %v11646_v42 = vpop.f32.mrf.mxu2 }
 0x2c9   : > { %v5055_v49 = vpop.f32.mrf.mxu3 }
 0x2ca   : > { %v5024_v30 = vpop.f32.mrf.mxu1 }
 0x2cb   : > { %v5025_v9 = vadd.f32 %v5024_v30, %v11498_v3  ;;  %6250 = vmatmul.bf16.gmra.mxu0 %v8922_v8  ;;  %v9448_v3 = vld [vmem:[#allocation2 + $0x3c] sm:$0xf0]  ;;  %v8907_v30 = vld [vmem:[#allocation2 + $0x98] sm:$0xf0]  ;;  %v9453_v8 = vld [vmem:[#allocation2 + $0x64] sm:$0xf0] }
 0x2cc   : > { %v8866_v56 = vor.u32 %v9448_v3, %v8865_v58 }
 0x2cd   : > { %v11649_v35 = vadd.f32 %v5053_v29, %v5025_v9  ;;  %5784 = vmatmul.bf16.gmra.mxu1 %v8650_v5  ;;  %v8889_v9 = vld [vmem:[#allocation2 + $0x58] sm:$0xf] }
 0x2ce   : > { %6322 = vmatmul.bf16.vlgmr.msra.gmra.mxu3 %v8862_v19  ;;  %v8890_v40 = vor.u32 %v9454_v25, %v8889_v9  ;;  %v8905_v25 = vld [vmem:[#allocation2 + $0x80] sm:$0xf] }
 0x2d0   : > { %v11651_v54 = vpop.f32.mrf.mxu0  ;;  %v11653_v23 = vpop.f32.mrf.mxu2 }
 0x2d1   : > { %v5683_v36 = vpop.f32.mrf.mxu3 }
 0x2d2   : > { %v5026_v32 = vpop.f32.mrf.mxu1 }
 0x2d3   : > { %v5027_v4 = vadd.f32 %v5026_v32, %v11530_v52  ;;  %v8881_v32 = vld [vmem:[#allocation2 + $0x50] sm:$0xf] }
 0x2d5   : > { %v11656_v14 = vadd.f32 %v5055_v49, %v5027_v4  ;;  %6380 = vmatmul.bf16.vlgmr.msra.gmra.mxu2 %v8870_v21  ;;  %v8882_v4 = vor.u32 %v9453_v8, %v8881_v32  ;;  %v8906_v8 = vor.u32 %v9459_v34, %v8905_v25 }
 0x2d8   : > { %v5712_v60 = vpop.f32.mrf.mxu0  ;;  %v11658_v15 = vpop.f32.mrf.mxu2 }
 0x2d9   : > { %v5685_v63 = vpop.f32.mrf.mxu3 }
 0x2da   : > { %v5654_v59 = vpop.f32.mrf.mxu1 }
 0x2db   : > { %v5684_v38 = vadd.f32 %v5683_v36, %v5654_v59  ;;  %6351 = vmatmul.bf16.vlgmr.msra.gmra.mxu0 %v8866_v56  ;;  %v8910_v36 = vor.u32 %v9456_v44, %v8907_v30  ;;  %v8918_v56 = vor.u32 %v9457_v17, %v8915_v37 }
 0x2dd   : > { %v5713_v52 = vadd.f32 %v5712_v60, %v5684_v38  ;;  %6293 = vmatmul.bf16.vlgmr.msra.gmra.mxu1 %v8858_v1  ;;  %v9462_v38 = vld [vmem:[#allocation2 + $0xb4] sm:$0xf]  ;;  %v8931_v1 = vld [vmem:[#allocation2 + $0xc8] sm:$0xf0] }
 0x2de   : > { %6327 = vmatmul.bf16.gmra.mxu3 %v8886_v20  ;;  %v9460_v20 = vld [vmem:[#allocation2 + $0x9c] sm:$0xf0]  ;;  %v8934_v44 = vor.u32 %v9462_v38, %v8931_v1  ;;  %v8929_v1 = vld [vmem:[#allocation2 + $0xb0] sm:$0xf] }
 0x2e0   : > { %v5714_v29 = vpop.f32.mrf.mxu0  ;;  %v5743_v7 = vpop.f32.mrf.mxu2 }
 0x2e1   : > { %v5688_v18 = vpop.f32.mrf.mxu3 }
 0x2e2   : > { %v5656_v62 = vpop.f32.mrf.mxu1 }
 0x2e3   : > { %v5686_v57 = vadd.f32 %v5685_v63, %v5656_v62  ;;  %v8913_v62 = vld [vmem:[#allocation2 + $0x88] sm:$0xf] }
 0x2e5   : > { %v5715_v39 = vadd.f32 %v5714_v29, %v5686_v57  ;;  %6385 = vmatmul.bf16.gmra.mxu2 %v8894_v31  ;;  %v8914_v31 = vor.u32 %v9460_v20, %v8913_v62  ;;  %v8937_v20 = vld [vmem:[#allocation2 + $0xb8] sm:$0xf] }
 0x2e7   : > { %v5744_v37 = vadd.f32 %v5743_v7, %v5715_v39 }
 0x2e8   : > { %v5717_v49 = vpop.f32.mrf.mxu0  ;;  %v11660_v19 = vpop.f32.mrf.mxu2 }
 0x2e9   : > { %v5690_v2 = vpop.f32.mrf.mxu3 }
 0x2ea   : > { %v5659_v5 = vpop.f32.mrf.mxu1 }
 0x2eb   : > { %v5689_v21 = vadd.f32 %v5688_v18, %v5659_v5  ;;  %6356 = vmatmul.bf16.gmra.mxu0 %v8890_v40  ;;  %v9463_v5 = vld [vmem:[#allocation2 + $0xbc] sm:$0xf]  ;;  %v8939_v40 = vld [vmem:[#allocation2 + $0xd0] sm:$0xf0] }
 0x2ed   : > { %v5718_v3 = vadd.f32 %v5717_v49, %v5689_v21  ;;  %6298 = vmatmul.bf16.gmra.mxu1 %v8882_v4  ;;  %v5742_v49 = vadd.f32 %v11658_v15, %v5713_v52  ;;  %v8942_v4 = vor.u32 %v9463_v5, %v8939_v40 }
 0x2ee   : > { %6332 = vmatmul.bf16.gmra.mxu3 %v8910_v36 }
 0x2ef   : > { %v5747_v62 = vadd.f32 %v11660_v19, %v5718_v3 }
 0x2f0   : > { %v5719_v43 = vpop.f32.mrf.mxu0  ;;  %v5748_v60 = vpop.f32.mrf.mxu2 }
 0x2f1   : > { %v5693_v59 = vpop.f32.mrf.mxu3 }
 0x2f2   : > { %v5661_v58 = vpop.f32.mrf.mxu1 }
 0x2f3   : > { %v5691_v63 = vadd.f32 %v5690_v2, %v5661_v58  ;;  %v9466_v58 = vld [vmem:[#allocation2 + $0xcc] sm:$0xf0] }
 0x2f4   : > { %v8938_v52 = vor.u32 %v9466_v58, %v8937_v20 }
 0x2f5   : > { %v5720_v47 = vadd.f32 %v5719_v43, %v5691_v63  ;;  %6390 = vmatmul.bf16.gmra.mxu2 %v8918_v56 }
 0x2f8   : > { %v5722_v13 = vpop.f32.mrf.mxu0  ;;  %v5751_v29 = vpop.f32.mrf.mxu2 }
 0x2f9   : > { %v5695_v57 = vpop.f32.mrf.mxu3 }
 0x2fa   : > { %v5664_v18 = vpop.f32.mrf.mxu1 }
 0x2fb   : > { %v5694_v30 = vadd.f32 %v5693_v59, %v5664_v18  ;;  %6361 = vmatmul.bf16.gmra.mxu0 %v8914_v31  ;;  %v9465_v59 = vld [vmem:[#allocation2 + $0xc4] sm:$0xf0] }
 0x2fd   : > { %v5723_v9 = vadd.f32 %v5722_v13, %v5694_v30  ;;  %6303 = vmatmul.bf16.gmra.mxu1 %v8906_v8  ;;  %v8930_v13 = vor.u32 %v9465_v59, %v8929_v1  ;;  %v5749_v30 = vadd.f32 %v5748_v60, %v5720_v47 }
 0x2fe   : > { %6337 = vmatmul.bf16.gmra.mxu3 %v8934_v44  ;;  %v5068_v44 = vadd.f32 %v11548_v53, %v11562_v16  ;;  %v5073_v53 = vadd.f32 %v11589_v22, %v11600_v45 }
 0x300   : > { %v5724_v2 = vpop.f32.mrf.mxu0  ;;  %v5753_v32 = vpop.f32.mrf.mxu2  ;;  %v5097_v5 = vadd.f32 %v11550_v24, %v5068_v44  ;;  %v5102_v60 = vadd.f32 %v11591_v33, %v5073_v53  ;;  %v5078_v33 = vadd.f32 %v11627_v48, %v11635_v28 }
 0x301   : > { %v5698_v21 = vpop.f32.mrf.mxu3 }
 0x302   : > { %v5666_v36 = vpop.f32.mrf.mxu1 }
 0x303   : > { %v5696_v17 = vadd.f32 %v5695_v57, %v5666_v36 }
 0x305   : > { %v5725_v43 = vadd.f32 %v5724_v2, %v5696_v17  ;;  %6395 = vmatmul.bf16.gmra.mxu2 %v8942_v4  ;;  %v5752_v17 = vadd.f32 %v5751_v29, %v5723_v9 }
 0x307   : > { %v5754_v16 = vadd.f32 %v5753_v32, %v5725_v43 }
 0x308   : > { %v5727_v56 = vpop.f32.mrf.mxu0  ;;  %v5756_v63 = vpop.f32.mrf.mxu2 }
 0x309   : > { %v5700_v38 = vpop.f32.mrf.mxu3 }
 0x30a   : > { %v5669_v15 = vpop.f32.mrf.mxu1 }
 0x30b   : > { %v5699_v34 = vadd.f32 %v5698_v21, %v5669_v15  ;;  %6366 = vmatmul.bf16.gmra.mxu0 %v8938_v52 }
 0x30d   : > { %v5728_v18 = vadd.f32 %v5727_v56, %v5699_v34  ;;  %6308 = vmatmul.bf16.gmra.mxu1 %v8930_v13 }
 0x30f   : > { %v5757_v13 = vadd.f32 %v5756_v63, %v5728_v18 }
 0x310   : > { %v5729_v31 = vpop.f32.mrf.mxu0  ;;  %v5758_v7 = vpop.f32.mrf.mxu2 }
 0x311   : > { %v5799_v57 = vpop.f32.mrf.mxu3 }
 0x312   : > { %v5671_v39 = vpop.f32.mrf.mxu1 }
 0x313   : > { %v5701_v25 = vadd.f32 %v5700_v38, %v5671_v39 }
 0x315   : > { %v5730_v8 = vadd.f32 %v5729_v31, %v5701_v25 }
 0x317   : > { %v5759_v43 = vadd.f32 %v5758_v7, %v5730_v8 }
 0x318   : > { %v6236_v40 = vpop.f32.mrf.mxu0  ;;  %v6265_v2 = vpop.f32.mrf.mxu2 }
 0x319   : > { %v6237_v36 = vadd.f32 %v6236_v40, %v5097_v5  ;;  %v5801_v4 = vpop.f32.mrf.mxu3 }
 0x31a   : > { %v5770_v21 = vpop.f32.mrf.mxu1 }
 0x31b   : > { %v5771_v19 = vadd.f32 %v5770_v21, %v5742_v49  ;;  %v6266_v3 = vadd.f32 %v6265_v2, %v6237_v36 }
 0x31d   : > { %v11667_v58 = vadd.f32 %v5799_v57, %v5771_v19 }
 0x320   : > { %v6238_v59 = vpop.f32.mrf.mxu0  ;;  %v6267_v56 = vpop.f32.mrf.mxu2 }
 0x321   : > { %v5804_v15 = vpop.f32.mrf.mxu3 }
 0x322   : > { %v5772_v20 = vpop.f32.mrf.mxu1 }
 0x323   : > { %v5773_v52 = vadd.f32 %v5772_v20, %v5744_v37 }
 0x325   : > { %v11671_v24 = vadd.f32 %v5801_v4, %v5773_v52 }
 0x328   : > { %v6241_v47 = vpop.f32.mrf.mxu0  ;;  %v6270_v38 = vpop.f32.mrf.mxu2 }
 0x329   : > { %v6242_v49 = vadd.f32 %v6241_v47, %v5102_v60  ;;  %v5806_v29 = vpop.f32.mrf.mxu3 }
 0x32a   : > { %v5775_v1 = vpop.f32.mrf.mxu1 }
 0x32b   : > { %v5776_v9 = vadd.f32 %v5775_v1, %v5747_v62  ;;  %v11674_v34 = vadd.f32 %v6270_v38, %v6242_v49  ;;  %v5107_v62 = vadd.f32 %v11629_v10, %v5078_v33 }
 0x32d   : > { %v11676_v31 = vadd.f32 %v5804_v15, %v5776_v9 }
 0x330   : > { %v11678_v37 = vpop.f32.mrf.mxu0  ;;  %v11680_v39 = vpop.f32.mrf.mxu2 }
 0x331   : > { %v5809_v45 = vpop.f32.mrf.mxu3 }
 0x332   : > { %v5777_v22 = vpop.f32.mrf.mxu1 }
 0x333   : > { %v5778_v32 = vadd.f32 %v5777_v22, %v5749_v30 }
 0x335   : > { %v11684_v57 = vadd.f32 %v5806_v29, %v5778_v32 }
 0x338   : > { %v6246_v25 = vpop.f32.mrf.mxu0  ;;  %v6275_v44 = vpop.f32.mrf.mxu2 }
 0x339   : > { %v6247_v63 = vadd.f32 %v6246_v25, %v5107_v62  ;;  %v5811_v5 = vpop.f32.mrf.mxu3 }
 0x33a   : > { %v5780_v18 = vpop.f32.mrf.mxu1 }
 0x33b   : > { %v5781_v40 = vadd.f32 %v5780_v18, %v5752_v17  ;;  %v11687_v2 = vadd.f32 %v6275_v44, %v6247_v63 }
 0x33d   : > { %v11689_v36 = vadd.f32 %v5809_v45, %v5781_v40 }
 0x340   : > { %v11691_v21 = vpop.f32.mrf.mxu0  ;;  %v11693_v30 = vpop.f32.mrf.mxu2 }
 0x341   : > { %v5814_v28 = vpop.f32.mrf.mxu3 }
 0x342   : > { %v5782_v48 = vpop.f32.mrf.mxu1 }
 0x343   : > { %v5783_v7 = vadd.f32 %v5782_v48, %v5754_v16  ;;  %v5070_v16 = vadd.f32 %v11570_v46, %v11581_v12  ;;  %v5075_v12 = vadd.f32 %v11611_v50, %v11619_v11 }
 0x345   : > { %v11695_v8 = vadd.f32 %v5811_v5, %v5783_v7  ;;  %v5104_v7 = vadd.f32 %v11613_v55, %v5075_v12 }
 0x348   : > { %v11697_v10 = vpop.f32.mrf.mxu0  ;;  %v11699_v4 = vpop.f32.mrf.mxu2 }
 0x349   : > { %v5816_v20 = vpop.f32.mrf.mxu3 }
 0x34a   : > { %v5785_v19 = vpop.f32.mrf.mxu1 }
 0x34b   : > { %v5786_v17 = vadd.f32 %v5785_v19, %v5757_v13  ;;  %v5099_v13 = vadd.f32 %v11572_v6, %v5070_v16 }
 0x34d   : > { %v11701_v15 = vadd.f32 %v5814_v28, %v5786_v17  ;;  %v6239_v32 = vadd.f32 %v6238_v59, %v5099_v13  ;;  %v6244_v17 = vadd.f32 %v11678_v37, %v5104_v7 }
 0x34f   : > { %v6268_v25 = vadd.f32 %v6267_v56, %v6239_v32 }
 0x350   : > { %v11703_v52 = vpop.f32.mrf.mxu0  ;;  %v11705_v53 = vpop.f32.mrf.mxu2 }
 0x351   : > { %v6323_v47 = vpop.f32.mrf.mxu3 }
 0x352   : > { %v5787_v60 = vpop.f32.mrf.mxu1 }
 0x353   : > { %v5788_v38 = vadd.f32 %v5787_v60, %v5759_v43 }
 0x355   : > { %v11707_v49 = vadd.f32 %v5816_v20, %v5788_v38 }
 0x358   : > { %v6352_v1 = vpop.f32.mrf.mxu0  ;;  %v6381_v29 = vpop.f32.mrf.mxu2 }
 0x359   : > { %v6325_v22 = vpop.f32.mrf.mxu3 }
 0x35a   : > { %v6294_v9 = vpop.f32.mrf.mxu1 }
 0x35b   : > { %v6295_v45 = vadd.f32 %v6294_v9, %v6266_v3 }
 0x35d   : > { %v6324_v33 = vadd.f32 %v6323_v47, %v6295_v45 }
 0x35f   : > { %v6353_v62 = vadd.f32 %v6352_v1, %v6324_v33  ;;  %v5080_v33 = vadd.f32 %v11637_v0, %v11642_v41  ;;  %v5083_v41 = vadd.f32 %v11644_v26, %v11649_v35  ;;  %v5085_v35 = vadd.f32 %v11651_v54, %v11656_v14 }
 0x360   : > { %v6354_v63 = vpop.f32.mrf.mxu0  ;;  %v6383_v18 = vpop.f32.mrf.mxu2 }
 0x361   : > { %v6382_v44 = vadd.f32 %v6381_v29, %v6353_v62  ;;  %v6328_v5 = vpop.f32.mrf.mxu3  ;;  %v6273_v29 = vadd.f32 %v11680_v39, %v6244_v17  ;;  %v5109_v39 = vadd.f32 %v11639_v61, %v5080_v33 }
 0x362   : > { %v6296_v43 = vpop.f32.mrf.mxu1 }
 0x363   : > { %v6401_v40 = vadd.f32 %v6382_v44, %v11667_v58  ;;  %v6297_v48 = vadd.f32 %v6296_v43, %v6268_v25 }
 0x365   : > { %v6326_v46 = vadd.f32 %v6325_v22, %v6297_v48  ;;  %v6440_v58 = vmul.f32 %v6401_v40, %v6401_v40  ;;  %v6249_v48 = vadd.f32 %v11691_v21, %v5109_v39 }
 0x367   : > { %v6355_v28 = vadd.f32 %v6354_v63, %v6326_v46  ;;  %v6278_v61 = vadd.f32 %v11693_v30, %v6249_v48 }
 0x368   : > { %v6357_v3 = vpop.f32.mrf.mxu0  ;;  %v6386_v59 = vpop.f32.mrf.mxu2 }
 0x369   : > { %v6384_v6 = vadd.f32 %v6383_v18, %v6355_v28  ;;  %v6330_v60 = vpop.f32.mrf.mxu3 }
 0x36a   : > { %v6299_v56 = vpop.f32.mrf.mxu1 }
 0x36b   : > { %v6402_v19 = vadd.f32 %v6384_v6, %v11671_v24  ;;  %v6300_v20 = vadd.f32 %v6299_v56, %v11674_v34 }
 0x36d   : > { %v9682_v47 = vpack.c.bf16 %v6402_v19, %v6401_v40  ;;  %v6426_v38 = vadd.f32 %v6402_v19, %v6401_v40  ;;  %v6441_v16 = vmul.f32 %v6402_v19, %v6402_v19  ;;  %v6329_v50 = vadd.f32 %v6328_v5, %v6300_v20 }
 0x36f   : > { %9702 = vst [vmem:[%s11419_s12 + $0x20] sm:$0xff] %v9682_v47   ;;  %v6448_v11 = vadd.f32 %v6441_v16, %v6440_v58  ;;  %v6358_v1 = vadd.f32 %v6357_v3, %v6329_v50 }
 0x370   : > { %v6359_v55 = vpop.f32.mrf.mxu0  ;;  %v6388_v22 = vpop.f32.mrf.mxu2 }
 0x371   : > { %v6387_v9 = vadd.f32 %v6386_v59, %v6358_v1  ;;  %v6333_v62 = vpop.f32.mrf.mxu3 }
 0x372   : > { %v6301_v13 = vpop.f32.mrf.mxu1 }
 0x373   : > { %v6403_v24 = vadd.f32 %v6387_v9, %v11676_v31  ;;  %v6302_v34 = vadd.f32 %v6301_v13, %v6273_v29 }
 0x375   : > { %v6427_v45 = vadd.f32 %v6426_v38, %v6403_v24  ;;  %v6442_v37 = vmul.f32 %v6403_v24, %v6403_v24  ;;  %v6331_v32 = vadd.f32 %v6330_v60, %v6302_v34 }
 0x377   : > { %v6449_v25 = vadd.f32 %v6448_v11, %v6442_v37  ;;  %v6360_v44 = vadd.f32 %v6359_v55, %v6331_v32  ;;  %v4265_v32 = vrot.slane %v11546_v51, 4 }
 0x378   : > { %v6362_v18 = vpop.f32.mrf.mxu0  ;;  %v6391_v43 = vpop.f32.mrf.mxu2 }
 0x379   : > { %v6389_v63 = vadd.f32 %v6388_v22, %v6360_v44  ;;  %v6335_v59 = vpop.f32.mrf.mxu3  ;;  %v4287_v44 = vrot.slane %v11559_v27, 4 }
 0x37a   : > { %v6304_v5 = vpop.f32.mrf.mxu1 }
 0x37b   : > { %v6404_v40 = vadd.f32 %v6389_v63, %v11684_v57  ;;  %v6305_v31 = vadd.f32 %v6304_v5, %v11687_v2  ;;  %v5112_v2 = vadd.f32 %v11646_v42, %v5083_v41  ;;  %v5114_v42 = vadd.f32 %v11653_v23, %v5085_v35 }
 0x37c   : > { %v4288_v5 = vadd.f32 %v4287_v44, %v11559_v27 }
 0x37d   : > { %v9687_v46 = vpack.c.bf16 %v6404_v40, %v6403_v24  ;;  %v6428_v12 = vadd.f32 %v6427_v45, %v6404_v40  ;;  %v6443_v28 = vmul.f32 %v6404_v40, %v6404_v40  ;;  %v6334_v0 = vadd.f32 %v6333_v62, %v6305_v31 }
 0x37e   : > { %v6252_v17 = vadd.f32 %v11697_v10, %v5112_v2  ;;  %v6254_v10 = vadd.f32 %v11703_v52, %v5114_v42 }
 0x37f   : > { %9703 = vst [vmem:[%s11419_s12 + $0x28] sm:$0xff] %v9687_v46   ;;  %v6450_v6 = vadd.f32 %v6449_v25, %v6443_v28  ;;  %v6363_v3 = vadd.f32 %v6362_v18, %v6334_v0 }
 0x380   : > { %v6364_v56 = vpop.f32.mrf.mxu0  ;;  %v6393_v20 = vpop.f32.mrf.mxu2  ;;  %v6281_v38 = vadd.f32 %v11699_v4, %v6252_v17  ;;  %v6283_v4 = vadd.f32 %v11705_v53, %v6254_v10  ;;  %v4266_v53 = vadd.f32 %v4265_v32, %v11546_v51 }
 0x381   : > { %v6392_v7 = vadd.f32 %v6391_v43, %v6363_v3  ;;  %v6338_v50 = vpop.f32.mrf.mxu3 }
 0x382   : > { %v6306_v57 = vpop.f32.mrf.mxu1  ;;  %v4267_v40 = vrot.slane %v4266_v53, 2 }
 0x383   : > { %v6405_v21 = vadd.f32 %v6392_v7, %v11689_v36  ;;  %v6307_v19 = vadd.f32 %v6306_v57, %v6278_v61 }
 0x384   : > { %v4268_v41 = vadd.f32 %v4267_v40, %v4266_v53 }
 0x385   : > { %v6429_v58 = vadd.f32 %v6428_v12, %v6405_v21  ;;  %v6444_v60 = vmul.f32 %v6405_v21, %v6405_v21  ;;  %v6336_v26 = vadd.f32 %v6335_v59, %v6307_v19  ;;  %v4289_v12 = vrot.slane %v4288_v5, 2 }
 0x386   : > { %v4269_v7 = vrot.slane %v4268_v41, 1 }
 0x387   : > { %v6451_v47 = vadd.f32 %v6450_v6, %v6444_v60  ;;  %v6365_v30 = vadd.f32 %v6364_v56, %v6336_v26  ;;  %v4290_v59 = vadd.f32 %v4289_v12, %v4288_v5 }
 0x388   : > { %v6367_v29 = vpop.f32.mrf.mxu0  ;;  %v6396_v14 = vpop.f32.mrf.mxu2 }
 0x389   : > { %v6394_v16 = vadd.f32 %v6393_v20, %v6365_v30 }
 0x38a   : > { %v6309_v36 = vpop.f32.mrf.mxu1 }
 0x38b   : > { %v6406_v11 = vadd.f32 %v6394_v16, %v11695_v8  ;;  %v6310_v1 = vadd.f32 %v6309_v36, %v6281_v38  ;;  %v6340_v8 = vpop.f32.mrf.mxu3 }
 0x38d   : > { %v9692_v9 = vpack.c.bf16 %v6406_v11, %v6405_v21  ;;  %v6430_v55 = vadd.f32 %v6429_v58, %v6406_v11  ;;  %v6445_v22 = vmul.f32 %v6406_v11, %v6406_v11  ;;  %v6339_v54 = vadd.f32 %v6338_v50, %v6310_v1 }
 0x38e   : > { %v4270_v21 = vadd.f32 %v4269_v7, %v4268_v41 }
 0x38f   : > { %9704 = vst [vmem:[%s11419_s12 + $0x30] sm:$0xff] %v9692_v9   ;;  %v6452_v13 = vadd.f32 %v6451_v47, %v6445_v22  ;;  %v6368_v24 = vadd.f32 %v6367_v29, %v6339_v54 }
 0x390   : > { %v6369_v25 = vpop.f32.mrf.mxu0  ;;  %v6398_v39 = vpop.f32.mrf.mxu2 }
 0x391   : > { %v6397_v34 = vadd.f32 %v6396_v14, %v6368_v24 }
 0x392   : > { %v6311_v23 = vpop.f32.mrf.mxu1 }
 0x393   : > { %v6407_v45 = vadd.f32 %v6397_v34, %v11701_v15  ;;  %v6312_v37 = vadd.f32 %v6311_v23, %v6283_v4 }
 0x395   : > { %v6431_v52 = vadd.f32 %v6430_v55, %v6407_v45  ;;  %v6446_v33 = vmul.f32 %v6407_v45, %v6407_v45  ;;  %v6341_v62 = vadd.f32 %v6340_v8, %v6312_v37 }
 0x397   : > { %v6453_v63 = vadd.f32 %v6452_v13, %v6446_v33  ;;  %v6370_v18 = vadd.f32 %v6369_v25, %v6341_v62 }
 0x399   : > { %v6399_v43 = vadd.f32 %v6398_v39, %v6370_v18 }
 0x39b   : > { %v6408_v15 = vadd.f32 %v6399_v43, %v11707_v49  ;;  %v4291_v49 = vrot.slane %v4290_v59, 1 }
 0x39d   : > { %v9697_v31 = vpack.c.bf16 %v6408_v15, %v6407_v45  ;;  %v6432_v48 = vadd.f32 %v6431_v52, %v6408_v15  ;;  %v6447_v46 = vmul.f32 %v6408_v15, %v6408_v15  ;;  %v4292_v17 = vadd.f32 %v4291_v49, %v4290_v59 }
 0x39f   : > { %9705 = vst [vmem:[%s11419_s12 + $0x38] sm:$0xff] %v9697_v31   ;;  %v6433_v28 = vrot.slane %v6432_v48, 4  ;;  %v6454_v0 = vadd.f32 %v6453_v63, %v6447_v46 }
 0x3a1   : > { %v6434_v6 = vadd.f32 %v6433_v28, %v6432_v48  ;;  %v6455_v3 = vrot.slane %v6454_v0, 4 }
 0x3a3   : > { %v6435_v51 = vrot.slane %v6434_v6, 2  ;;  %v6456_v61 = vadd.f32 %v6455_v3, %v6454_v0 }
 0x3a5   : > { %v6436_v27 = vadd.f32 %v6435_v51, %v6434_v6  ;;  %v6457_v56 = vrot.slane %v6456_v61, 2 }
 0x3a7   : > { %v6437_v57 = vrot.slane %v6436_v27, 1  ;;  %v6458_v2 = vadd.f32 %v6457_v56, %v6456_v61 }
 0x3a9   : > { %v6438_v19 = vadd.f32 %v6437_v57, %v6436_v27  ;;  %v6459_v20 = vrot.slane %v6458_v2, 1 }
 0x3ab   : > { %v6439_v58 = vadd.f32 %v6438_v19, %v4270_v21  ;;  %v6460_v60 = vadd.f32 %v6459_v20, %v6458_v2 }
 0x3ad   : > { %v6461_v26 = vadd.f32 %v6460_v60, %v4292_v17  ;;  %6462 = vst [vmem:[%s312_s19] sm:$0x1] %v6439_v58 }
 0x3af   : > { %6463 = vst [vmem:[%s315_s22] sm:$0x1] %v6461_v26 }
 0x3b0 PF: > { %s18_s24 = sadd.s32 1, %s9724_s24  }
 0x3b1   : > { %p15_p4 = scmp.ge.s32.totalorder %s18_s24, 4  }
 0x3b3   :  { %17 = sbr.rel (!%p15_p4) target bundleno = 1 (0x1), region = 110 }

</bundles_post_ra>
